<compile_context>
chip_gen: v5e
topology: v5e:2x2
jax: 0.10.0
libtpu: 0.0.40
codegen_flags: <defaults>
</compile_context>

<pallas_src>
import functools
import math

import numpy as np
import jax
import jax.numpy as jnp
from jax import lax
from jax.experimental import pallas as pl
from jax.experimental.pallas import tpu as pltpu


def _attention_kernel(out_in_ref, q_ref, rflat_ref,
                      wq_ref, bq_ref, wc_ref, bc_ref, v_ref,
                      wout_ref, bout_ref,
                      res_ref, *, seq_len, mm_dtype, elem_dtype, approx_recip):
    """One grid step == one tile of TB batch rows (ref arrives flattened: (TB*S, H))."""
    TBS, H = rflat_ref.shape
    S = seq_len
    TB = TBS // S
    mmt = mm_dtype

    # ---- projections (MXU, batched over the whole tile) ---------------------
    # W_query(query): (TB,H) @ (H,H)^T + bq
    q_proj = lax.dot_general(
        q_ref[...].astype(mmt), wq_ref[...].astype(mmt),
        (((1,), (1,)), ((), ())), preferred_element_type=jnp.float32) + bq_ref[...]

    # W_ref (Conv1d k=1) over all TB*S sequence positions in one 2D matmul.
    rc = lax.dot_general(
        rflat_ref[...].astype(mmt), wc_ref[...].astype(mmt),
        (((1,), (1,)), ((), ())), preferred_element_type=jnp.float32) + bc_ref[...]
    rc3 = rc.reshape(TB, S, H)            # leading-dim split; rc stays f32 (accumulator)

    # ---- attention scores on VPU/EUP/XLU (no M=1 MXU matmul) ----------------
    # Big elementwise block optionally in bf16 (v6e/v7x); softmax stays f32.
    q_e = q_proj.astype(elem_dtype)
    rc_e = rc3.astype(elem_dtype)
    v_e = v_ref[...][None].astype(elem_dtype)                    # (1,1,H)
    right = jnp.tanh(q_e[:, None, :] + rc_e)                     # (TB,S,H)
    logits = jnp.sum((right * v_e).astype(jnp.float32),
                     axis=-1, keepdims=True)                     # (TB,S,1)  S on sublanes

    # softmax over the sequence axis (sublane reduction), all f32
    m = jnp.max(logits, axis=1, keepdims=True)                   # (TB,1,1)
    e = jnp.exp(logits - m)                                      # (TB,S,1)
    denom = jnp.sum(e, axis=1, keepdims=True)                    # (TB,1,1)
    if approx_recip:
        w = e * pl.reciprocal(denom, approx=True)                # bf16 fast path only
    else:
        w = e / denom                                            # exact; denom is tiny

    # expected_annotation[b,h] = sum_s w[b,s] * rc[b,s,h]   (f32 accumulation)
    expected = jnp.sum(rc3 * w, axis=1)                          # (TB,H)

    # ---- fused W_out(concat([output, expected])) : one K=2H matmul ----------
    cat = jnp.concatenate([out_in_ref[...].astype(jnp.float32), expected], axis=1)
    res = lax.dot_general(
        cat.astype(mmt), wout_ref[...].astype(mmt),
        (((1,), (1,)), ((), ())), preferred_element_type=jnp.float32) + bout_ref[...]

    # ---- lane-dense store ----------------------------------------------------
    TBp, W = res_ref.shape
    pack = W // H
    if pack == 1:
        res_ref[...] = res.astype(res_ref.dtype)
    else:
        # res_ref[j, i*H:(i+1)*H] = res[i*TBp + j, :]
        # Contiguous 8-aligned sublane slices packed into 128 lanes -> unmasked vst.
        packed = jnp.concatenate(
            [res[i * TBp:(i + 1) * TBp, :] for i in range(pack)], axis=1)
        res_ref[...] = packed.astype(res_ref.dtype)


def attention_forward(output, query, ref, params, *, block_b=256, min_tiles=1,
                      mm_dtype=jnp.float32, elem_dtype=jnp.float32,
                      approx_softmax=None):
    """Pallas forward. Returns [B, 1, H] like the PyTorch module.

    block_b:    max batch-tile size (rounded to a multiple of 8).
    min_tiles:  keep the grid at >= this many steps (use 2 on v7x: 2 TCs/chip).
    mm_dtype:   MXU operand dtype (bf16 OK on every generation incl. v5e).
    elem_dtype: dtype of the tanh / score-product block (bf16 only on v6e/v7x).
    """
    B, S, H = ref.shape
    Wq, bq, Wc, bc, V, Wout, bout = params

    if approx_softmax is None:
        approx_softmax = (mm_dtype != jnp.float32) or (elem_dtype != jnp.float32)

    # Batch tile: multiple of 8 (sublane rule), as big as block_b / batch allow,
    # but split into >= min_tiles grid steps (v7x megacore).
    B8 = ((B + 7) // 8) * 8
    TB = max(8, (min(block_b, B8) // 8) * 8)
    if min_tiles > 1:
        tgt = ((pl.cdiv(B8, min_tiles) + 7) // 8) * 8
        TB = max(8, min(TB, tgt))
    B_pad = pl.cdiv(B, TB) * TB
    if B_pad != B:
        padn = B_pad - B
        output_p = jnp.pad(output, ((0, padn), (0, 0)))
        query_p = jnp.pad(query, ((0, padn), (0, 0)))
        ref_p = jnp.pad(ref, ((0, padn), (0, 0), (0, 0)))
    else:
        output_p, query_p, ref_p = output, query, ref
    num_tiles = B_pad // TB

    # ref is fed to the kernel pre-flattened -> one dense 2D DMA per tile.
    ref_flat = ref_p.reshape(B_pad * S, H)

    # Lane-dense output packing: pack `pack` batch rows of H lanes into 128 lanes.
    pack = 128 // H if (H < 128 and 128 % H == 0) else 1
    if pack > 1 and not (TB % pack == 0 and ((TB // pack) % 8 == 0 or num_tiles == 1)):
        pack = 1
    TBp = TB // pack

    kernel = functools.partial(_attention_kernel, seq_len=S, mm_dtype=mm_dtype,
                               elem_dtype=elem_dtype, approx_recip=approx_softmax)

    packed = pl.pallas_call(
        kernel,
        out_shape=jax.ShapeDtypeStruct((B_pad // pack, pack * H), jnp.float32),
        grid_spec=pltpu.PrefetchScalarGridSpec(
            num_scalar_prefetch=0,
            grid=(num_tiles,),
            in_specs=[
                pl.BlockSpec((TB, H), lambda b: (b, 0)),          # output
                pl.BlockSpec((TB, H), lambda b: (b, 0)),          # query
                pl.BlockSpec((TB * S, H), lambda b: (b, 0)),      # ref (flattened)
                pl.BlockSpec((H, H), lambda b: (0, 0)),           # W_query weight
                pl.BlockSpec((1, H), lambda b: (0, 0)),           # W_query bias
                pl.BlockSpec((H, H), lambda b: (0, 0)),           # W_ref (conv k=1) weight
                pl.BlockSpec((1, H), lambda b: (0, 0)),           # W_ref bias
                pl.BlockSpec((1, H), lambda b: (0, 0)),           # V
                pl.BlockSpec((H, 2 * H), lambda b: (0, 0)),       # W_out (fused)
                pl.BlockSpec((1, H), lambda b: (0, 0)),           # W_out bias
            ],
            out_specs=pl.BlockSpec((TBp, pack * H), lambda b: (b, 0)),
        ),
        compiler_params=pltpu.CompilerParams(
            dimension_semantics=("parallel",)),
    )(output_p, query_p, ref_flat, Wq, bq, Wc, bc, V, Wout, bout)

    if pack > 1:
        # Undo the in-kernel lane packing:
        # tile t, packed row j, segment i  <->  batch row t*TB + i*TBp + j
        res = packed.reshape(num_tiles, TBp, pack, H)
        res = jnp.transpose(res, (0, 2, 1, 3)).reshape(B_pad, H)
    else:
        res = packed
    res = res[:B]
    return res[:, None, :]                                        # [B,1,H] like PyTorch


def reference_forward(output, query, ref, params):
    """Pure-JAX reference mirroring the PyTorch forward."""
    Wq, bq, Wc, bc, V, Wout, bout = params
    q_proj = query @ Wq.T + bq[0]                              # [B, H]
    rc = jnp.einsum('bsi,oi->bso', ref, Wc) + bc[0]            # [B, S, H]
    right = jnp.tanh(q_proj[:, None, :] + rc)                  # [B, S, H]
    logits = jnp.einsum('bsh,h->bs', right, V[0])              # [B, S]
    w = jax.nn.softmax(logits, axis=1)                         # [B, S]
    expected = jnp.einsum('bsh,bs->bh', rc, w)                 # [B, H]
    concat = jnp.concatenate([output, expected], axis=1)       # [B, 2H]
    res = concat @ Wout.T + bout[0]                            # [B, H]
    return res[:, None, :]


def init_params(key, hidden_size):
    """Deterministic init mimicking torch defaults (uniform +-1/sqrt(fan_in))."""
    H = hidden_size
    ks = jax.random.split(key, 7)
    b1 = 1.0 / math.sqrt(H)
    b2 = 1.0 / math.sqrt(2 * H)
    Wq = jax.random.uniform(ks[0], (H, H), jnp.float32, -b1, b1)
    bq = jax.random.uniform(ks[1], (1, H), jnp.float32, -b1, b1)
    Wc = jax.random.uniform(ks[2], (H, H), jnp.float32, -b1, b1)   # Conv1d k=1 weight (out, in)
    bc = jax.random.uniform(ks[3], (1, H), jnp.float32, -b1, b1)
    V = jax.random.uniform(ks[4], (1, H), jnp.float32, -b1, b1)
    Wout = jax.random.uniform(ks[5], (H, 2 * H), jnp.float32, -b2, b2)
    bout = jax.random.uniform(ks[6], (1, H), jnp.float32, -b2, b2)
    return (Wq, bq, Wc, bc, V, Wout, bout)


if __name__ == "__main__":
    B, S, H = 64, 8, 32
    key = jax.random.PRNGKey(0)
    k_out, k_q, k_r, k_p = jax.random.split(key, 4)

    output = jax.random.normal(k_out, (B, H), jnp.float32)
    query = jax.random.normal(k_q, (B, H), jnp.float32)
    ref = jax.random.normal(k_r, (B, S, H), jnp.float32)
    params = init_params(k_p, H)

    expected = reference_forward(output, query, ref, params)

    # Single 64-row tile (1 grid step): best on v5e/v6e (1 TC). Exact f32 softmax.
    result = attention_forward(output, query, ref, params, block_b=256)
    result = jax.block_until_ready(result)
    assert result.shape == (B, 1, H), result.shape
    np.testing.assert_allclose(np.asarray(result), np.asarray(expected),
                               rtol=2e-3, atol=2e-3)

    # v7x-friendly variant: >=2 parallel grid steps so both TensorCores are used.
    result2 = attention_forward(output, query, ref, params, block_b=256, min_tiles=2)
    result2 = jax.block_until_ready(result2)
    np.testing.assert_allclose(np.asarray(result2), np.asarray(expected),
                               rtol=2e-3, atol=2e-3)

    # bf16 fast path: bf16 MXU (fine on all generations) + bf16 tanh/score product
    # (v6e/v7x vector bf16); softmax and accumulators stay f32.
    result_bf16 = attention_forward(output, query, ref, params, block_b=256,
                                    mm_dtype=jnp.bfloat16, elem_dtype=jnp.bfloat16)
    result_bf16 = jax.block_until_ready(result_bf16)
    np.testing.assert_allclose(np.asarray(result_bf16), np.asarray(expected),
                               rtol=5e-2, atol=5e-2)

    print("KERNEL_OK")
</pallas_src>

<mosaic_0001>
module attributes {stable_mosaic.version = 11 : i64} {
  func.func @_attention_kernel(%arg0: i32, %arg1: memref<64x32xf32, #tpu.memory_space<vmem>>, %arg2: memref<64x32xf32, #tpu.memory_space<vmem>>, %arg3: memref<512x32xf32, #tpu.memory_space<vmem>>, %arg4: memref<32x32xf32, #tpu.memory_space<vmem>>, %arg5: memref<1x32xf32, #tpu.memory_space<vmem>>, %arg6: memref<32x32xf32, #tpu.memory_space<vmem>>, %arg7: memref<1x32xf32, #tpu.memory_space<vmem>>, %arg8: memref<1x32xf32, #tpu.memory_space<vmem>>, %arg9: memref<32x64xf32, #tpu.memory_space<vmem>>, %arg10: memref<1x32xf32, #tpu.memory_space<vmem>>, %arg11: memref<16x128xf32, #tpu.memory_space<vmem>>) attributes {dimension_semantics = [#tpu.dimension_semantics<parallel>], iteration_bounds = array<i64: 1>, scalar_prefetch = 0 : i64, scratch_operands = 0 : i64, tpu.core_type = #tpu.core_type<tc>, window_params = [{transform_indices = @transform_0, window_bounds = array<i64: 64, 32>}, {transform_indices = @transform_1, window_bounds = array<i64: 64, 32>}, {transform_indices = @transform_2, window_bounds = array<i64: 512, 32>}, {pipeline_mode = #tpu.pipeline_mode<synchronous>, transform_indices = @transform_3, window_bounds = array<i64: 32, 32>}, {pipeline_mode = #tpu.pipeline_mode<synchronous>, transform_indices = @transform_4, window_bounds = array<i64: 1, 32>}, {pipeline_mode = #tpu.pipeline_mode<synchronous>, transform_indices = @transform_5, window_bounds = array<i64: 32, 32>}, {pipeline_mode = #tpu.pipeline_mode<synchronous>, transform_indices = @transform_6, window_bounds = array<i64: 1, 32>}, {pipeline_mode = #tpu.pipeline_mode<synchronous>, transform_indices = @transform_7, window_bounds = array<i64: 1, 32>}, {pipeline_mode = #tpu.pipeline_mode<synchronous>, transform_indices = @transform_8, window_bounds = array<i64: 32, 64>}, {pipeline_mode = #tpu.pipeline_mode<synchronous>, transform_indices = @transform_9, window_bounds = array<i64: 1, 32>}, {transform_indices = @transform_10, window_bounds = array<i64: 16, 128>}]} {
    %c0 = arith.constant 0 : index
    %c0_0 = arith.constant 0 : index
    %0 = vector.load %arg2[%c0, %c0_0] : memref<64x32xf32, #tpu.memory_space<vmem>>, vector<64x32xf32>
    %c0_1 = arith.constant 0 : index
    %c0_2 = arith.constant 0 : index
    %1 = vector.load %arg4[%c0_1, %c0_2] : memref<32x32xf32, #tpu.memory_space<vmem>>, vector<32x32xf32>
    %cst = arith.constant dense<0.000000e+00> : vector<64x32xf32>
    %2 = tpu.matmul %0, %1, %cst {dimension_numbers = #tpu.dot_dimension_numbers<[1], [1], [0], [0], [0, 0, 1, 0], [], []>} : vector<64x32xf32>, vector<32x32xf32>, vector<64x32xf32> -> vector<64x32xf32>
    %c0_3 = arith.constant 0 : index
    %c0_4 = arith.constant 0 : index
    %3 = vector.load %arg5[%c0_3, %c0_4] : memref<1x32xf32, #tpu.memory_space<vmem>>, vector<1x32xf32>
    %4 = vector.broadcast %3 : vector<1x32xf32> to vector<64x32xf32>
    %5 = arith.addf %2, %4 : vector<64x32xf32>
    %c0_5 = arith.constant 0 : index
    %c0_6 = arith.constant 0 : index
    %6 = vector.load %arg3[%c0_5, %c0_6] : memref<512x32xf32, #tpu.memory_space<vmem>>, vector<512x32xf32>
    %c0_7 = arith.constant 0 : index
    %c0_8 = arith.constant 0 : index
    %7 = vector.load %arg6[%c0_7, %c0_8] : memref<32x32xf32, #tpu.memory_space<vmem>>, vector<32x32xf32>
    %cst_9 = arith.constant dense<0.000000e+00> : vector<512x32xf32>
    %8 = tpu.matmul %6, %7, %cst_9 {dimension_numbers = #tpu.dot_dimension_numbers<[1], [1], [0], [0], [0, 0, 1, 0], [], []>} : vector<512x32xf32>, vector<32x32xf32>, vector<512x32xf32> -> vector<512x32xf32>
    %c0_10 = arith.constant 0 : index
    %c0_11 = arith.constant 0 : index
    %9 = vector.load %arg7[%c0_10, %c0_11] : memref<1x32xf32, #tpu.memory_space<vmem>>, vector<1x32xf32>
    %10 = vector.broadcast %9 : vector<1x32xf32> to vector<512x32xf32>
    %11 = arith.addf %8, %10 : vector<512x32xf32>
    %12 = vector.shape_cast %11 : vector<512x32xf32> to vector<64x8x32xf32>
    %c0_12 = arith.constant 0 : index
    %c0_13 = arith.constant 0 : index
    %13 = vector.load %arg8[%c0_12, %c0_13] : memref<1x32xf32, #tpu.memory_space<vmem>>, vector<1x32xf32>
    %14 = vector.shape_cast %13 : vector<1x32xf32> to vector<1x1x32xf32>
    %15 = vector.shape_cast %5 : vector<64x32xf32> to vector<64x1x32xf32>
    %16 = vector.broadcast %15 : vector<64x1x32xf32> to vector<64x8x32xf32>
    %17 = arith.addf %16, %12 : vector<64x8x32xf32>
    %18 = math.tanh %17 : vector<64x8x32xf32>
    %19 = vector.broadcast %14 : vector<1x1x32xf32> to vector<64x8x32xf32>
    %20 = arith.mulf %18, %19 : vector<64x8x32xf32>
    %cst_14 = arith.constant dense<0.000000e+00> : vector<64x8xf32>
    %21 = vector.multi_reduction <add>, %20, %cst_14 [2] : vector<64x8x32xf32> to vector<64x8xf32>
    %22 = vector.shape_cast %21 : vector<64x8xf32> to vector<64x8x1xf32>
    %cst_15 = arith.constant dense<0xFF800000> : vector<64x1xf32>
    %23 = vector.multi_reduction <maximumf>, %22, %cst_15 [1] : vector<64x8x1xf32> to vector<64x1xf32>
    %24 = vector.shape_cast %23 : vector<64x1xf32> to vector<64x1x1xf32>
    %25 = vector.broadcast %24 : vector<64x1x1xf32> to vector<64x8x1xf32>
    %26 = arith.subf %22, %25 : vector<64x8x1xf32>
    %27 = math.exp %26 : vector<64x8x1xf32>
    %cst_16 = arith.constant dense<0.000000e+00> : vector<64x1xf32>
    %28 = vector.multi_reduction <add>, %27, %cst_16 [1] : vector<64x8x1xf32> to vector<64x1xf32>
    %29 = vector.shape_cast %28 : vector<64x1xf32> to vector<64x1x1xf32>
    %30 = vector.broadcast %29 : vector<64x1x1xf32> to vector<64x8x1xf32>
    %31 = arith.divf %27, %30 : vector<64x8x1xf32>
    %32 = vector.broadcast %31 : vector<64x8x1xf32> to vector<64x8x32xf32>
    %33 = arith.mulf %12, %32 : vector<64x8x32xf32>
    %cst_17 = arith.constant dense<0.000000e+00> : vector<64x32xf32>
    %34 = vector.multi_reduction <add>, %33, %cst_17 [1] : vector<64x8x32xf32> to vector<64x32xf32>
    %c0_18 = arith.constant 0 : index
    %c0_19 = arith.constant 0 : index
    %35 = vector.load %arg1[%c0_18, %c0_19] : memref<64x32xf32, #tpu.memory_space<vmem>>, vector<64x32xf32>
    %36 = tpu.concatenate %35, %34 in 1 : vector<64x32xf32>, vector<64x32xf32> -> vector<64x64xf32>
    %c0_20 = arith.constant 0 : index
    %c0_21 = arith.constant 0 : index
    %37 = vector.load %arg9[%c0_20, %c0_21] : memref<32x64xf32, #tpu.memory_space<vmem>>, vector<32x64xf32>
    %cst_22 = arith.constant dense<0.000000e+00> : vector<64x32xf32>
    %38 = tpu.matmul %36, %37, %cst_22 {dimension_numbers = #tpu.dot_dimension_numbers<[1], [1], [0], [0], [0, 0, 1, 0], [], []>} : vector<64x64xf32>, vector<32x64xf32>, vector<64x32xf32> -> vector<64x32xf32>
    %c0_23 = arith.constant 0 : index
    %c0_24 = arith.constant 0 : index
    %39 = vector.load %arg10[%c0_23, %c0_24] : memref<1x32xf32, #tpu.memory_space<vmem>>, vector<1x32xf32>
    %40 = vector.broadcast %39 : vector<1x32xf32> to vector<64x32xf32>
    %41 = arith.addf %38, %40 : vector<64x32xf32>
    %42 = vector.extract_strided_slice %41 {offsets = [0, 0], sizes = [16, 32], strides = [1, 1]} : vector<64x32xf32> to vector<16x32xf32>
    %43 = vector.extract_strided_slice %41 {offsets = [16, 0], sizes = [16, 32], strides = [1, 1]} : vector<64x32xf32> to vector<16x32xf32>
    %44 = vector.extract_strided_slice %41 {offsets = [32, 0], sizes = [16, 32], strides = [1, 1]} : vector<64x32xf32> to vector<16x32xf32>
    %45 = vector.extract_strided_slice %41 {offsets = [48, 0], sizes = [16, 32], strides = [1, 1]} : vector<64x32xf32> to vector<16x32xf32>
    %46 = tpu.concatenate %42, %43, %44, %45 in 1 : vector<16x32xf32>, vector<16x32xf32>, vector<16x32xf32>, vector<16x32xf32> -> vector<16x128xf32>
    %c0_25 = arith.constant 0 : index
    %c0_26 = arith.constant 0 : index
    %47 = vector.load %arg11[%c0_25, %c0_26] : memref<16x128xf32, #tpu.memory_space<vmem>>, vector<16x128xf32>
    tpu.vector_store %arg11[%c0_25, %c0_26], %46 {strides = array<i32>} : memref<16x128xf32, #tpu.memory_space<vmem>>, vector<16x128xf32>,
    return
  }
  func.func @transform_0(%arg0: i32) -> (i32, i32) {
    %c0_i32 = arith.constant 0 : i32
    %c0_i32_0 = arith.constant 0 : i32
    return %arg0, %c0_i32 : i32, i32
  }
  func.func @transform_1(%arg0: i32) -> (i32, i32) {
    %c0_i32 = arith.constant 0 : i32
    %c0_i32_0 = arith.constant 0 : i32
    return %arg0, %c0_i32 : i32, i32
  }
  func.func @transform_2(%arg0: i32) -> (i32, i32) {
    %c0_i32 = arith.constant 0 : i32
    %c0_i32_0 = arith.constant 0 : i32
    return %arg0, %c0_i32 : i32, i32
  }
  func.func @transform_3(%arg0: i32) -> (i32, i32) {
    %c0_i32 = arith.constant 0 : i32
    %c0_i32_0 = arith.constant 0 : i32
    %c0_i32_1 = arith.constant 0 : i32
    return %c0_i32, %c0_i32_0 : i32, i32
  }
  func.func @transform_4(%arg0: i32) -> (i32, i32) {
    %c0_i32 = arith.constant 0 : i32
    %c0_i32_0 = arith.constant 0 : i32
    %c0_i32_1 = arith.constant 0 : i32
    return %c0_i32, %c0_i32_0 : i32, i32
  }
  func.func @transform_5(%arg0: i32) -> (i32, i32) {
    %c0_i32 = arith.constant 0 : i32
    %c0_i32_0 = arith.constant 0 : i32
    %c0_i32_1 = arith.constant 0 : i32
    return %c0_i32, %c0_i32_0 : i32, i32
  }
  func.func @transform_6(%arg0: i32) -> (i32, i32) {
    %c0_i32 = arith.constant 0 : i32
    %c0_i32_0 = arith.constant 0 : i32
    %c0_i32_1 = arith.constant 0 : i32
    return %c0_i32, %c0_i32_0 : i32, i32
  }
  func.func @transform_7(%arg0: i32) -> (i32, i32) {
    %c0_i32 = arith.constant 0 : i32
    %c0_i32_0 = arith.constant 0 : i32
    %c0_i32_1 = arith.constant 0 : i32
    return %c0_i32, %c0_i32_0 : i32, i32
  }
  func.func @transform_8(%arg0: i32) -> (i32, i32) {
    %c0_i32 = arith.constant 0 : i32
    %c0_i32_0 = arith.constant 0 : i32
    %c0_i32_1 = arith.constant 0 : i32
    return %c0_i32, %c0_i32_0 : i32, i32
  }
  func.func @transform_9(%arg0: i32) -> (i32, i32) {
    %c0_i32 = arith.constant 0 : i32
    %c0_i32_0 = arith.constant 0 : i32
    %c0_i32_1 = arith.constant 0 : i32
    return %c0_i32, %c0_i32_0 : i32, i32
  }
  func.func @transform_10(%arg0: i32) -> (i32, i32) {
    %c0_i32 = arith.constant 0 : i32
    %c0_i32_0 = arith.constant 0 : i32
    return %arg0, %c0_i32 : i32, i32
  }
}

</mosaic_0001>

<bundles_post_ra>
// kernel: tpu_custom_call.1
= control target key start
LH: loop header
LB: loop body
LE: loop exit
PB: predicated region body
PF: predicated region fallthrough
CT: control target
= control target key end

     0   :  { %vm52_vm0 = vcmask 261120   ;;  %s8333_s0 = inlined_call_operand.vmem [shape: f32[64,32], index: 0, kind: input, shape index: {}]   ;;  %s8334_s1 = inlined_call_operand.vmem [shape: f32[64,32], index: 1, kind: input, shape index: {}]   ;;  %s8335_s2 = inlined_call_operand.vmem [shape: f32[512,32], index: 2, kind: input, shape index: {}]   ;;  %s8336_s3 = inlined_call_operand.vmem [shape: f32[32,32], index: 3, kind: input, shape index: {}]   ;;  %s8337_s4 = inlined_call_operand.vmem [shape: f32[1,32], index: 4, kind: input, shape index: {}]   ;;  %s8338_s5 = inlined_call_operand.vmem [shape: f32[32,32], index: 5, kind: input, shape index: {}]   ;;  %s8339_s6 = inlined_call_operand.vmem [shape: f32[1,32], index: 6, kind: input, shape index: {}]   ;;  %s8340_s7 = inlined_call_operand.vmem [shape: f32[1,32], index: 7, kind: input, shape index: {}]   ;;  %s8341_s8 = inlined_call_operand.vmem [shape: f32[32,64], index: 8, kind: input, shape index: {}]   ;;  %s8342_s9 = inlined_call_operand.vmem [shape: f32[1,32], index: 9, kind: input, shape index: {}]   ;;  %s8343_s10 = inlined_call_operand.hbm [shape: f32[16,128], index: 10, kind: output, shape index: {}]  }
   0x1   :  { %v47_v0 = vld [vmem:[%s8336_s3 + $0x18] sm:$0xff]  ;;  %v46_v2 = vld [vmem:[%s8336_s3 + $0x10] sm:$0xff]  ;;  %v45_v4 = vld [vmem:[%s8336_s3 + $0x8] sm:$0xff] }
   0x2   :  { %v197_v1 = vld [vmem:[%s8338_s5 + $0x18] sm:$0xff]  ;;  %3931 = vmatpush.xpose.msk.msra.mxu0 %vm52_vm0, %v47_v0  ;;  %v196_v3 = vld [vmem:[%s8338_s5 + $0x10] sm:$0xff]  ;;  %v195_v5 = vld [vmem:[%s8338_s5 + $0x8] sm:$0xff] }
   0x3   :  { %4023 = vmatpush.xpose.msk.msra.mxu1 %vm52_vm0, %v197_v1  ;;  %4024 = vmatpush.xpose.msk.msra.mxu2 %vm52_vm0, %v197_v1 }
   0x4   :  { %4025 = vmatpush.xpose.msk.msra.mxu3 %vm52_vm0, %v197_v1 }
   0x6   :  { %3932 = vmatpush.xpose.msk.msra.mxu0 %vm52_vm0, %v46_v2 }
   0x7   :  { %4026 = vmatpush.xpose.msk.msra.mxu1 %vm52_vm0, %v196_v3  ;;  %4027 = vmatpush.xpose.msk.msra.mxu2 %vm52_vm0, %v196_v3 }
   0x8   :  { %4028 = vmatpush.xpose.msk.msra.mxu3 %vm52_vm0, %v196_v3 }
   0xa   :  { %3933 = vmatpush.xpose.msk.msra.mxu0 %vm52_vm0, %v45_v4 }
   0xb   :  { %4029 = vmatpush.xpose.msk.msra.mxu1 %vm52_vm0, %v195_v5 }
   0xc   :  { %15 = vsyncpa [#allocation3], 0  ;;  %4030 = vmatpush.xpose.msk.msra.mxu2 %vm52_vm0, %v195_v5  ;;  %4031 = vmatpush.xpose.msk.msra.mxu3 %vm52_vm0, %v195_v5  ;;  %v44_v6 = vld [vmem:[%s8336_s3] sm:$0xff]  ;;  %v37_v12 = vld [vmem:[%s8334_s1 + $0x8] sm:$0xff]  ;;  %s4460_s23 = smov 96   ;;  %s3919_s26 = sshll.u32 %s8343_s10, 4  ;;  %s3920_s26 = int_to_ptr.hbm [resolvable:$true] %s3919_s26 }
   0xd   :  { %v194_v7 = vld [vmem:[%s8338_s5] sm:$0xff]  ;;  %v143_v13 = vld [vmem:[%s8335_s2 + $0x68] sm:$0xff]  ;;  %v38_v16 = vld [vmem:[%s8334_s1 + $0x10] sm:$0xff] }
   0xe   :  { %3934 = vmatpush.xpose.msk.msra.mxu0 %vm52_vm0, %v44_v6  ;;  %v36_v8 = vld [vmem:[%s8334_s1] sm:$0xff]  ;;  %v163_v14 = vld [vmem:[%s8335_s2 + $0x108] sm:$0xff]  ;;  %v144_v17 = vld [vmem:[%s8335_s2 + $0x70] sm:$0xff] }
   0xf   :  { %4032 = vmatpush.xpose.msk.msra.mxu1 %vm52_vm0, %v194_v7  ;;  %v142_v9 = vld [vmem:[%s8335_s2 + $0x60] sm:$0xff]  ;;  %v175_v15 = vld [vmem:[%s8335_s2 + $0x168] sm:$0xff]  ;;  %v164_v18 = vld [vmem:[%s8335_s2 + $0x110] sm:$0xff] }
  0x10   :  { %4033 = vmatpush.xpose.msk.msra.mxu2 %vm52_vm0, %v194_v7  ;;  %4034 = vmatpush.xpose.msk.msra.mxu3 %vm52_vm0, %v194_v7  ;;  %v162_v10 = vld [vmem:[%s8335_s2 + $0x100] sm:$0xff]  ;;  %v176_v19 = vld [vmem:[%s8335_s2 + $0x170] sm:$0xff]  ;;  %v39_v20 = vld [vmem:[%s8334_s1 + $0x18] sm:$0xff] }
  0x11   :  { %v174_v11 = vld [vmem:[%s8335_s2 + $0x160] sm:$0xff]  ;;  %3935 = vmatmul.msk.f32.vlgmr.msra.gmra.mxu0 %vm52_vm0, %v36_v8  ;;  %v145_v21 = vld [vmem:[%s8335_s2 + $0x78] sm:$0xff]  ;;  %v41_v28 = vld [vmem:[%s8334_s1 + $0x28] sm:$0xff] }
  0x12   :  { %3943 = vmatpush.xpose.msk.msrb.mxu0 %vm52_vm0, %v197_v1  ;;  %3959 = vmatmul.msk.f32.vlgmr.msra.gmra.mxu1 %vm52_vm0, %v142_v9  ;;  %v165_v22 = vld [vmem:[%s8335_s2 + $0x118] sm:$0xff]  ;;  %v40_v24 = vld [vmem:[%s8334_s1 + $0x20] sm:$0xff]  ;;  %v147_v29 = vld [vmem:[%s8335_s2 + $0x88] sm:$0xff] }
  0x13   :  { %3979 = vmatmul.msk.f32.vlgmr.msra.gmra.mxu2 %vm52_vm0, %v162_v10  ;;  %3991 = vmatmul.msk.f32.vlgmr.msra.gmra.mxu3 %vm52_vm0, %v174_v11  ;;  %v177_v23 = vld [vmem:[%s8335_s2 + $0x178] sm:$0xff]  ;;  %v146_v25 = vld [vmem:[%s8335_s2 + $0x80] sm:$0xff]  ;;  %v167_v30 = vld [vmem:[%s8335_s2 + $0x128] sm:$0xff] }
  0x14   :  { %v166_v26 = vld [vmem:[%s8335_s2 + $0x120] sm:$0xff]  ;;  %v179_v31 = vld [vmem:[%s8335_s2 + $0x188] sm:$0xff]  ;;  %v42_v32 = vld [vmem:[%s8334_s1 + $0x30] sm:$0xff] }
  0x15   :  { %v178_v27 = vld [vmem:[%s8335_s2 + $0x180] sm:$0xff]  ;;  %v148_v33 = vld [vmem:[%s8335_s2 + $0x90] sm:$0xff]  ;;  %v43_v36 = vld [vmem:[%s8334_s1 + $0x38] sm:$0xff]  ;;  %s4462_s1 = smov 128  }
  0x16   :  { %3944 = vmatpush.xpose.msk.msrb.mxu0 %vm52_vm0, %v196_v3  ;;  %v168_v34 = vld [vmem:[%s8335_s2 + $0x130] sm:$0xff]  ;;  %v149_v37 = vld [vmem:[%s8335_s2 + $0x98] sm:$0xff]  ;;  %v130_v40 = vld [vmem:[%s8335_s2] sm:$0xff] }
  0x17   :  { %v180_v35 = vld [vmem:[%s8335_s2 + $0x190] sm:$0xff]  ;;  %v169_v38 = vld [vmem:[%s8335_s2 + $0x138] sm:$0xff]  ;;  %v150_v41 = vld [vmem:[%s8335_s2 + $0xa0] sm:$0xff] }
  0x18   :  { %v181_v39 = vld [vmem:[%s8335_s2 + $0x198] sm:$0xff]  ;;  %v170_v42 = vld [vmem:[%s8335_s2 + $0x140] sm:$0xff]  ;;  %v131_v44 = vld [vmem:[%s8335_s2 + $0x8] sm:$0xff] }
  0x19   :  { %3936 = vmatmul.msk.f32.gmra.mxu0 %vm52_vm0, %v37_v12  ;;  %v182_v43 = vld [vmem:[%s8335_s2 + $0x1a0] sm:$0xff]  ;;  %v151_v45 = vld [vmem:[%s8335_s2 + $0xa8] sm:$0xff]  ;;  %v132_v48 = vld [vmem:[%s8335_s2 + $0x10] sm:$0xff] }
  0x1a   :  { %3945 = vmatpush.xpose.msk.msrb.mxu0 %vm52_vm0, %v195_v5  ;;  %3960 = vmatmul.msk.f32.gmra.mxu1 %vm52_vm0, %v143_v13  ;;  %v171_v46 = vld [vmem:[%s8335_s2 + $0x148] sm:$0xff]  ;;  %v152_v49 = vld [vmem:[%s8335_s2 + $0xb0] sm:$0xff]  ;;  %v133_v52 = vld [vmem:[%s8335_s2 + $0x18] sm:$0xff] }
  0x1b   :  { %3980 = vmatmul.msk.f32.gmra.mxu2 %vm52_vm0, %v163_v14  ;;  %3992 = vmatmul.msk.f32.gmra.mxu3 %vm52_vm0, %v175_v15  ;;  %v183_v47 = vld [vmem:[%s8335_s2 + $0x1a8] sm:$0xff]  ;;  %v172_v50 = vld [vmem:[%s8335_s2 + $0x150] sm:$0xff]  ;;  %v153_v53 = vld [vmem:[%s8335_s2 + $0xb8] sm:$0xff] }
  0x1c   :  { %v184_v51 = vld [vmem:[%s8335_s2 + $0x1b0] sm:$0xff]  ;;  %v173_v54 = vld [vmem:[%s8335_s2 + $0x158] sm:$0xff]  ;;  %v134_v56 = vld [vmem:[%s8335_s2 + $0x20] sm:$0xff] }
  0x1d   :  { %v185_v55 = vld [vmem:[%s8335_s2 + $0x1b8] sm:$0xff]  ;;  %v154_v57 = vld [vmem:[%s8335_s2 + $0xc0] sm:$0xff]  ;;  %v135_v59 = vld [vmem:[%s8335_s2 + $0x28] sm:$0xff] }
  0x1e   :  { %3946 = vmatpush.xpose.msk.msrb.mxu0 %vm52_vm0, %v194_v7  ;;  %v186_v58 = vld [vmem:[%s8335_s2 + $0x1c0] sm:$0xff]  ;;  %v155_v60 = vld [vmem:[%s8335_s2 + $0xc8] sm:$0xff]  ;;  %v136_v62 = vld [vmem:[%s8335_s2 + $0x30] sm:$0xff] }
  0x1f   :  { %v187_v61 = vld [vmem:[%s8335_s2 + $0x1c8] sm:$0xff]  ;;  %v156_v63 = vld [vmem:[%s8335_s2 + $0xd0] sm:$0xff]  ;;  %v137_v1 = vld [vmem:[%s8335_s2 + $0x38] sm:$0xff] }
  0x20   :  { %v188_v0 = vld [vmem:[%s8335_s2 + $0x1d0] sm:$0xff]  ;;  %v157_v2 = vld [vmem:[%s8335_s2 + $0xd8] sm:$0xff]  ;;  %v138_v6 = vld [vmem:[%s8335_s2 + $0x40] sm:$0xff] }
  0x21   :  { %3937 = vmatmul.msk.f32.gmra.mxu0 %vm52_vm0, %v38_v16  ;;  %v189_v3 = vld [vmem:[%s8335_s2 + $0x1d8] sm:$0xff]  ;;  %v158_v7 = vld [vmem:[%s8335_s2 + $0xe0] sm:$0xff]  ;;  %v139_v13 = vld [vmem:[%s8335_s2 + $0x48] sm:$0xff] }
  0x22   :  { %3961 = vmatmul.msk.f32.gmra.mxu1 %vm52_vm0, %v144_v17  ;;  %v190_v8 = vld [vmem:[%s8335_s2 + $0x1e0] sm:$0xff]  ;;  %v159_v14 = vld [vmem:[%s8335_s2 + $0xe8] sm:$0xff] }
  0x23   :  { %3981 = vmatmul.msk.f32.gmra.mxu2 %vm52_vm0, %v164_v18  ;;  %3993 = vmatmul.msk.f32.gmra.mxu3 %vm52_vm0, %v176_v19  ;;  %v4820_v9 = vld [vmem:[%s8337_s4] ss:$0 sm:$0xff]  ;;  %v191_v17 = vld [vmem:[%s8335_s2 + $0x1e8] sm:$0xff]  ;;  %s4463_s4 = smov 8  }
  0x24   :  { %v4833_v15 = vld [vmem:[%s8339_s6] ss:$0 sm:$0xff] }
  0x29   :  { %3938 = vmatmul.msk.f32.gmra.mxu0 %vm52_vm0, %v39_v20 }
  0x2a   :  { %3962 = vmatmul.msk.f32.gmra.mxu1 %vm52_vm0, %v145_v21 }
  0x2b   :  { %3982 = vmatmul.msk.f32.gmra.mxu2 %vm52_vm0, %v165_v22  ;;  %3994 = vmatmul.msk.f32.gmra.mxu3 %vm52_vm0, %v177_v23 }
  0x31   :  { %3939 = vmatmul.msk.f32.gmra.mxu0 %vm52_vm0, %v40_v24 }
  0x32   :  { %3963 = vmatmul.msk.f32.gmra.mxu1 %vm52_vm0, %v146_v25 }
  0x33   :  { %3983 = vmatmul.msk.f32.gmra.mxu2 %vm52_vm0, %v166_v26  ;;  %3995 = vmatmul.msk.f32.gmra.mxu3 %vm52_vm0, %v178_v27 }
  0x39   :  { %3940 = vmatmul.msk.f32.gmra.mxu0 %vm52_vm0, %v41_v28 }
  0x3a   :  { %3964 = vmatmul.msk.f32.gmra.mxu1 %vm52_vm0, %v147_v29 }
  0x3b   :  { %3984 = vmatmul.msk.f32.gmra.mxu2 %vm52_vm0, %v167_v30  ;;  %3996 = vmatmul.msk.f32.gmra.mxu3 %vm52_vm0, %v179_v31  ;;  %v140_v30 = vld [vmem:[%s8335_s2 + $0x50] sm:$0xff] }
  0x3c   :  { %v160_v31 = vld [vmem:[%s8335_s2 + $0xf0] sm:$0xff] }
  0x41   :  { %3941 = vmatmul.msk.f32.gmra.mxu0 %vm52_vm0, %v42_v32 }
  0x42   :  { %3965 = vmatmul.msk.f32.gmra.mxu1 %vm52_vm0, %v148_v33 }
  0x43   :  { %3985 = vmatmul.msk.f32.gmra.mxu2 %vm52_vm0, %v168_v34  ;;  %3997 = vmatmul.msk.f32.gmra.mxu3 %vm52_vm0, %v180_v35  ;;  %v192_v34 = vld [vmem:[%s8335_s2 + $0x1f0] sm:$0xff] }
  0x49   :  { %3942 = vmatmul.msk.f32.gmra.mxu0 %vm52_vm0, %v43_v36  ;;  %v4876_v36 = vld [vmem:[%s8340_s7] ss:$0 sm:$0xff] }
  0x4a   :  { %3966 = vmatmul.msk.f32.gmra.mxu1 %vm52_vm0, %v149_v37 }
  0x4b   :  { %3986 = vmatmul.msk.f32.gmra.mxu2 %vm52_vm0, %v169_v38  ;;  %3998 = vmatmul.msk.f32.gmra.mxu3 %vm52_vm0, %v181_v39 }
  0x51   :  { %3947 = vmatmul.msk.f32.vlgmr.msrb.gmra.mxu0 %vm52_vm0, %v130_v40 }
  0x52   :  { %3967 = vmatmul.msk.f32.gmra.mxu1 %vm52_vm0, %v150_v41 }
  0x53   :  { %3987 = vmatmul.msk.f32.gmra.mxu2 %vm52_vm0, %v170_v42  ;;  %3999 = vmatmul.msk.f32.gmra.mxu3 %vm52_vm0, %v182_v43 }
  0x59   :  { %3948 = vmatmul.msk.f32.gmra.mxu0 %vm52_vm0, %v131_v44  ;;  %v141_v44 = vld [vmem:[%s8335_s2 + $0x58] sm:$0xff] }
  0x5a   :  { %3968 = vmatmul.msk.f32.gmra.mxu1 %vm52_vm0, %v151_v45  ;;  %v161_v45 = vld [vmem:[%s8335_s2 + $0xf8] sm:$0xff] }
  0x5b   :  { %3988 = vmatmul.msk.f32.gmra.mxu2 %vm52_vm0, %v171_v46  ;;  %4000 = vmatmul.msk.f32.gmra.mxu3 %vm52_vm0, %v183_v47 }
  0x61   :  { %3949 = vmatmul.msk.f32.gmra.mxu0 %vm52_vm0, %v132_v48 }
  0x62   :  { %3969 = vmatmul.msk.f32.gmra.mxu1 %vm52_vm0, %v152_v49 }
  0x63   :  { %3989 = vmatmul.msk.f32.gmra.mxu2 %vm52_vm0, %v172_v50  ;;  %4001 = vmatmul.msk.f32.gmra.mxu3 %vm52_vm0, %v184_v51  ;;  %v193_v50 = vld [vmem:[%s8335_s2 + $0x1f8] sm:$0xff] }
  0x69   :  { %3950 = vmatmul.msk.f32.gmra.mxu0 %vm52_vm0, %v133_v52 }
  0x6a   :  { %3970 = vmatmul.msk.f32.gmra.mxu1 %vm52_vm0, %v153_v53 }
  0x6b   :  { %3990 = vmatmul.msk.f32.gmra.mxu2 %vm52_vm0, %v173_v54  ;;  %4002 = vmatmul.msk.f32.gmra.mxu3 %vm52_vm0, %v185_v55 }
  0x71   :  { %3951 = vmatmul.msk.f32.gmra.mxu0 %vm52_vm0, %v134_v56 }
  0x72   :  { %3971 = vmatmul.msk.f32.gmra.mxu1 %vm52_vm0, %v154_v57 }
  0x73   :  { %4003 = vmatmul.msk.f32.gmra.mxu3 %vm52_vm0, %v186_v58 }
  0x79   :  { %3952 = vmatmul.msk.f32.gmra.mxu0 %vm52_vm0, %v135_v59 }
  0x7a   :  { %3972 = vmatmul.msk.f32.gmra.mxu1 %vm52_vm0, %v155_v60 }
  0x7b   :  { %4004 = vmatmul.msk.f32.gmra.mxu3 %vm52_vm0, %v187_v61 }
  0x81   :  { %3953 = vmatmul.msk.f32.gmra.mxu0 %vm52_vm0, %v136_v62 }
  0x82   :  { %3973 = vmatmul.msk.f32.gmra.mxu1 %vm52_vm0, %v156_v63 }
  0x83   :  { %4005 = vmatmul.msk.f32.gmra.mxu3 %vm52_vm0, %v188_v0 }
  0x89   :  { %3954 = vmatmul.msk.f32.gmra.mxu0 %vm52_vm0, %v137_v1 }
  0x8a   :  { %3974 = vmatmul.msk.f32.gmra.mxu1 %vm52_vm0, %v157_v2 }
  0x8b   :  { %4006 = vmatmul.msk.f32.gmra.mxu3 %vm52_vm0, %v189_v3 }
  0x8e   :  { %v4803_v4 = vpop.f32.mrf.mxu0 }
  0x8f   :  { %v459_v5 = vpop.f32.mrf.mxu1 }
  0x90   :  { %v4850_v21 = vadd.f32 %v4833_v15, %v459_v5 }
  0x91   :  { %3955 = vmatmul.msk.f32.gmra.mxu0 %vm52_vm0, %v138_v6 }
  0x92   :  { %3975 = vmatmul.msk.f32.gmra.mxu1 %vm52_vm0, %v158_v7  ;;  %8468 = vst [vmem:[#allocation6_spill] sm:$0xff] %v4850_v21 }
  0x93   :  { %4007 = vmatmul.msk.f32.gmra.mxu3 %vm52_vm0, %v190_v8 }
  0x96   :  { %v4822_v10 = vpop.f32.mrf.mxu2  ;;  %v109_v11 = vpop.f32.mrf.mxu0 }
  0x97   :  { %v462_v12 = vpop.f32.mrf.mxu1  ;;  %v4836_v16 = vadd.f32 %v4820_v9, %v109_v11  ;;  %v4879_v39 = vpop.f32.mrf.mxu3  ;;  %v4920_v3 = vadd.f32 %v4833_v15, %v4822_v10 }
  0x98   :  { %v4842_v18 = vadd.f32 %v4833_v15, %v462_v12 }
  0x99   :  { %v635_v19 = vrot.slane %v4836_v16, 5  ;;  %3956 = vmatmul.msk.f32.gmra.mxu0 %vm52_vm0, %v139_v13  ;;  %v634_v20 = vrot.slane %v4836_v16, 4  ;;  %v636_v23 = vrot.slane %v4836_v16, 6  ;;  %v637_v37 = vrot.slane %v4836_v16, 7 }
  0x9a   :  { %8467 = vst [vmem:[#allocation5_spill] sm:$0xff] %v4842_v18  ;;  %3976 = vmatmul.msk.f32.gmra.mxu1 %vm52_vm0, %v159_v14 }
  0x9b   :  { %4008 = vmatmul.msk.f32.gmra.mxu3 %vm52_vm0, %v191_v17  ;;  %v693_v22 = vperm.slane %v635_v19, 0  ;;  %v692_v24 = vperm.slane %v634_v20, 0  ;;  %v694_v33 = vperm.slane %v636_v23, 0  ;;  %v695_v49 = vperm.slane %v637_v37, 0 }
  0x9d   :  { %v821_v25 = vadd.f32 %v693_v22, %v4842_v18  ;;  %v820_v27 = vadd.f32 %v692_v24, %v4850_v21 }
  0x9e   :  { %v4854_v26 = vpop.f32.mrf.mxu2  ;;  %v112_v28 = vpop.f32.mrf.mxu0 }
  0x9f   :  { %v465_v29 = vpop.f32.mrf.mxu1  ;;  %4045 = vtanh.f32 %v821_v25  ;;  %v4906_v57 = vadd.f32 %v4820_v9, %v112_v28  ;;  %v4909_v62 = vpop.f32.mrf.mxu3  ;;  %v4934_v10 = vadd.f32 %v4833_v15, %v4854_v26 }
  0xa0   :  { %v4864_v32 = vadd.f32 %v4833_v15, %v465_v29  ;;  %4047 = vtanh.f32 %v820_v27 }
  0xa1   :  { %3957 = vmatmul.msk.f32.gmra.mxu0 %vm52_vm0, %v140_v30  ;;  %v696_v1 = vperm.slane %v4906_v57, 0 }
  0xa2   :  { %8469 = vst [vmem:[#allocation7_spill] sm:$0xff] %v4864_v32  ;;  %v822_v35 = vadd.f32 %v694_v33, %v4864_v32  ;;  %3977 = vmatmul.msk.f32.gmra.mxu1 %vm52_vm0, %v160_v31  ;;  %v638_v31 = vrot.slane %v4906_v57, 1 }
  0xa3   :  { %4009 = vmatmul.msk.f32.gmra.mxu3 %vm52_vm0, %v192_v34 }
  0xa4   :  { %4049 = vtanh.f32 %v822_v35 }
  0xa5   :  { %v4046_v38 = vpop.eup %4045 }
  0xa6   :  { %v525_v40 = vpop.f32.mrf.mxu2  ;;  %v4048_v41 = vpop.eup %4047  ;;  %v952_v46 = vmul.f32 %v4046_v38, %v4876_v36 }
  0xa7   :  { %v115_v42 = vpop.f32.mrf.mxu0  ;;  %v468_v43 = vpop.f32.mrf.mxu1  ;;  %v951_v51 = vmul.f32 %v4048_v41, %v4876_v36  ;;  %v4923_v5 = vadd.f32 %v4833_v15, %v525_v40 }
  0xa8   :  { %v4889_v47 = vadd.f32 %v4820_v9, %v115_v42  ;;  %v4892_v48 = vadd.f32 %v4833_v15, %v468_v43  ;;  %v1042_v52 = vsel %vm52_vm0, %v952_v46, 0.0  ;;  %v4950_v37 = vpop.f32.mrf.mxu3 }
  0xa9   :  { %3958 = vmatmul.msk.f32.gmra.mxu0 %vm52_vm0, %v141_v44  ;;  %v1039_v55 = vsel %vm52_vm0, %v951_v51, 0.0  ;;  %1043 = vadd.xlane.f32.xlu1 %v1042_v52  ;;  %v697_v44 = vperm.slane %v638_v31, 0 }
  0xaa   :  { %8470 = vst [vmem:[#allocation8_spill] sm:$0xff] %v4892_v48  ;;  %v4050_v53 = vpop.eup %4049  ;;  %v823_v54 = vadd.f32 %v695_v49, %v4892_v48  ;;  %3978 = vmatmul.msk.f32.gmra.mxu1 %vm52_vm0, %v161_v45  ;;  %1040 = vadd.xlane.f32.xlu0 %v1039_v55  ;;  %v639_v45 = vrot.slane %v4906_v57, 2 }
  0xab   :  { %4010 = vmatmul.msk.f32.gmra.mxu3 %vm52_vm0, %v193_v50  ;;  %v953_v56 = vmul.f32 %v4050_v53, %v4876_v36 }
  0xac   :  { %4051 = vtanh.f32 %v823_v54 }
  0xad   :  { %v1045_v58 = vsel %vm52_vm0, %v953_v56, 0.0 }
  0xae   :  { %v528_v59 = vpop.f32.mrf.mxu2  ;;  %1046 = vadd.xlane.f32.xlu2 %v1045_v58 }
  0xaf   :  { %v118_v60 = vpop.f32.mrf.mxu0  ;;  %v471_v61 = vpop.f32.mrf.mxu1  ;;  %v4938_v22 = vadd.f32 %v4833_v15, %v528_v59 }
  0xb0   :  { %v4912_v63 = vadd.f32 %v4820_v9, %v118_v60  ;;  %v4915_v0 = vadd.f32 %v4833_v15, %v471_v61 }
  0xb1   :  { %8471 = vst [vmem:[#allocation9_spill] sm:$0xff] %v4938_v22 }
  0xb2   :  { %v4052_v2 = vpop.eup %4051  ;;  %v824_v6 = vadd.f32 %v696_v1, %v4915_v0  ;;  %v712_v7 = vperm.slane %v4912_v63, 0  ;;  %v655_v8 = vrot.slane %v4912_v63, 4  ;;  %v652_v12 = vrot.slane %v4912_v63, 1 }
  0xb3   :  { %v954_v11 = vmul.f32 %v4052_v2, %v4876_v36  ;;  %v653_v13 = vrot.slane %v4912_v63, 2  ;;  %v654_v24 = vrot.slane %v4912_v63, 3  ;;  %v656_v41 = vrot.slane %v4912_v63, 5 }
  0xb4   :  { %4053 = vtanh.f32 %v824_v6  ;;  %v840_v14 = vadd.f32 %v712_v7, %v4920_v3  ;;  %v713_v19 = vperm.slane %v652_v12, 0  ;;  %v716_v27 = vperm.slane %v655_v8, 0 }
  0xb5   :  { %v1048_v17 = vsel %vm52_vm0, %v954_v11, 0.0  ;;  %v714_v20 = vperm.slane %v653_v13, 0  ;;  %v715_v33 = vperm.slane %v654_v24, 0  ;;  %v717_v54 = vperm.slane %v656_v41, 0 }
  0xb6   :  { %v531_v23 = vpop.f32.mrf.mxu2  ;;  %1049 = vadd.xlane.f32.xlu0 %v1048_v17  ;;  %4055 = vtanh.f32 %v840_v14  ;;  %v841_v29 = vadd.f32 %v713_v19, %v4934_v10  ;;  %v698_v1 = vperm.slane %v639_v45, 0  ;;  %v657_v14 = vrot.slane %v4912_v63, 6  ;;  %v4978_v17 = vpop.f32.mrf.mxu3 }
  0xb7   :  { %v4942_v25 = vadd.f32 %v4833_v15, %v531_v23  ;;  %v4944_v28 = vpop.f32.mrf.mxu0  ;;  %v474_v26 = vpop.f32.mrf.mxu1  ;;  %v842_v30 = vadd.f32 %v714_v20, %v4923_v5  ;;  %v843_v40 = vadd.f32 %v715_v33, %v4938_v22  ;;  %v640_v19 = vrot.slane %v4906_v57, 3 }
  0xb8   :  { %4057 = vtanh.f32 %v841_v29  ;;  %v4953_v38 = vadd.f32 %v4833_v15, %v474_v26  ;;  %v718_v29 = vperm.slane %v657_v14, 0 }
  0xb9   :  { %8472 = vst [vmem:[#allocation10_spill] sm:$0xff] %v4942_v25  ;;  %v844_v34 = vadd.f32 %v716_v27, %v4942_v25  ;;  %4059 = vtanh.f32 %v842_v30  ;;  %v699_v41 = vperm.slane %v640_v19, 0  ;;  %v5231_v25 = vadd.f32 %v4833_v15, %v4978_v17 }
  0xba   :  { %v4054_v35 = vpop.eup %4053  ;;  %v825_v50 = vadd.f32 %v697_v44, %v4953_v38 }
  0xbb   :  { %v955_v42 = vmul.f32 %v4054_v35, %v4876_v36  ;;  %4061 = vtanh.f32 %v844_v34  ;;  %8504 = vst [vmem:[#allocation42_spill] sm:$0xff] %v5231_v25 }
  0xbc   :  { %v4056_v43 = vpop.eup %4055  ;;  %4063 = vtanh.f32 %v843_v40 }
  0xbd   :  { %v1051_v46 = vsel %vm52_vm0, %v955_v42, 0.0  ;;  %v971_v49 = vmul.f32 %v4056_v43, %v4876_v36  ;;  %4065 = vtanh.f32 %v825_v50  ;;  %v658_v50 = vrot.slane %v4912_v63, 7 }
  0xbe   :  { %v534_v51 = vpop.f32.mrf.mxu2  ;;  %1052 = vadd.xlane.f32.xlu1 %v1051_v46  ;;  %v4058_v52 = vpop.eup %4057 }
  0xbf   :  { %v4963_v53 = vadd.f32 %v4833_v15, %v534_v51  ;;  %v124_v55 = vpop.f32.mrf.mxu0  ;;  %v477_v56 = vpop.f32.mrf.mxu1  ;;  %v1099_v58 = vsel %vm52_vm0, %v971_v49, 0.0  ;;  %v972_v2 = vmul.f32 %v4058_v52, %v4876_v36  ;;  %v641_v52 = vrot.slane %v4906_v57, 4 }
  0xc0   :  { %v4060_v59 = vpop.eup %4059  ;;  %v4967_v60 = vadd.f32 %v4820_v9, %v124_v55  ;;  %v4970_v61 = vadd.f32 %v4833_v15, %v477_v56  ;;  %1100 = vadd.xlane.f32.xlu2 %v1099_v58  ;;  %v5006_v56 = vpop.f32.mrf.mxu3  ;;  %v719_v63 = vperm.slane %v658_v50, 0 }
  0xc1   :  { %8473 = vst [vmem:[#allocation11_spill] sm:$0xff] %v4963_v53  ;;  %v845_v6 = vadd.f32 %v717_v54, %v4963_v53  ;;  %v973_v7 = vmul.f32 %v4060_v59, %v4876_v36  ;;  %v4062_v8 = vpop.eup %4061  ;;  %v1102_v12 = vsel %vm52_vm0, %v972_v2, 0.0  ;;  %v5003_v54 = vadd.f32 %v4820_v9, %v4803_v4 }
  0xc2   :  { %v826_v11 = vadd.f32 %v698_v1, %v4970_v61  ;;  %v4064_v13 = vpop.eup %4063  ;;  %1103 = vadd.xlane.f32.xlu0 %v1102_v12  ;;  %v975_v27 = vmul.f32 %v4062_v8, %v4876_v36 }
  0xc3   :  { %4067 = vtanh.f32 %v845_v6  ;;  %v974_v20 = vmul.f32 %v4064_v13, %v4876_v36  ;;  %v1105_v23 = vsel %vm52_vm0, %v973_v7, 0.0  ;;  %v4066_v34 = vpop.eup %4065  ;;  %v680_v14 = vperm.slane %v5003_v54, 0 }
  0xc4   :  { %4069 = vtanh.f32 %v826_v11  ;;  %v1111_v45 = vsel %vm52_vm0, %v975_v27, 0.0  ;;  %v956_v51 = vmul.f32 %v4066_v34, %v4876_v36  ;;  %v700_v11 = vperm.slane %v641_v52, 0 }
  0xc5   :  { %v1108_v33 = vsel %vm52_vm0, %v974_v20, 0.0 }
  0xc6   :  { %v537_v24 = vpop.f32.mrf.mxu2  ;;  %1106 = vadd.xlane.f32.xlu1 %v1105_v23  ;;  %v1054_v7 = vsel %vm52_vm0, %v956_v51, 0.0 }
  0xc7   :  { %v4985_v26 = vadd.f32 %v4833_v15, %v537_v24  ;;  %v127_v30 = vpop.f32.mrf.mxu0  ;;  %v480_v31 = vpop.f32.mrf.mxu1  ;;  %v5025_v24 = vadd.f32 %v4820_v9, %v4944_v28 }
  0xc8   :  { %v4989_v35 = vadd.f32 %v4820_v9, %v127_v30  ;;  %v4992_v40 = vadd.f32 %v4833_v15, %v480_v31  ;;  %1109 = vadd.xlane.f32.xlu2 %v1108_v33  ;;  %v624_v31 = vrot.slane %v5003_v54, 1 }
  0xc9   :  { %8474 = vst [vmem:[#allocation12_spill] sm:$0xff] %v4985_v26  ;;  %v4068_v42 = vpop.eup %4067  ;;  %v846_v43 = vadd.f32 %v718_v29, %v4985_v26  ;;  %v720_v9 = vperm.slane %v5025_v24, 0  ;;  %v659_v52 = vrot.slane %v5025_v24, 1  ;;  %v662_v53 = vrot.slane %v5025_v24, 4 }
  0xca   :  { %8475 = vst [vmem:[#allocation13_spill] sm:$0xff] %v4992_v40  ;;  %v827_v44 = vadd.f32 %v699_v41, %v4992_v40  ;;  %v976_v46 = vmul.f32 %v4068_v42, %v4876_v36  ;;  %v4070_v49 = vpop.eup %4069  ;;  %1112 = vadd.xlane.f32.xlu0 %v1111_v45  ;;  %v681_v50 = vperm.slane %v624_v31, 0 }
  0xcb   :  { %4071 = vtanh.f32 %v846_v43  ;;  %v957_v59 = vmul.f32 %v4070_v49, %v4876_v36 }
  0xcc   :  { %4073 = vtanh.f32 %v827_v44  ;;  %v1114_v55 = vsel %vm52_vm0, %v976_v46, 0.0  ;;  %v5037_v44 = vpop.f32.mrf.mxu3 }
  0xcd   :  { %v1057_v20 = vsel %vm52_vm0, %v957_v59, 0.0 }
  0xce   :  { %v540_v58 = vpop.f32.mrf.mxu2  ;;  %1115 = vadd.xlane.f32.xlu1 %v1114_v55 }
  0xcf   :  { %v5010_v1 = vadd.f32 %v4833_v15, %v540_v58  ;;  %v423_v2 = vpop.f32.mrf.mxu0  ;;  %v483_v6 = vpop.f32.mrf.mxu1 }
  0xd0   :  { %v5014_v4 = vadd.f32 %v4833_v15, %v423_v2  ;;  %v5017_v8 = vadd.f32 %v4833_v15, %v483_v6  ;;  %1055 = vadd.xlane.f32.xlu2 %v1054_v7  ;;  %v642_v6 = vrot.slane %v4906_v57, 5 }
  0xd1   :  { %8476 = vst [vmem:[#allocation14_spill] sm:$0xff] %v5010_v1  ;;  %v4072_v12 = vpop.eup %4071  ;;  %v847_v13 = vadd.f32 %v719_v63, %v5010_v1  ;;  %v625_v63 = vrot.slane %v5003_v54, 2 }
  0xd2   :  { %8477 = vst [vmem:[#allocation15_spill] sm:$0xff] %v5014_v4  ;;  %v828_v19 = vadd.f32 %v700_v11, %v5017_v8  ;;  %v4074_v23 = vpop.eup %4073  ;;  %v808_v27 = vadd.f32 %v680_v14, %v5014_v4  ;;  %1058 = vadd.xlane.f32.xlu0 %v1057_v20  ;;  %v977_v29 = vmul.f32 %v4072_v12, %v4876_v36  ;;  %v721_v12 = vperm.slane %v659_v52, 0 }
  0xd3   :  { %8478 = vst [vmem:[#allocation16_spill] sm:$0xff] %v5017_v8  ;;  %4075 = vtanh.f32 %v847_v13  ;;  %v958_v30 = vmul.f32 %v4074_v23, %v4876_v36  ;;  %v643_v13 = vrot.slane %v4906_v57, 6 }
  0xd4   :  { %4077 = vtanh.f32 %v828_v19  ;;  %v1117_v43 = vsel %vm52_vm0, %v977_v29, 0.0 }
  0xd5   :  { %v1060_v34 = vsel %vm52_vm0, %v958_v30, 0.0  ;;  %4079 = vtanh.f32 %v808_v27  ;;  %v682_v30 = vperm.slane %v625_v63, 0  ;;  %v660_v63 = vrot.slane %v5025_v24, 2 }
  0xd6   :  { %v543_v33 = vpop.f32.mrf.mxu2  ;;  %1061 = vadd.xlane.f32.xlu1 %v1060_v34  ;;  %v701_v34 = vperm.slane %v642_v6, 0 }
  0xd7   :  { %v5033_v41 = vadd.f32 %v4833_v15, %v543_v33  ;;  %v426_v28 = vpop.f32.mrf.mxu0  ;;  %v486_v42 = vpop.f32.mrf.mxu1 }
  0xd8   :  { %v5040_v45 = vadd.f32 %v4833_v15, %v426_v28  ;;  %1118 = vadd.xlane.f32.xlu2 %v1117_v43  ;;  %v5052_v14 = vadd.f32 %v4833_v15, %v486_v42  ;;  %v5066_v42 = vpop.f32.mrf.mxu3 }
  0xd9   :  { %v4076_v46 = vpop.eup %4075  ;;  %v848_v49 = vadd.f32 %v720_v9, %v5033_v41 }
  0xda   :  { %8479 = vst [vmem:[#allocation17_spill] sm:$0xff] %v5040_v45  ;;  %v978_v51 = vmul.f32 %v4076_v46, %v4876_v36  ;;  %v809_v55 = vadd.f32 %v681_v50, %v5040_v45  ;;  %v4078_v58 = vpop.eup %4077  ;;  %v702_v50 = vperm.slane %v643_v13, 0 }
  0xdb   :  { %4081 = vtanh.f32 %v848_v49  ;;  %v4080_v2 = vpop.eup %4079  ;;  %v959_v7 = vmul.f32 %v4078_v58, %v4876_v36  ;;  %8480 = vst [vmem:[#allocation18_spill] sm:$0xff] %v5052_v14  ;;  %v829_v49 = vadd.f32 %v701_v34, %v5052_v14 }
  0xdc   :  { %v1120_v59 = vsel %vm52_vm0, %v978_v51, 0.0  ;;  %4083 = vtanh.f32 %v809_v55  ;;  %v939_v31 = vmul.f32 %v4080_v2, %v4876_v36  ;;  %v644_v55 = vrot.slane %v4906_v57, 7 }
  0xdd   :  { %1121 = vadd.xlane.f32.xlu0 %v1120_v59  ;;  %v1063_v27 = vsel %vm52_vm0, %v959_v7, 0.0 }
  0xde   :  { %v546_v11 = vpop.f32.mrf.mxu2  ;;  %v1003_v52 = vsel %vm52_vm0, %v939_v31, 0.0  ;;  %v703_v57 = vperm.slane %v644_v55, 0 }
  0xdf   :  { %v5055_v19 = vadd.f32 %v4833_v15, %v546_v11  ;;  %v429_v20 = vpop.f32.mrf.mxu0  ;;  %v489_v23 = vpop.f32.mrf.mxu1  ;;  %v626_v11 = vrot.slane %v5003_v54, 3 }
  0xe0   :  { %v5059_v29 = vadd.f32 %v4833_v15, %v429_v20  ;;  %1064 = vadd.xlane.f32.xlu2 %v1063_v27  ;;  %v5064_v28 = vadd.f32 %v4833_v15, %v489_v23  ;;  %v722_v27 = vperm.slane %v660_v63, 0 }
  0xe1   :  { %8481 = vst [vmem:[#allocation19_spill] sm:$0xff] %v5055_v19  ;;  %v4082_v33 = vpop.eup %4081  ;;  %v849_v9 = vadd.f32 %v721_v12, %v5055_v19 }
  0xe2   :  { %8482 = vst [vmem:[#allocation20_spill] sm:$0xff] %v5059_v29  ;;  %v810_v43 = vadd.f32 %v682_v30, %v5059_v29  ;;  %v979_v46 = vmul.f32 %v4082_v33, %v4876_v36  ;;  %v4084_v58 = vpop.eup %4083  ;;  %v830_v59 = vadd.f32 %v702_v50, %v5064_v28 }
  0xe3   :  { %8483 = vst [vmem:[#allocation21_spill] sm:$0xff] %v5064_v28  ;;  %4085 = vtanh.f32 %v849_v9  ;;  %v940_v20 = vmul.f32 %v4084_v58, %v4876_v36 }
  0xe4   :  { %v1123_v51 = vsel %vm52_vm0, %v979_v46, 0.0  ;;  %4087 = vtanh.f32 %v810_v43  ;;  %v683_v43 = vperm.slane %v626_v11, 0  ;;  %v5090_v46 = vpop.f32.mrf.mxu3 }
  0xe5   :  { %1124 = vadd.xlane.f32.xlu1 %v1123_v51  ;;  %1004 = vadd.xlane.f32.xlu0 %v1003_v52  ;;  %4089 = vtanh.f32 %v829_v49  ;;  %v1006_v50 = vsel %vm52_vm0, %v940_v20, 0.0  ;;  %v627_v52 = vrot.slane %v5003_v54, 4 }
  0xe6   :  { %v549_v2 = vpop.f32.mrf.mxu2  ;;  %4091 = vtanh.f32 %v830_v59 }
  0xe7   :  { %v5077_v6 = vadd.f32 %v4833_v15, %v549_v2  ;;  %v432_v7 = vpop.f32.mrf.mxu0  ;;  %v492_v12 = vpop.f32.mrf.mxu1  ;;  %v684_v20 = vperm.slane %v627_v52, 0  ;;  %v628_v52 = vrot.slane %v5003_v54, 5 }
  0xe8   :  { %v5081_v13 = vadd.f32 %v4833_v15, %v492_v12  ;;  %v5085_v30 = vadd.f32 %v4833_v15, %v432_v7  ;;  %v661_v7 = vrot.slane %v5025_v24, 3 }
  0xe9   :  { %8484 = vst [vmem:[#allocation22_spill] sm:$0xff] %v5077_v6  ;;  %v4086_v23 = vpop.eup %4085  ;;  %v850_v9 = vadd.f32 %v722_v27, %v5077_v6 }
  0xea   :  { %8485 = vst [vmem:[#allocation23_spill] sm:$0xff] %v5081_v13  ;;  %v831_v31 = vadd.f32 %v703_v57, %v5081_v13  ;;  %v980_v33 = vmul.f32 %v4086_v23, %v4876_v36  ;;  %v4088_v34 = vpop.eup %4087  ;;  %v811_v58 = vadd.f32 %v683_v43, %v5085_v30  ;;  %v723_v43 = vperm.slane %v661_v7, 0 }
  0xeb   :  { %8486 = vst [vmem:[#allocation24_spill] sm:$0xff] %v5085_v30  ;;  %v941_v51 = vmul.f32 %v4088_v34, %v4876_v36  ;;  %v4090_v55 = vpop.eup %4089 }
  0xec   :  { %v1126_v49 = vsel %vm52_vm0, %v980_v33, 0.0  ;;  %4093 = vtanh.f32 %v831_v31  ;;  %v4092_v2 = vpop.eup %4091  ;;  %v960_v27 = vmul.f32 %v4090_v55, %v4876_v36  ;;  %v704_v33 = vperm.slane %v4889_v47, 0 }
  0xed   :  { %1127 = vadd.xlane.f32.xlu2 %v1126_v49  ;;  %1007 = vadd.xlane.f32.xlu0 %v1006_v50  ;;  %v1009_v63 = vsel %vm52_vm0, %v941_v51, 0.0  ;;  %4095 = vtanh.f32 %v850_v9  ;;  %v961_v9 = vmul.f32 %v4092_v2, %v4876_v36 }
  0xee   :  { %v552_v59 = vpop.f32.mrf.mxu2  ;;  %1010 = vadd.xlane.f32.xlu1 %v1009_v63  ;;  %4097 = vtanh.f32 %v811_v58  ;;  %v1066_v51 = vsel %vm52_vm0, %v960_v27, 0.0  ;;  %v645_v27 = vrot.slane %v4889_v47, 1 }
  0xef   :  { %v435_v11 = vpop.f32.mrf.mxu0  ;;  %v495_v12 = vpop.f32.mrf.mxu1  ;;  %v5107_v31 = vadd.f32 %v4833_v15, %v552_v59 }
  0xf0   :  { %v5100_v57 = vadd.f32 %v4833_v15, %v435_v11  ;;  %v5103_v23 = vadd.f32 %v4833_v15, %v495_v12  ;;  %v5117_v59 = vpop.f32.mrf.mxu3  ;;  %v1069_v11 = vsel %vm52_vm0, %v961_v9, 0.0 }
  0xf1   :  { %8489 = vst [vmem:[#allocation27_spill] sm:$0xff] %v5107_v31  ;;  %v851_v55 = vadd.f32 %v723_v43, %v5107_v31 }
  0xf2   :  { %8487 = vst [vmem:[#allocation25_spill] sm:$0xff] %v5100_v57  ;;  %v812_v34 = vadd.f32 %v684_v20, %v5100_v57  ;;  %v832_v49 = vadd.f32 %v704_v33, %v5103_v23  ;;  %v4094_v50 = vpop.eup %4093 }
  0xf3   :  { %8488 = vst [vmem:[#allocation26_spill] sm:$0xff] %v5103_v23  ;;  %v4096_v63 = vpop.eup %4095  ;;  %v962_v58 = vmul.f32 %v4094_v50, %v4876_v36 }
  0xf4   :  { %4099 = vtanh.f32 %v812_v34  ;;  %v4098_v2 = vpop.eup %4097  ;;  %v685_v34 = vperm.slane %v628_v52, 0  ;;  %v981_v43 = vmul.f32 %v4096_v63, %v4876_v36  ;;  %v646_v52 = vrot.slane %v4889_v47, 2 }
  0xf5   :  { %1067 = vadd.xlane.f32.xlu0 %v1066_v51  ;;  %4101 = vtanh.f32 %v832_v49  ;;  %v1072_v7 = vsel %vm52_vm0, %v962_v58, 0.0  ;;  %v942_v49 = vmul.f32 %v4098_v2, %v4876_v36  ;;  %v705_v58 = vperm.slane %v645_v27, 0 }
  0xf6   :  { %1070 = vadd.xlane.f32.xlu1 %v1069_v11  ;;  %1073 = vadd.xlane.f32.xlu2 %v1072_v7  ;;  %4103 = vtanh.f32 %v851_v55  ;;  %v629_v11 = vrot.slane %v5003_v54, 6  ;;  %v1129_v7 = vsel %vm52_vm0, %v981_v43, 0.0 }
  0xf7   :  { %v438_v12 = vpop.f32.mrf.mxu0  ;;  %v498_v20 = vpop.f32.mrf.mxu1 }
  0xf8   :  { %v5123_v33 = vadd.f32 %v4833_v15, %v438_v12  ;;  %v5127_v50 = vadd.f32 %v4833_v15, %v498_v20  ;;  %v686_v31 = vperm.slane %v629_v11, 0 }
  0xfa   :  { %8490 = vst [vmem:[#allocation28_spill] sm:$0xff] %v5123_v33  ;;  %v813_v9 = vadd.f32 %v685_v34, %v5123_v33  ;;  %v4100_v51 = vpop.eup %4099  ;;  %v833_v55 = vadd.f32 %v705_v58, %v5127_v50  ;;  %v1012_v34 = vsel %vm52_vm0, %v942_v49, 0.0  ;;  %v706_v58 = vperm.slane %v646_v52, 0 }
  0xfb   :  { %8491 = vst [vmem:[#allocation29_spill] sm:$0xff] %v5127_v50  ;;  %v943_v12 = vmul.f32 %v4100_v51, %v4876_v36  ;;  %v4102_v63 = vpop.eup %4101  ;;  %v724_v33 = vperm.slane %v662_v53, 0 }
  0xfc   :  { %4105 = vtanh.f32 %v813_v9  ;;  %v4104_v2 = vpop.eup %4103  ;;  %v5138_v9 = vpop.f32.mrf.mxu3 }
  0xfd   :  { %1130 = vadd.xlane.f32.xlu0 %v1129_v7  ;;  %v1015_v20 = vsel %vm52_vm0, %v943_v12, 0.0  ;;  %v963_v7 = vmul.f32 %v4102_v63, %v4876_v36  ;;  %4107 = vtanh.f32 %v833_v55  ;;  %v982_v11 = vmul.f32 %v4104_v2, %v4876_v36 }
  0xfe   :  { %1013 = vadd.xlane.f32.xlu1 %v1012_v34  ;;  %1016 = vadd.xlane.f32.xlu2 %v1015_v20 }
  0xff   :  { %v441_v27 = vpop.f32.mrf.mxu0  ;;  %v501_v48 = vpop.f32.mrf.mxu1  ;;  %v1075_v20 = vsel %vm52_vm0, %v963_v7, 0.0  ;;  %v1132_v63 = vsel %vm52_vm0, %v982_v11, 0.0 }
 0x100   :  { %v5141_v43 = vadd.f32 %v4833_v15, %v441_v27  ;;  %v5144_v51 = vadd.f32 %v4833_v15, %v501_v48  ;;  %v630_v27 = vrot.slane %v5003_v54, 7  ;;  %v647_v48 = vrot.slane %v4889_v47, 3 }
 0x102   :  { %8492 = vst [vmem:[#allocation30_spill] sm:$0xff] %v5141_v43  ;;  %v4106_v12 = vpop.eup %4105  ;;  %v814_v49 = vadd.f32 %v686_v31, %v5141_v43  ;;  %v834_v34 = vadd.f32 %v706_v58, %v5144_v51  ;;  %v707_v54 = vperm.slane %v647_v48, 0 }
 0x103   :  { %8493 = vst [vmem:[#allocation31_spill] sm:$0xff] %v5144_v51  ;;  %v944_v32 = vmul.f32 %v4106_v12, %v4876_v36  ;;  %v4108_v31 = vpop.eup %4107  ;;  %v687_v12 = vperm.slane %v630_v27, 0  ;;  %v648_v27 = vrot.slane %v4889_v47, 4 }
 0x104   :  { %4109 = vtanh.f32 %v814_v49 }
 0x105   :  { %4111 = vtanh.f32 %v834_v34  ;;  %1076 = vadd.xlane.f32.xlu0 %v1075_v20  ;;  %v1018_v52 = vsel %vm52_vm0, %v944_v32, 0.0  ;;  %v5162_v34 = vpop.f32.mrf.mxu3  ;;  %v964_v20 = vmul.f32 %v4108_v31, %v4876_v36 }
 0x106   :  { %1133 = vadd.xlane.f32.xlu1 %v1132_v63  ;;  %1019 = vadd.xlane.f32.xlu2 %v1018_v52 }
 0x107   :  { %v444_v55 = vpop.f32.mrf.mxu0  ;;  %v504_v58 = vpop.f32.mrf.mxu1  ;;  %v1078_v18 = vsel %vm52_vm0, %v964_v20, 0.0 }
 0x108   :  { %v5157_v2 = vadd.f32 %v4833_v15, %v444_v55  ;;  %v5160_v7 = vadd.f32 %v4833_v15, %v504_v58 }
 0x10a   :  { %8494 = vst [vmem:[#allocation32_spill] sm:$0xff] %v5157_v2  ;;  %v4110_v49 = vpop.eup %4109  ;;  %v815_v32 = vadd.f32 %v687_v12, %v5157_v2  ;;  %v835_v11 = vadd.f32 %v707_v54, %v5160_v7 }
 0x10b   :  { %8495 = vst [vmem:[#allocation33_spill] sm:$0xff] %v5160_v7  ;;  %v4112_v63 = vpop.eup %4111  ;;  %v945_v52 = vmul.f32 %v4110_v49, %v4876_v36  ;;  %v688_v49 = vperm.slane %v4836_v16, 0  ;;  %v649_v7 = vrot.slane %v4889_v47, 5 }
 0x10c   :  { %4113 = vtanh.f32 %v815_v32  ;;  %v965_v55 = vmul.f32 %v4112_v63, %v4876_v36 }
 0x10d   :  { %4115 = vtanh.f32 %v835_v11  ;;  %v1021_v48 = vsel %vm52_vm0, %v945_v52, 0.0  ;;  %v708_v11 = vperm.slane %v648_v27, 0 }
 0x10e   :  { %v1081_v58 = vsel %vm52_vm0, %v965_v55, 0.0  ;;  %1022 = vadd.xlane.f32.xlu0 %v1021_v48  ;;  %1079 = vadd.xlane.f32.xlu1 %v1078_v18  ;;  %v5183_v48 = vpop.f32.mrf.mxu3 }
 0x10f   :  { %v447_v12 = vpop.f32.mrf.mxu0  ;;  %v507_v54 = vpop.f32.mrf.mxu1  ;;  %1082 = vadd.xlane.f32.xlu2 %v1081_v58 }
 0x110   :  { %v5174_v31 = vadd.f32 %v4833_v15, %v447_v12  ;;  %v5178_v32 = vadd.f32 %v4833_v15, %v507_v54  ;;  %v631_v12 = vrot.slane %v4836_v16, 1 }
 0x112   :  { %8496 = vst [vmem:[#allocation34_spill] sm:$0xff] %v5174_v31  ;;  %v4114_v63 = vpop.eup %4113  ;;  %v816_v52 = vadd.f32 %v688_v49, %v5174_v31  ;;  %v836_v55 = vadd.f32 %v708_v11, %v5178_v32 }
 0x113   :  { %8497 = vst [vmem:[#allocation35_spill] sm:$0xff] %v5178_v32  ;;  %v4116_v20 = vpop.eup %4115  ;;  %v946_v18 = vmul.f32 %v4114_v63, %v4876_v36  ;;  %v689_v32 = vperm.slane %v631_v12, 0 }
 0x114   :  { %4117 = vtanh.f32 %v816_v52  ;;  %v966_v58 = vmul.f32 %v4116_v20, %v4876_v36  ;;  %v709_v20 = vperm.slane %v649_v7, 0 }
 0x115   :  { %4119 = vtanh.f32 %v836_v55  ;;  %v1024_v27 = vsel %vm52_vm0, %v946_v18, 0.0  ;;  %v664_v18 = vrot.slane %v5025_v24, 6 }
 0x116   :  { %v1084_v54 = vsel %vm52_vm0, %v966_v58, 0.0  ;;  %1025 = vadd.xlane.f32.xlu1 %v1024_v27 }
 0x117   :  { %1085 = vadd.xlane.f32.xlu0 %v1084_v54  ;;  %v450_v49 = vpop.f32.mrf.mxu0  ;;  %v510_v11 = vpop.f32.mrf.mxu1  ;;  %v632_v54 = vrot.slane %v4836_v16, 2 }
 0x118   :  { %v5191_v63 = vadd.f32 %v4833_v15, %v450_v49  ;;  %v5194_v52 = vadd.f32 %v4833_v15, %v510_v11  ;;  %v633_v49 = vrot.slane %v4836_v16, 3  ;;  %v663_v11 = vrot.slane %v5025_v24, 5 }
 0x119   :  { %v690_v26 = vperm.slane %v632_v54, 0 }
 0x11a   :  { %8498 = vst [vmem:[#allocation36_spill] sm:$0xff] %v5191_v63  ;;  %v4118_v21 = vpop.eup %4117  ;;  %v817_v1 = vadd.f32 %v689_v32, %v5191_v63  ;;  %v837_v55 = vadd.f32 %v709_v20, %v5194_v52  ;;  %v650_v32 = vrot.slane %v4889_v47, 6  ;;  %v651_v20 = vrot.slane %v4889_v47, 7 }
 0x11b   :  { %8499 = vst [vmem:[#allocation37_spill] sm:$0xff] %v5194_v52  ;;  %v4120_v58 = vpop.eup %4119  ;;  %v947_v27 = vmul.f32 %v4118_v21, %v4876_v36  ;;  %v5209_v52 = vadd.f32 %v4833_v15, %v4950_v37  ;;  %v5211_v21 = vpop.f32.mrf.mxu3  ;;  %v691_v47 = vperm.slane %v633_v49, 0  ;;  %v5223_v37 = vadd.f32 %v4833_v15, %v4909_v62 }
 0x11c   :  { %4121 = vtanh.f32 %v817_v1  ;;  %v967_v12 = vmul.f32 %v4120_v58, %v4876_v36  ;;  %v726_v1 = vperm.slane %v664_v18, 0  ;;  %v5216_v58 = vadd.f32 %v4833_v15, %v4879_v39 }
 0x11d   :  { %4123 = vtanh.f32 %v837_v55  ;;  %v1027_v7 = vsel %vm52_vm0, %v947_v27, 0.0  ;;  %8500 = vst [vmem:[#allocation38_spill] sm:$0xff] %v5209_v52  ;;  %v5218_v55 = vpop.xlane.xlu0 %1040  ;;  %v725_v39 = vperm.slane %v663_v11, 0  ;;  %v710_v49 = vperm.slane %v650_v32, 0 }
 0x11e   :  { %1028 = vadd.xlane.f32.xlu2 %v1027_v7  ;;  %v1087_v16 = vsel %vm52_vm0, %v967_v12, 0.0  ;;  %8501 = vst [vmem:[#allocation39_spill] sm:$0xff] %v5216_v58  ;;  %v1267_v7 = vrot.slane %v5218_v55, 4  ;;  %v5240_v62 = vadd.f32 %v4833_v15, %v5006_v56  ;;  %v854_v11 = vadd.f32 %v726_v1, %v5209_v52 }
 0x11f   :  { %1088 = vadd.xlane.f32.xlu1 %v1087_v16  ;;  %v453_v27 = vpop.f32.mrf.mxu0  ;;  %8502 = vst [vmem:[#allocation40_spill] sm:$0xff] %v5223_v37  ;;  %v513_v12 = vpop.f32.mrf.mxu1  ;;  %v5236_v16 = vperm.slane %v651_v20, 0  ;;  %v666_v32 = vrot.slane %v4967_v60, 1  ;;  %v853_v56 = vadd.f32 %v725_v39, %v5223_v37  ;;  %v852_v52 = vadd.f32 %v724_v33, %v5216_v58 }
 0x120   :  { %v5227_v18 = vadd.f32 %v4833_v15, %v453_v27  ;;  %v5234_v54 = vadd.f32 %v4833_v15, %v513_v12  ;;  %8506 = vst [vmem:[#allocation44_spill] sm:$0xff] %v5240_v62  ;;  %v1268_v27 = vmax.f32 %v5218_v55, %v1267_v7  ;;  %v667_v7 = vrot.slane %v4967_v60, 2 }
 0x121   :  { %v5273_v33 = vadd.f32 %v4833_v15, %v5066_v42 }
 0x122   :  { %8503 = vst [vmem:[#allocation41_spill] sm:$0xff] %v5227_v18  ;;  %v4122_v22 = vpop.eup %4121  ;;  %v818_v2 = vadd.f32 %v690_v26, %v5227_v18  ;;  %v838_v17 = vadd.f32 %v710_v49, %v5234_v54  ;;  %v1269_v20 = vrot.slane %v1268_v27, 2  ;;  %v668_v26 = vrot.slane %v4967_v60, 3 }
 0x123   :  { %8505 = vst [vmem:[#allocation43_spill] sm:$0xff] %v5234_v54  ;;  %v4124_v43 = vpop.eup %4123  ;;  %v948_v12 = vmul.f32 %v4122_v22, %v4876_v36  ;;  %v5255_v49 = vadd.f32 %v4833_v15, %v5037_v44  ;;  %v669_v22 = vrot.slane %v4967_v60, 4  ;;  %v5262_v37 = vpop.f32.mrf.mxu3 }
 0x124   :  { %4125 = vtanh.f32 %v818_v2  ;;  %v968_v57 = vmul.f32 %v4124_v43, %v4876_v36  ;;  %v1270_v53 = vmax.f32 %v1268_v27, %v1269_v20  ;;  %v670_v43 = vrot.slane %v4967_v60, 5  ;;  %v5267_v20 = vpop.xlane.xlu1 %1043  ;;  %8509 = vst [vmem:[#allocation47_spill] sm:$0xff] %v5273_v33 }
 0x125   :  { %4127 = vtanh.f32 %v838_v17  ;;  %v1030_v1 = vsel %vm52_vm0, %v948_v12, 0.0  ;;  %8507 = vst [vmem:[#allocation45_spill] sm:$0xff] %v5255_v49  ;;  %v729_v17 = vperm.slane %v666_v32, 0  ;;  %v671_v12 = vrot.slane %v4967_v60, 6 }
 0x126   :  { %v1090_v2 = vsel %vm52_vm0, %v968_v57, 0.0  ;;  %1031 = vadd.xlane.f32.xlu0 %v1030_v1  ;;  %4129 = vtanh.f32 %v854_v11  ;;  %v1271_v44 = vrot.slane %v1270_v53, 1  ;;  %v730_v27 = vperm.slane %v667_v7, 0  ;;  %v5279_v7 = vpop.xlane.xlu2 %1046 }
 0x127   :  { %1091 = vadd.xlane.f32.xlu2 %v1090_v2  ;;  %v456_v39 = vpop.f32.mrf.mxu0  ;;  %4131 = vtanh.f32 %v853_v56  ;;  %v731_v57 = vperm.slane %v668_v26, 0  ;;  %v728_v1 = vperm.slane %v4967_v60, 0  ;;  %v665_v11 = vrot.slane %v5025_v24, 7 }
 0x128   :  { %v5265_v54 = vadd.f32 %v4833_v15, %v456_v39  ;;  %v672_v32 = vrot.slane %v4967_v60, 7  ;;  %v1272_v58 = vmax.f32 %v1270_v53, %v1271_v44  ;;  %v5277_v56 = vperm.slane %v669_v22, 0  ;;  %v516_v60 = vpop.f32.mrf.mxu1 }
 0x129   :  { %4133 = vtanh.f32 %v852_v52  ;;  %v857_v24 = vadd.f32 %v729_v17, %v5255_v49  ;;  %v5283_v30 = vperm.slane %v670_v43, 0  ;;  %v5285_v63 = vperm.slane %v671_v12, 0 }
 0x12a   :  { %8508 = vst [vmem:[#allocation46_spill] sm:$0xff] %v5265_v54  ;;  %v4126_v2 = vpop.eup %4125  ;;  %v819_v39 = vadd.f32 %v691_v47, %v5265_v54  ;;  %v1591_v15 = vsub.f32 %v5218_v55, %v1272_v58  ;;  %v856_v53 = vadd.f32 %v728_v1, %v5240_v62  ;;  %v727_v44 = vperm.slane %v665_v11, 0  ;;  %v5296_v58 = vpop.xlane.xlu0 %1049 }
 0x12b   :  { %v4128_v18 = vpop.eup %4127  ;;  %v949_v26 = vmul.f32 %v4126_v2, %v4876_v36  ;;  %v858_v52 = vadd.f32 %v730_v27, %v5273_v33  ;;  %v5292_v17 = vperm.slane %v672_v32, 0  ;;  %v1273_v12 = vrot.slane %v5267_v20, 4 }
 0x12c   :  { %4135 = vtanh.f32 %v819_v39  ;;  %v4130_v42 = vpop.eup %4129  ;;  %v969_v22 = vmul.f32 %v4128_v18, %v4876_v36  ;;  %v1667_v55 = vmul.f32 1.442695, %v1591_v15  ;;  %v5301_v18 = vld [vmem:[%s8339_s6] ss:$0 sm:$0xff]  ;;  %v673_v32 = vrot.slane %v4989_v35, 1 }
 0x12d   :  { %v1033_v47 = vsel %vm52_vm0, %v949_v26, 0.0  ;;  %v4132_v2 = vpop.eup %4131  ;;  %v5304_v1 = vadd.f32 %v5301_v18, %v516_v60  ;;  %4137 = vtanh.f32 %v857_v24  ;;  %v5309_v11 = vadd.f32 %v5301_v18, %v5090_v46  ;;  %v5319_v46 = vpop.f32.mrf.mxu3 }
 0x12e   :  { %1034 = vadd.xlane.f32.xlu1 %v1033_v47  ;;  %v1093_v27 = vsel %vm52_vm0, %v969_v22, 0.0  ;;  %v674_v39 = vrot.slane %v4989_v35, 2  ;;  %v1279_v26 = vrot.slane %v5279_v7, 4  ;;  %v985_v60 = vmul.f32 %v4130_v42, %v4876_v36 }
 0x12f   :  { %8510 = vst [vmem:[#allocation48_spill] sm:$0xff] %v5304_v1  ;;  %1094 = vadd.xlane.f32.xlu0 %v1093_v27  ;;  %v4134_v15 = vpop.eup %4133  ;;  %v984_v43 = vmul.f32 %v4132_v2, %v4876_v36  ;;  %4139 = vtanh.f32 %v856_v53  ;;  %v855_v24 = vadd.f32 %v727_v44, %v5231_v25  ;;  %v1274_v33 = vmax.f32 %v5267_v20, %v1273_v12  ;;  %v5332_v53 = vld [vmem:[%s8340_s7] ss:$0 sm:$0xff] }
 0x130   :  { %8511 = vst [vmem:[#allocation49_spill] sm:$0xff] %v5309_v11  ;;  %4141 = vtanh.f32 %v858_v52  ;;  %v839_v62 = vadd.f32 %v5236_v16, %v5304_v1  ;;  %v1285_v42 = vrot.slane %v5296_v58, 4  ;;  %v859_v2 = vadd.f32 %v731_v57, %v5309_v11 }
 0x131   :  { %v5314_v47 = vpop.xlane.xlu1 %1052  ;;  %4143 = vpow2.f32 %v1667_v55  ;;  %v1280_v52 = vmax.f32 %v5279_v7, %v1279_v26  ;;  %v1141_v25 = vsel %vm52_vm0, %v985_v60, 0.0  ;;  %v1138_v1 = vsel %vm52_vm0, %v984_v43, 0.0 }
 0x132   :  { %v4136_v22 = vpop.eup %4135  ;;  %v1291_v27 = vrot.slane %v5314_v47, 4  ;;  %4145 = vtanh.f32 %v855_v24  ;;  %v5344_v49 = vadd.f32 %v5301_v18, %v5117_v59  ;;  %v1286_v60 = vmax.f32 %v5296_v58, %v1285_v42 }
 0x133   :  { %v5327_v36 = vpop.xlane.xlu2 %1100  ;;  %v950_v44 = vmul.f32 %v5332_v53, %v4136_v22  ;;  %v4138_v16 = vpop.eup %4137  ;;  %4147 = vtanh.f32 %v839_v62  ;;  %v1281_v13 = vrot.slane %v1280_v52, 2 }
 0x134   :  { %v1292_v12 = vmax.f32 %v5314_v47, %v1291_v27  ;;  %v1387_v55 = vrot.slane %v5327_v36, 4  ;;  %8512 = vst [vmem:[#allocation50_spill] sm:$0xff] %v5344_v49  ;;  %v983_v27 = vmul.f32 %v5332_v53, %v4134_v15  ;;  %4149 = vtanh.f32 %v859_v2 }
 0x135   :  { %v1036_v54 = vsel %vm52_vm0, %v950_v44, 0.0  ;;  %v5347_v26 = vpop.xlane.xlu0 %1103  ;;  %v4140_v11 = vpop.eup %4139  ;;  %v1275_v44 = vrot.slane %v1274_v33, 2  ;;  %v860_v15 = vadd.f32 %v5277_v56, %v5344_v49  ;;  %v1287_v40 = vrot.slane %v1286_v60, 2 }
 0x136   :  { %v1293_v22 = vrot.slane %v1292_v12, 2  ;;  %v1388_v57 = vmax.f32 %v5327_v36, %v1387_v55  ;;  %1037 = vadd.xlane.f32.xlu2 %v1036_v54  ;;  %1142 = vadd.xlane.f32.xlu1 %v1141_v25  ;;  %v1393_v43 = vrot.slane %v5347_v26, 4  ;;  %v4142_v24 = vpop.eup %4141  ;;  %v988_v55 = vmul.f32 %v5332_v53, %v4138_v16  ;;  %v5366_v31 = vpop.f32.mrf.mxu3 }
 0x137   :  { %1139 = vadd.xlane.f32.xlu0 %v1138_v1  ;;  %v5353_v14 = vpop.eup %4143  ;;  %v5357_v25 = vadd.f32 %v5301_v18, %v5162_v34  ;;  %v737_v54 = vperm.slane %v673_v32, 0  ;;  %v1276_v2 = vmax.f32 %v1274_v33, %v1275_v44  ;;  %v1282_v32 = vmax.f32 %v1280_v52, %v1281_v13 }
 0x138   :  { %v1294_v59 = vmax.f32 %v1292_v12, %v1293_v22  ;;  %v1389_v28 = vrot.slane %v1388_v57, 2  ;;  %v1394_v62 = vmax.f32 %v5347_v26, %v1393_v43  ;;  %v987_v12 = vmul.f32 %v5332_v53, %v4140_v11  ;;  %v4146_v1 = vpop.eup %4145 }
 0x139   :  { %8513 = vst [vmem:[#allocation51_spill] sm:$0xff] %v5357_v25  ;;  %v5363_v22 = vperm.slane %v674_v39, 0  ;;  %v1843_v34 = vrot.slane %v5353_v14, 4  ;;  %v5369_v43 = vpop.xlane.xlu1 %1106  ;;  %v1135_v56 = vsel %vm52_vm0, %v983_v27, 0.0  ;;  %v862_v11 = vadd.f32 %v5285_v63, %v5357_v25 }
 0x13a   :  { %v1295_v42 = vrot.slane %v1294_v59, 1  ;;  %v1390_v8 = vmax.f32 %v1388_v57, %v1389_v28  ;;  %v1150_v28 = vsel %vm52_vm0, %v988_v55, 0.0  ;;  %v4148_v57 = vpop.eup %4147  ;;  %v1395_v16 = vrot.slane %v1394_v62, 2 }
 0x13b   :  { %4151 = vtanh.f32 %v860_v15  ;;  %v5377_v33 = vadd.f32 %v5301_v18, %v5138_v9  ;;  %v1147_v13 = vsel %vm52_vm0, %v987_v12, 0.0  ;;  %v986_v52 = vmul.f32 %v5332_v53, %v4146_v1  ;;  %v4150_v27 = vpop.eup %4149 }
 0x13c   :  { %v1296_v39 = vmax.f32 %v1294_v59, %v1295_v42  ;;  %v1391_v49 = vrot.slane %v1390_v8, 1  ;;  %v5383_v44 = vadd.f32 %v5301_v18, %v5183_v48  ;;  %v1277_v63 = vrot.slane %v1276_v2, 1 }
 0x13d   :  { %8514 = vst [vmem:[#allocation52_spill] sm:$0xff] %v5377_v33  ;;  %v1288_v59 = vmax.f32 %v1286_v60, %v1287_v40  ;;  %v1399_v55 = vrot.slane %v5369_v43, 4  ;;  %v1844_v15 = vadd.f32 %v5353_v14, %v1843_v34  ;;  %v1283_v42 = vrot.slane %v1282_v32, 1  ;;  %v5396_v60 = vpop.xlane.xlu2 %1109 }
 0x13e   :  { %1136 = vadd.xlane.f32.xlu2 %v1135_v56  ;;  %1151 = vadd.xlane.f32.xlu1 %v1150_v28  ;;  %8515 = vst [vmem:[#allocation53_spill] sm:$0xff] %v5383_v44  ;;  %v970_v9 = vmul.f32 %v5332_v53, %v4148_v57  ;;  %v989_v56 = vmul.f32 %v5332_v53, %v4142_v24  ;;  %4153 = vtanh.f32 %v862_v11  ;;  %v1144_v34 = vsel %vm52_vm0, %v986_v52, 0.0 }
 0x13f   :  { %1148 = vadd.xlane.f32.xlu0 %v1147_v13  ;;  %v1595_v12 = vsub.f32 %v5314_v47, %v1296_v39  ;;  %v1392_v1 = vmax.f32 %v1390_v8, %v1391_v49  ;;  %v1396_v28 = vmax.f32 %v1394_v62, %v1395_v16  ;;  %v861_v48 = vadd.f32 %v5283_v30, %v5377_v33 }
 0x140   :  { %v5394_v40 = vadd.f32 %v5301_v18, %v5262_v37  ;;  %v990_v57 = vmul.f32 %v5332_v53, %v4150_v27  ;;  %v863_v24 = vadd.f32 %v5292_v17, %v5383_v44  ;;  %v1278_v11 = vmax.f32 %v1276_v2, %v1277_v63  ;;  %v603_v63 = vpop.f32.mrf.mxu3 }
 0x141   :  { %v1289_v47 = vrot.slane %v1288_v59, 1  ;;  %v1400_v8 = vmax.f32 %v5369_v43, %v1399_v55  ;;  %v4152_v49 = vpop.eup %4151  ;;  %v5405_v30 = vadd.f32 %v5301_v18, %v5211_v21  ;;  %v1845_v37 = vrot.slane %v1844_v15, 2 }
 0x142   :  { %8516 = vst [vmem:[#allocation54_spill] sm:$0xff] %v5394_v40  ;;  %v1284_v62 = vmax.f32 %v1282_v32, %v1283_v42  ;;  %v1096_v16 = vsel %vm52_vm0, %v970_v9, 0.0  ;;  %v1675_v39 = vmul.f32 1.442695, %v1595_v12  ;;  %v1611_v13 = vsub.f32 %v5327_v36, %v1392_v1 }
 0x143   :  { %8517 = vst [vmem:[#allocation55_spill] sm:$0xff] %v5405_v30  ;;  %v1397_v52 = vrot.slane %v1396_v28, 1  ;;  %v1405_v27 = vrot.slane %v5396_v60, 4  ;;  %4155 = vtanh.f32 %v861_v48  ;;  %v865_v17 = vadd.f32 %v737_v54, %v5394_v40 }
 0x144   :  { %v5413_v2 = vadd.f32 %v5301_v18, %v5319_v46  ;;  %v1156_v21 = vsel %vm52_vm0, %v990_v57, 0.0  ;;  %v4154_v32 = vpop.eup %4153  ;;  %v1592_v55 = vsub.f32 %v5267_v20, %v1278_v11  ;;  %v1290_v42 = vmax.f32 %v1288_v59, %v1289_v47 }
 0x145   :  { %v1401_v36 = vrot.slane %v1400_v8, 2  ;;  %v991_v9 = vmul.f32 %v5332_v53, %v4152_v49  ;;  %4157 = vtanh.f32 %v863_v24  ;;  %v8519_v54 = vperm.slane %v4989_v35, 0 }
 0x146   :  { %8518 = vst [vmem:[#allocation56_spill] sm:$0xff] %v5413_v2  ;;  %1145 = vadd.xlane.f32.xlu2 %v1144_v34  ;;  %1097 = vadd.xlane.f32.xlu1 %v1096_v16  ;;  %v1846_v1 = vadd.f32 %v1845_v37, %v1844_v15  ;;  %v1593_v46 = vsub.f32 %v5279_v7, %v1284_v62  ;;  %4159 = vpow2.f32 %v1675_v39  ;;  %v1707_v48 = vmul.f32 1.442695, %v1611_v13  ;;  %v5434_v13 = vpop.xlane.xlu2 %1055 }
 0x147   :  { %v864_v12 = vadd.f32 %v8519_v54, %v5405_v30  ;;  %1157 = vadd.xlane.f32.xlu0 %v1156_v21  ;;  %v1398_v34 = vmax.f32 %v1396_v28, %v1397_v52  ;;  %v1406_v57 = vmax.f32 %v5396_v60, %v1405_v27  ;;  %4161 = vtanh.f32 %v865_v17 }
 0x148   :  { %v866_v20 = vadd.f32 %v5363_v22, %v5413_v2  ;;  %v5426_v59 = vadd.f32 %v5301_v18, %v603_v63  ;;  %v993_v24 = vmul.f32 %v5332_v53, %v4154_v32  ;;  %v8521_v11 = vrot.slane %v4989_v35, 4 }
 0x149   :  { %v1669_v47 = vmul.f32 1.442695, %v1592_v55  ;;  %v1594_v7 = vsub.f32 %v5296_v58, %v1290_v42  ;;  %v1402_v49 = vmax.f32 %v1400_v8, %v1401_v36  ;;  %v4156_v37 = vpop.eup %4155  ;;  %4163 = vtanh.f32 %v864_v12  ;;  %v5438_v58 = vpop.xlane.xlu0 %1112 }
 0x14a   :  { %8520 = vst [vmem:[#allocation57_spill] sm:$0xff] %v5426_v59  ;;  %v740_v15 = vperm.slane %v8521_v11, 0  ;;  %v1847_v28 = vrot.slane %v1846_v1, 1  ;;  %v1671_v62 = vmul.f32 1.442695, %v1593_v46  ;;  %v1153_v16 = vsel %vm52_vm0, %v989_v56, 0.0  ;;  %v606_v36 = vpop.f32.mrf.mxu3 }
 0x14b   :  { %4165 = vpow2.f32 %v1707_v48  ;;  %v1612_v22 = vsub.f32 %v5347_v26, %v1398_v34  ;;  %v1407_v39 = vrot.slane %v1406_v57, 2  ;;  %v1159_v52 = vsel %vm52_vm0, %v991_v9, 0.0  ;;  %v4158_v27 = vpop.eup %4157 }
 0x14c   :  { %4167 = vtanh.f32 %v866_v20  ;;  %v868_v17 = vadd.f32 %v740_v15, %v5426_v59  ;;  %v1165_v8 = vsel %vm52_vm0, %v993_v24, 0.0  ;;  %v5441_v63 = vpop.eup %4159  ;;  %v5445_v26 = vadd.f32 %v5301_v18, %v5366_v31 }
 0x14d   :  { %4169 = vpow2.f32 %v1669_v47  ;;  %v1673_v56 = vmul.f32 1.442695, %v1594_v7  ;;  %v1403_v21 = vrot.slane %v1402_v49, 1  ;;  %v4162_v32 = vpop.eup %4161  ;;  %v8523_v55 = vrot.slane %v4989_v35, 3 }
 0x14e   :  { %1154 = vadd.xlane.f32.xlu2 %v1153_v16  ;;  %1160 = vadd.xlane.f32.xlu1 %v1159_v52  ;;  %8522 = vst [vmem:[#allocation58_spill] sm:$0xff] %v5445_v26  ;;  %v5449_v9 = vadd.f32 %v1847_v28, %v1846_v1  ;;  %4171 = vpow2.f32 %v1671_v62  ;;  %v1297_v54 = vrot.slane %v5434_v13, 4  ;;  %v1709_v12 = vmul.f32 1.442695, %v1612_v22 }
 0x14f   :  { %v739_v42 = vperm.slane %v8523_v55, 0  ;;  %1166 = vadd.xlane.f32.xlu0 %v1165_v8  ;;  %v1408_v46 = vmax.f32 %v1406_v57, %v1407_v39  ;;  %v992_v48 = vmul.f32 %v5332_v53, %v4156_v37  ;;  %v994_v31 = vmul.f32 %v5332_v53, %v4158_v27  ;;  %v4164_v34 = vpop.eup %4163  ;;  %v5467_v39 = vpop.xlane.xlu1 %1115 }
 0x150   :  { %4173 = vtanh.f32 %v868_v17  ;;  %v677_v20 = vrot.slane %v4989_v35, 5  ;;  %v1867_v24 = vrot.slane %v5441_v63, 4  ;;  %v1411_v11 = vrot.slane %v5438_v58, 4 }
 0x151   :  { %v5457_v1 = vpop.eup %4165  ;;  %v867_v15 = vadd.f32 %v739_v42, %v5445_v26  ;;  %4175 = vpow2.f32 %v1673_v56  ;;  %v1404_v47 = vmax.f32 %v1402_v49, %v1403_v21  ;;  %v996_v57 = vmul.f32 %v5332_v53, %v4162_v32 }
 0x152   :  { %v4168_v7 = vpop.eup %4167  ;;  %4177 = vrcp.f32 %v5449_v9  ;;  %v678_v37 = vrot.slane %v4989_v35, 6  ;;  %v1298_v62 = vmax.f32 %v5434_v13, %v1297_v54  ;;  %v1409_v22 = vrot.slane %v1408_v46, 1 }
 0x153   :  { %v5465_v16 = vpop.eup %4169  ;;  %4179 = vpow2.f32 %v1709_v12  ;;  %v1162_v52 = vsel %vm52_vm0, %v992_v48, 0.0  ;;  %v1168_v49 = vsel %vm52_vm0, %v994_v31, 0.0  ;;  %v1868_v17 = vadd.f32 %v5441_v63, %v1867_v24  ;;  %v5484_v24 = vpop.xlane.xlu0 %1058 }
 0x154   :  { %8524 = vst [vmem:[#allocation59_spill] sm:$0xff] %v5465_v16  ;;  %v5471_v27 = vpop.eup %4171  ;;  %v1963_v8 = vrot.slane %v5457_v1, 4  ;;  %v1412_v56 = vmax.f32 %v5438_v58, %v1411_v11  ;;  %v995_v21 = vmul.f32 %v5332_v53, %v4164_v34  ;;  %4181 = vtanh.f32 %v867_v15 }
 0x155   :  { %8525 = vst [vmem:[#allocation60_spill] sm:$0xff] %v5471_v27  ;;  %v5478_v32 = vadd.f32 %v5301_v18, %v606_v36  ;;  %v1613_v55 = vsub.f32 %v5369_v43, %v1404_v47  ;;  %v1174_v42 = vsel %vm52_vm0, %v996_v57, 0.0  ;;  %v1849_v12 = vrot.slane %v5465_v16, 4  ;;  %v609_v57 = vpop.f32.mrf.mxu3 }
 0x156   :  { %1163 = vadd.xlane.f32.xlu2 %v1162_v52  ;;  %1169 = vadd.xlane.f32.xlu1 %v1168_v49  ;;  %v4174_v54 = vpop.eup %4173  ;;  %v1417_v48 = vrot.slane %v5467_v39, 4  ;;  %v1299_v31 = vrot.slane %v1298_v62, 2  ;;  %v997_v11 = vmul.f32 %v5332_v53, %v4168_v7  ;;  %v741_v15 = vperm.slane %v677_v20, 0 }
 0x157   :  { %8526 = vst [vmem:[#allocation61_spill] sm:$0xff] %v5478_v32  ;;  %1175 = vadd.xlane.f32.xlu0 %v1174_v42  ;;  %v5487_v34 = vpop.eup %4175  ;;  %v1855_v36 = vrot.slane %v5471_v27, 4  ;;  %v742_v52 = vperm.slane %v678_v37, 0  ;;  %v1410_v43 = vmax.f32 %v1408_v46, %v1409_v22  ;;  %v1869_v49 = vrot.slane %v1868_v17, 2 }
 0x158   :  { %8527 = vst [vmem:[#allocation62_spill] sm:$0xff] %v5487_v34  ;;  %v5490_v47 = vpop.eup %4177  ;;  %v1964_v28 = vadd.f32 %v5457_v1, %v1963_v8  ;;  %v1413_v59 = vrot.slane %v1412_v56, 2  ;;  %v1171_v26 = vsel %vm52_vm0, %v995_v21, 0.0  ;;  %v869_v7 = vadd.f32 %v741_v15, %v5478_v32 }
 0x159   :  { %v5494_v44 = vpop.eup %4179  ;;  %v1711_v42 = vmul.f32 1.442695, %v1613_v55  ;;  %v1303_v20 = vrot.slane %v5484_v24, 4  ;;  %v999_v25 = vmul.f32 %v5332_v53, %v4174_v54  ;;  %v1850_v46 = vadd.f32 %v5465_v16, %v1849_v12 }
 0x15a   :  { %v1418_v37 = vmax.f32 %v5467_v39, %v1417_v48  ;;  %v1300_v22 = vmax.f32 %v1298_v62, %v1299_v31  ;;  %v1177_v33 = vsel %vm52_vm0, %v997_v11, 0.0  ;;  %v4182_v8 = vpop.eup %4181  ;;  %v2336_v21 = vmul.f32 %v5490_v47, %v5449_v9 }
 0x15b   :  { %v1856_v2 = vadd.f32 %v5471_v27, %v1855_v36  ;;  %v1861_v15 = vrot.slane %v5487_v34, 4  ;;  %v1614_v55 = vsub.f32 %v5396_v60, %v1410_v43  ;;  %v1870_v32 = vadd.f32 %v1869_v49, %v1868_v17 }
 0x15c   :  { %v1965_v30 = vrot.slane %v1964_v28, 2  ;;  %v1969_v54 = vrot.slane %v5494_v44, 4  ;;  %v1414_v12 = vmax.f32 %v1412_v56, %v1413_v59  ;;  %v5509_v62 = vadd.f32 %v5301_v18, %v609_v57 }
 0x15d   :  { %4183 = vpow2.f32 %v1711_v42  ;;  %v1304_v48 = vmax.f32 %v5484_v24, %v1303_v20  ;;  %v1183_v31 = vsel %vm52_vm0, %v999_v25, 0.0  ;;  %v1851_v11 = vrot.slane %v1850_v46, 2  ;;  %v612_v40 = vpop.f32.mrf.mxu3 }
 0x15e   :  { %1172 = vadd.xlane.f32.xlu2 %v1171_v26  ;;  %1178 = vadd.xlane.f32.xlu1 %v1177_v33  ;;  %8528 = vst [vmem:[#allocation63_spill] sm:$0xff] %v5509_v62  ;;  %v1419_v36 = vrot.slane %v1418_v37, 2  ;;  %v1301_v27 = vrot.slane %v1300_v22, 1  ;;  %v998_v60 = vmul.f32 %v5332_v53, %v4182_v8  ;;  %v2337_v17 = vsub.f32 1.0, %v2336_v21  ;;  %v5519_v21 = vpop.xlane.xlu1 %1061 }
 0x15f   :  { %1184 = vadd.xlane.f32.xlu0 %v1183_v31  ;;  %v1857_v43 = vrot.slane %v1856_v2, 2  ;;  %v1862_v59 = vadd.f32 %v5487_v34, %v1861_v15  ;;  %v1713_v26 = vmul.f32 1.442695, %v1614_v55  ;;  %v1871_v33 = vrot.slane %v1870_v32, 1 }
 0x160   :  { %v1966_v56 = vadd.f32 %v1965_v30, %v1964_v28  ;;  %v1970_v57 = vadd.f32 %v5494_v44, %v1969_v54  ;;  %v1415_v49 = vrot.slane %v1414_v12, 1  ;;  %4185 = vtanh.f32 %v869_v7 }
 0x161   :  { %v870_v42 = vadd.f32 %v742_v52, %v5509_v62  ;;  %v8529_v25 = vrot.slane %v4989_v35, 7  ;;  %v1305_v16 = vrot.slane %v1304_v48, 2  ;;  %v1852_v31 = vadd.f32 %v1851_v11, %v1850_v46 }
 0x162   :  { %v1420_v53 = vmax.f32 %v1418_v37, %v1419_v36  ;;  %v1302_v8 = vmax.f32 %v1300_v22, %v1301_v27  ;;  %v1180_v15 = vsel %vm52_vm0, %v998_v60, 0.0  ;;  %v2338_v30 = vmul.f32 %v5490_v47, %v2337_v17 }
 0x163   :  { %v743_v20 = vperm.slane %v8529_v25, 0  ;;  %v5522_v55 = vpop.eup %4183  ;;  %v1858_v28 = vadd.f32 %v1857_v43, %v1856_v2  ;;  %v1863_v7 = vrot.slane %v1862_v59, 2  ;;  %4187 = vpow2.f32 %v1713_v26 }
 0x164   :  { %v5525_v52 = vadd.f32 %v1871_v33, %v1870_v32  ;;  %v1967_v35 = vrot.slane %v1966_v56, 1  ;;  %v1971_v54 = vrot.slane %v1970_v57, 2  ;;  %v1416_v25 = vmax.f32 %v1414_v12, %v1415_v49  ;;  %v5546_v33 = vpop.xlane.xlu2 %1118 }
 0x165   :  { %4189 = vtanh.f32 %v870_v42  ;;  %v5528_v27 = vadd.f32 %v5301_v18, %v612_v40  ;;  %v1306_v46 = vmax.f32 %v1304_v48, %v1305_v16  ;;  %v1309_v37 = vrot.slane %v5519_v21, 4 }
 0x166   :  { %1181 = vadd.xlane.f32.xlu2 %v1180_v15  ;;  %v1853_v22 = vrot.slane %v1852_v31, 1  ;;  %v1975_v11 = vrot.slane %v5522_v55, 4  ;;  %v1421_v36 = vrot.slane %v1420_v53, 1  ;;  %v1596_v2 = vsub.f32 %v5434_v13, %v1302_v8  ;;  %v5533_v60 = vpop.eup %4185 }
 0x167   :  { %8530 = vst [vmem:[#allocation64_spill] sm:$0xff] %v5528_v27  ;;  %v2339_v32 = vadd.f32 %v5490_v47, %v2338_v30  ;;  %vm2341_vm1 = vweird.f32 %v5490_v47  ;;  %v1859_v12 = vrot.slane %v1858_v28, 1  ;;  %v1864_v17 = vadd.f32 %v1863_v7, %v1862_v59 }
 0x168   :  { %4191 = vrcp.f32 %v5525_v52  ;;  %v5538_v18 = vadd.f32 %v1967_v35, %v1966_v56  ;;  %v1972_v40 = vadd.f32 %v1971_v54, %v1970_v57  ;;  %v1615_v16 = vsub.f32 %v5438_v58, %v1416_v25 }
 0x169   :  { %v5541_v48 = vpop.eup %4187  ;;  %vm2340_vm2 = vweird.f32 %v5449_v9  ;;  %v2346_v13 = vand.u32 2147483648, %v5449_v9  ;;  %v1307_v43 = vrot.slane %v1306_v46, 1  ;;  %v1310_v26 = vmax.f32 %v5519_v21, %v1309_v37 }
 0x16a   :  { %vm5548_vm3 = vmor %vm2340_vm2, %vm2341_vm1  ;;  %v2344_v56 = vand.u32 2147483647, %v5449_v9  ;;  %v1976_v57 = vadd.f32 %v5522_v55, %v1975_v11  ;;  %v1422_v58 = vmax.f32 %v1420_v53, %v1421_v36  ;;  %v1677_v49 = vmul.f32 1.442695, %v1596_v2 }
 0x16b   :  { %v5554_v42 = vpop.eup %4189  ;;  %v5556_v8 = vadd.f32 %v1853_v22, %v1852_v31  ;;  %v2343_v15 = vsel %vm5548_vm3, %v5490_v47, %v2339_v32  ;;  %v1865_v30 = vrot.slane %v1864_v17, 1  ;;  %v871_v7 = vadd.f32 %v743_v20, %v5528_v27  ;;  %v5566_v31 = vpop.xlane.xlu0 %1121 }
 0x16c   :  { %4193 = vrcp.f32 %v5538_v18  ;;  %v1973_v35 = vrot.slane %v1972_v40, 1  ;;  %v1981_v9 = vrot.slane %v5541_v48, 4  ;;  %v1715_v54 = vmul.f32 1.442695, %v1615_v16 }
 0x16d   :  { %8533 = vst [vmem:[#allocation65_spill] sm:$0xff] %v5556_v8  ;;  %v2347_v25 = vor.u32 1.1754944e-38, %v2346_v13  ;;  %v5564_v53 = vadd.f32 %v1859_v12, %v1858_v28  ;;  %v1308_v37 = vmax.f32 %v1306_v46, %v1307_v43  ;;  %v1311_v11 = vrot.slane %v1310_v26, 2 }
 0x16e   :  { %v5568_v22 = vpop.eup %4191  ;;  %vm2345_vm4 = vcmp.eq.f32.partialorder %v2344_v56, 8.507059e+37  ;;  %v1977_v47 = vrot.slane %v1976_v57, 2  ;;  %v1616_v36 = vsub.f32 %v5467_v39, %v1422_v58  ;;  %4195 = vpow2.f32 %v1677_v49  ;;  %v5590_v58 = vpop.xlane.xlu2 %1064 }
 0x16f   :  { %8534 = vst [vmem:[#allocation66_spill] sm:$0xff] %v5564_v53  ;;  %v2348_v20 = vsel %vm2345_vm4, %v2347_v25, %v2343_v15  ;;  %v5571_v2 = vadd.f32 %v1865_v30, %v1864_v17  ;;  %4197 = vtanh.f32 %v871_v7  ;;  %v1597_v32 = vsub.f32 %v5484_v24, %v1308_v37  ;;  %v5592_v49 = vpop.xlane.xlu1 %1124 }
 0x170   :  { %v2406_v28 = vand.u32 2147483648, %v5525_v52  ;;  %v5575_v12 = vadd.f32 %v1973_v35, %v1972_v40  ;;  %v1982_v46 = vadd.f32 %v5541_v48, %v1981_v9  ;;  %4199 = vpow2.f32 %v1715_v54 }
 0x171   :  { %8535 = vst [vmem:[#allocation67_spill] sm:$0xff] %v5571_v2  ;;  %4201 = vrcp.f32 %v5556_v8  ;;  %v2396_v16 = vmul.f32 %v5568_v22, %v5525_v52  ;;  %v2646_v39 = vand.u32 2147483648, %v5538_v18  ;;  %v1312_v13 = vmax.f32 %v1310_v26, %v1311_v11 }
 0x172   :  { %v5582_v17 = vpop.eup %4193  ;;  %4203 = vrcp.f32 %v5564_v53  ;;  %v1978_v24 = vadd.f32 %v1977_v47, %v1976_v57  ;;  %v1717_v43 = vmul.f32 1.442695, %v1616_v36  ;;  %v5586_v40 = vmul.f32 %v5353_v14, %v2348_v20 }
 0x173   :  { %4205 = vrcp.f32 %v5571_v2  ;;  %v2404_v59 = vand.u32 2147483647, %v5525_v52  ;;  %v1679_v56 = vmul.f32 1.442695, %v1597_v32  ;;  %v5596_v26 = vor.u32 1.1754944e-38, %v2406_v28 }
 0x174   :  { %8536 = vst [vmem:[#allocation68_spill] sm:$0xff] %v5586_v40  ;;  %v5594_v15 = vpop.eup %4195  ;;  %4207 = vrcp.f32 %v5575_v12  ;;  %v1983_v57 = vrot.slane %v1982_v46, 2  ;;  %v2397_v7 = vsub.f32 1.0, %v2396_v16  ;;  %v2636_v35 = vmul.f32 %v5582_v17, %v5538_v18  ;;  %v5615_v16 = vpop.xlane.xlu0 %1004 }
 0x175   :  { %v5600_v14 = vpop.eup %4197  ;;  %v5604_v9 = vor.u32 1.1754944e-38, %v2646_v39  ;;  %v1313_v54 = vrot.slane %v1312_v13, 1  ;;  %v1979_v37 = vrot.slane %v1978_v24, 1  ;;  %4209 = vpow2.f32 %v1717_v43 }
 0x176   :  { %v5606_v25 = vpop.eup %4199  ;;  %v1315_v11 = vrot.slane %v5590_v58, 4  ;;  %v1435_v47 = vrot.slane %v5592_v49, 4  ;;  %vm2400_vm5 = vweird.f32 %v5525_v52  ;;  %v1873_v20 = vrot.slane %v5594_v15, 4 }
 0x177   :  { %v5610_v36 = vpop.eup %4201  ;;  %4211 = vpow2.f32 %v1679_v56  ;;  %v1314_v32 = vmax.f32 %v1312_v13, %v1313_v54  ;;  %v1423_v28 = vrot.slane %v5546_v33, 4  ;;  %v2661_v43 = vand.u32 2147483648, %v5575_v12 }
 0x178   :  { %8537 = vst [vmem:[#allocation69_spill] sm:$0xff] %v5610_v36  ;;  %v5617_v39 = vpop.eup %4203  ;;  %v1984_v30 = vadd.f32 %v1983_v57, %v1982_v46  ;;  %v1316_v27 = vmax.f32 %v5590_v58, %v1315_v11  ;;  %v1436_v62 = vmax.f32 %v5592_v49, %v1435_v47  ;;  %v2398_v40 = vmul.f32 %v5568_v22, %v2397_v7 }
 0x179   :  { %8538 = vst [vmem:[#allocation70_spill] sm:$0xff] %v5617_v39  ;;  %v5622_v34 = vpop.eup %4205  ;;  %v2637_v2 = vsub.f32 1.0, %v2636_v35  ;;  %v1987_v56 = vrot.slane %v5606_v25, 4  ;;  %v5629_v53 = vadd.f32 %v1979_v37, %v1978_v24  ;;  %v1195_v46 = vrot.slane %v5615_v16, 4 }
 0x17a   :  { %8539 = vst [vmem:[#allocation71_spill] sm:$0xff] %v5622_v34  ;;  %v5627_v54 = vpop.eup %4207  ;;  %v1317_v39 = vrot.slane %v1316_v27, 2  ;;  %v1437_v36 = vrot.slane %v1436_v62, 2  ;;  %vm2401_vm6 = vweird.f32 %v5568_v22  ;;  %v1874_v57 = vadd.f32 %v5594_v15, %v1873_v20 }
 0x17b   :  { %v1598_v11 = vsub.f32 %v5519_v21, %v1314_v32  ;;  %v1429_v7 = vrot.slane %v5566_v31, 4  ;;  %v5636_v35 = vpop.eup %4209  ;;  %vm5638_vm7 = vcmp.eq.f32.partialorder %v2404_v59, 8.507059e+37  ;;  %vm2640_vm8 = vweird.f32 %v5538_v18  ;;  %vm5662_vm10 = vmor %vm2400_vm5, %vm2401_vm6 }
 0x17c   :  { %8540 = vst [vmem:[#allocation72_spill] sm:$0xff] %v5636_v35  ;;  %vm2641_vm9 = vweird.f32 %v5582_v17  ;;  %v5644_v24 = vor.u32 1.1754944e-38, %v2661_v43  ;;  %v1985_v37 = vrot.slane %v1984_v30, 1  ;;  %v1318_v13 = vmax.f32 %v1316_v27, %v1317_v39 }
 0x17d   :  { %v5646_v34 = vpop.eup %4211  ;;  %v2399_v21 = vadd.f32 %v5568_v22, %v2398_v40  ;;  %v2638_v20 = vmul.f32 %v5582_v17, %v2637_v2  ;;  %v2651_v59 = vmul.f32 %v5627_v54, %v5575_v12  ;;  %v1988_v32 = vadd.f32 %v5606_v25, %v1987_v56  ;;  %vm5696_vm14 = vmor %vm2640_vm8, %vm2641_vm9 }
 0x17e   :  { %4213 = vrcp.f32 %v5629_v53  ;;  %v1424_v8 = vmax.f32 %v5546_v33, %v1423_v28  ;;  %v1438_v51 = vmax.f32 %v1436_v62, %v1437_v36  ;;  %v1196_v43 = vmax.f32 %v5615_v16, %v1195_v46  ;;  %v5670_v46 = vpop.xlane.xlu2 %1127 }
 0x17f   :  { %v1875_v39 = vrot.slane %v1874_v57, 2  ;;  %v1681_v50 = vmul.f32 1.442695, %v1598_v11  ;;  %v1430_v40 = vmax.f32 %v5566_v31, %v1429_v7  ;;  %v2676_v56 = vand.u32 2147483648, %v5629_v53 }
 0x180   :  { %v5667_v28 = vadd.f32 %v1985_v37, %v1984_v30  ;;  %v1879_v62 = vrot.slane %v5646_v34, 4  ;;  %v1319_v36 = vrot.slane %v1318_v13, 1  ;;  %v2403_v11 = vsel %vm5662_vm10, %v5568_v22, %v2399_v21 }
 0x181   :  { %v2639_v7 = vadd.f32 %v5582_v17, %v2638_v20  ;;  %v8545_v52 = vand.u32 2147483647, %v5538_v18  ;;  %v2652_v23 = vsub.f32 1.0, %v2651_v59  ;;  %vm2656_vm12 = vweird.f32 %v5627_v54 }
 0x182   :  { %v1989_v30 = vrot.slane %v1988_v32, 2  ;;  %v1425_v37 = vrot.slane %v1424_v8, 2  ;;  %v1320_v6 = vmax.f32 %v1318_v13, %v1319_v36  ;;  %v1439_v29 = vrot.slane %v1438_v51, 1 }
 0x183   :  { %vm5678_vm11 = vcmp.eq.f32.partialorder %v8545_v52, 8.507059e+37  ;;  %v1197_v45 = vrot.slane %v1196_v43, 2  ;;  %vm2655_vm13 = vweird.f32 %v5575_v12  ;;  %v1876_v2 = vadd.f32 %v1875_v39, %v1874_v57 }
 0x184   :  { %4215 = vpow2.f32 %v1681_v50  ;;  %v1431_v22 = vrot.slane %v1430_v40, 2  ;;  %v1441_v21 = vrot.slane %v5670_v46, 4  ;;  %v5685_v20 = vpop.eup %4213  ;;  %v1880_v52 = vadd.f32 %v5646_v34, %v1879_v62  ;;  %vm5736_vm1 = vmor %vm2655_vm13, %vm2656_vm12 }
 0x185   :  { %v1599_v59 = vsub.f32 %v5590_v58, %v1320_v6  ;;  %v1440_v19 = vmax.f32 %v1438_v51, %v1439_v29  ;;  %v1198_v4 = vmax.f32 %v1196_v43, %v1197_v45  ;;  %v2408_v13 = vsel %vm5638_vm7, %v5596_v26, %v2403_v11 }
 0x186   :  { %v2653_v57 = vmul.f32 %v5627_v54, %v2652_v23  ;;  %v5701_v39 = vor.u32 1.1754944e-38, %v2676_v56  ;;  %4217 = vrcp.f32 %v5667_v28  ;;  %v2643_v45 = vsel %vm5696_vm14, %v5582_v17, %v2639_v7 }
 0x187   :  { %v1426_v29 = vmax.f32 %v1424_v8, %v1425_v37  ;;  %v1683_v6 = vmul.f32 1.442695, %v1599_v59  ;;  %v1619_v51 = vsub.f32 %v5592_v49, %v1440_v19  ;;  %v8550_v18 = vand.u32 2147483647, %v5575_v12 }
 0x188   :  { %v1877_v26 = vrot.slane %v1876_v2, 1  ;;  %v1432_v23 = vmax.f32 %v1430_v40, %v1431_v22  ;;  %v1199_v47 = vrot.slane %v1198_v4, 1  ;;  %v1442_v43 = vmax.f32 %v5670_v46, %v1441_v21 }
 0x189   :  { %vm5710_vm15 = vcmp.eq.f32.partialorder %v8550_v18, 8.507059e+37  ;;  %v2666_v56 = vmul.f32 %v5685_v20, %v5629_v53  ;;  %v1990_v62 = vadd.f32 %v1989_v30, %v1988_v32  ;;  %v1881_v17 = vrot.slane %v1880_v52, 2  ;;  %v5726_v32 = vpop.xlane.xlu0 %1007 }
 0x18a   :  { %v1723_v8 = vmul.f32 1.442695, %v1619_v51  ;;  %v5717_v36 = vpop.eup %4215  ;;  %v2654_v19 = vadd.f32 %v5627_v54, %v2653_v57  ;;  %v2689_v49 = vand.u32 2147483647, %v5667_v28  ;;  %v2691_v11 = vand.u32 2147483648, %v5667_v28 }
 0x18b   :  { %4219 = vpow2.f32 %v1683_v6  ;;  %v2409_v40 = vmul.f32 %v5441_v63, %v2408_v13  ;;  %v2648_v7 = vsel %vm5678_vm11, %v5604_v9, %v2643_v45  ;;  %v1427_v37 = vrot.slane %v1426_v29, 1 }
 0x18c   :  { %4221 = vpow2.f32 %v1723_v8  ;;  %v5728_v30 = vpop.eup %4217  ;;  %v5730_v22 = vadd.f32 %v1877_v26, %v1876_v2  ;;  %v1433_v21 = vrot.slane %v1432_v23, 1  ;;  %v1200_v59 = vmax.f32 %v1198_v4, %v1199_v47 }
 0x18d   :  { %v1443_v50 = vrot.slane %v1442_v43, 2  ;;  %v2667_v9 = vsub.f32 1.0, %v2666_v56  ;;  %v1991_v27 = vrot.slane %v1990_v62, 1  ;;  %v1993_v13 = vrot.slane %v5636_v35, 4 }
 0x18e   :  { %v1882_v57 = vadd.f32 %v1881_v17, %v1880_v52  ;;  %v2658_v2 = vsel %vm5736_vm1, %v5627_v54, %v2654_v19  ;;  %v1885_v4 = vrot.slane %v5717_v36, 4  ;;  %v1201_v6 = vrot.slane %v5726_v32, 4 }
 0x18f   :  { %v1444_v45 = vmax.f32 %v1442_v43, %v1443_v50  ;;  %v2649_v12 = vmul.f32 %v5457_v1, %v2648_v7  ;;  %vm2671_vm2 = vweird.f32 %v5685_v20  ;;  %v1428_v51 = vmax.f32 %v1426_v29, %v1427_v37 }
 0x190   :  { %v1579_v18 = vsub.f32 %v5615_v16, %v1200_v59  ;;  %v3131_v52 = vmul.f32 %v2409_v40, %v4915_v0  ;;  %vm2670_vm3 = vweird.f32 %v5629_v53  ;;  %v5753_v47 = vor.u32 1.1754944e-38, %v2691_v11  ;;  %v5767_v11 = vpop.xlane.xlu1 %1010 }
 0x191   :  { %v5749_v26 = vpop.eup %4219  ;;  %4223 = vrcp.f32 %v5730_v22  ;;  %v1434_v54 = vmax.f32 %v1432_v23, %v1433_v21  ;;  %v2663_v1 = vsel %vm5710_vm15, %v5644_v24, %v2658_v2  ;;  %v2668_v29 = vmul.f32 %v5685_v20, %v2667_v9  ;;  %vm5804_vm5 = vmor %vm2670_vm3, %vm2671_vm2 }
 0x192   :  { %v5756_v43 = vpop.eup %4221  ;;  %v5762_v16 = vadd.f32 %v1991_v27, %v1990_v62  ;;  %v1883_v56 = vrot.slane %v1882_v57, 1  ;;  %v1994_v0 = vadd.f32 %v5636_v35, %v1993_v13  ;;  %v1886_v17 = vadd.f32 %v5717_v36, %v1885_v4 }
 0x193   :  { %v1445_v8 = vrot.slane %v1444_v45, 1  ;;  %v1202_v19 = vmax.f32 %v5726_v32, %v1201_v6  ;;  %v3147_v23 = vmul.f32 %v2649_v12, %v4920_v3  ;;  %v1617_v40 = vsub.f32 %v5546_v33, %v1428_v51 }
 0x194   :  { %v2011_v24 = vrot.slane %v5756_v43, 4  ;;  %v1643_v58 = vmul.f32 1.442695, %v1579_v18  ;;  %v2664_v62 = vmul.f32 %v5494_v44, %v2663_v1  ;;  %v8555_v7 = vand.u32 2147483647, %v5629_v53 }
 0x195   :  { %v2681_v21 = vmul.f32 %v5728_v30, %v5667_v28  ;;  %v1618_v59 = vsub.f32 %v5566_v31, %v1434_v54  ;;  %v1891_v3 = vrot.slane %v5749_v26, 4  ;;  %v2669_v33 = vadd.f32 %v5685_v20, %v2668_v29 }
 0x196   :  { %vm5775_vm4 = vcmp.eq.f32.partialorder %v8555_v7, 8.507059e+37  ;;  %4225 = vrcp.f32 %v5762_v16  ;;  %v5785_v50 = vadd.f32 %v1883_v56, %v1882_v57  ;;  %v1207_v44 = vrot.slane %v5767_v11, 4 }
 0x197   :  { %v5788_v63 = vpop.eup %4223  ;;  %v1887_v9 = vrot.slane %v1886_v17, 2  ;;  %v2012_v27 = vadd.f32 %v5756_v43, %v2011_v24  ;;  %v1446_v13 = vmax.f32 %v1444_v45, %v1445_v8  ;;  %v1203_v2 = vrot.slane %v1202_v19, 2 }
 0x198   :  { %v5792_v4 = vsel %vm52_vm0, %v3131_v52, 0.0  ;;  %v5795_v31 = vsel %vm52_vm0, %v3147_v23, 0.0  ;;  %v1719_v6 = vmul.f32 1.442695, %v1617_v40  ;;  %4227 = vpow2.f32 %v1643_v58 }
 0x199   :  { %8558 = vst [vmem:[#allocation73_spill] sm:$0xff] %v5795_v31  ;;  %v2682_v12 = vsub.f32 1.0, %v2681_v21  ;;  %v1721_v57 = vmul.f32 1.442695, %v1618_v59  ;;  %v1892_v51 = vadd.f32 %v5749_v26, %v1891_v3  ;;  %v1620_v18 = vsub.f32 %v5670_v46, %v1446_v13 }
 0x19a   :  { %v3148_v54 = vmul.f32 %v2664_v62, %v4934_v10  ;;  %v2411_v52 = vmul.f32 %v5788_v63, %v5730_v22  ;;  %v1204_v1 = vmax.f32 %v1202_v19, %v1203_v2  ;;  %v1208_v29 = vmax.f32 %v5767_v11, %v1207_v44 }
 0x19b   :  { %v2673_v46 = vsel %vm5804_vm5, %v5685_v20, %v2669_v33  ;;  %4229 = vrcp.f32 %v5785_v50  ;;  %v1888_v10 = vadd.f32 %v1887_v9, %v1886_v17  ;;  %v2013_v56 = vrot.slane %v2012_v27, 2 }
 0x19c   :  { %v5815_v8 = vpop.eup %4225  ;;  %v1995_v53 = vrot.slane %v1994_v0, 2  ;;  %4231 = vpow2.f32 %v1719_v6  ;;  %v1725_v23 = vmul.f32 1.442695, %v1620_v18  ;;  %v1205_v40 = vrot.slane %v1204_v1, 1 }
 0x19d   :  { %v2683_v19 = vmul.f32 %v5728_v30, %v2682_v12  ;;  %4233 = vpow2.f32 %v1721_v57  ;;  %v1893_v58 = vrot.slane %v1892_v51, 2  ;;  %v5822_v20 = vsel %vm52_vm0, %v3148_v54, 0.0 }
 0x19e   :  { %v5819_v62 = vpop.eup %4227  ;;  %8561 = vst [vmem:[#allocation74_spill] sm:$0xff] %v5822_v20  ;;  %v2678_v17 = vsel %vm5775_vm4, %v5701_v39, %v2673_v46  ;;  %vm2686_vm6 = vweird.f32 %v5728_v30  ;;  %v2412_v7 = vsub.f32 1.0, %v2411_v52  ;;  %v1209_v21 = vrot.slane %v1208_v29, 2 }
 0x19f   :  { %v2696_v3 = vmul.f32 %v5815_v8, %v5762_v16  ;;  %v1889_v33 = vrot.slane %v1888_v10, 1  ;;  %v2014_v44 = vadd.f32 %v2013_v56, %v2012_v27  ;;  %vm2685_vm7 = vweird.f32 %v5667_v28  ;;  %v4431_v56 = vld [vmem:[%s8340_s7] ss:$0 sm:$0xff]  ;;  %s4458_s7 = smov 32  }
 0x1a0   :  { %v5832_v9 = vadd.f32 %v1995_v53, %v1994_v0  ;;  %v1771_v13 = vrot.slane %v5819_v62, 4  ;;  %4235 = vpow2.f32 %v1725_v23  ;;  %v1206_v37 = vmax.f32 %v1204_v1, %v1205_v40  ;;  %vm5885_vm11 = vmor %vm2685_vm7, %vm2686_vm6 }
 0x1a1   :  { %v5835_v39 = vpop.eup %4229  ;;  %v5839_v6 = vmul.f32 %v5522_v55, %v2678_v17  ;;  %v5842_v12 = vadd.f32 %v5728_v30, %v2683_v19  ;;  %v1894_v57 = vadd.f32 %v1893_v58, %v1892_v51  ;;  %v2704_v0 = vand.u32 2147483647, %v5762_v16 }
 0x1a2   :  { %v5844_v27 = vpop.eup %4231  ;;  %v2413_v18 = vmul.f32 %v5788_v63, %v2412_v7  ;;  %v1772_v54 = vadd.f32 %v5819_v62, %v1771_v13  ;;  %v1210_v45 = vmax.f32 %v1208_v29, %v1209_v21  ;;  %v2697_v1 = vsub.f32 1.0, %v2696_v3 }
 0x1a3   :  { %8562 = vst [vmem:[#allocation75_spill] sm:$0xff] %v5844_v27  ;;  %v5849_v52 = vpop.eup %4233  ;;  %v5851_v46 = vadd.f32 %v1889_v33, %v1888_v10  ;;  %v2015_v55 = vrot.slane %v2014_v44, 1  ;;  %v1000_v51 = vmul.f32 %v4431_v56, %v5533_v60  ;;  %vm2416_vm8 = vweird.f32 %v5788_v63 }
 0x1a4   :  { %8563 = vst [vmem:[#allocation76_spill] sm:$0xff] %v5849_v52  ;;  %v2426_v53 = vmul.f32 %v5835_v39, %v5785_v50  ;;  %v1773_v23 = vrot.slane %v1772_v54, 2  ;;  %v1580_v29 = vsub.f32 %v5726_v32, %v1206_v37  ;;  %v1999_v40 = vrot.slane %v5844_v27, 4 }
 0x1a5   :  { %v1895_v19 = vrot.slane %v1894_v57, 1  ;;  %v1186_v10 = vsel %vm52_vm0, %v1000_v51, 0.0  ;;  %v1002_v58 = vmul.f32 %v4431_v56, %v5600_v14  ;;  %v2414_v7 = vadd.f32 %v5788_v63, %v2413_v18 }
 0x1a6   :  { %v5864_v17 = vpop.eup %4235  ;;  %v2005_v60 = vrot.slane %v5849_v52, 4  ;;  %v1774_v21 = vadd.f32 %v1773_v23, %v1772_v54  ;;  %v1211_v3 = vrot.slane %v1210_v45, 1  ;;  %1187 = vadd.xlane.f32.xlu1 %v1186_v10  ;;  %4237 = vrcp.f32 %v5851_v46 }
 0x1a7   :  { %v5869_v33 = vadd.f32 %v2015_v55, %v2014_v44  ;;  %v1192_v32 = vsel %vm52_vm0, %v1002_v58, 0.0  ;;  %v1001_v13 = vmul.f32 %v4431_v56, %v5554_v42  ;;  %vm5875_vm9 = vcmp.eq.f32.partialorder %v2689_v49, 8.507059e+37 }
 0x1a8   :  { %vm2415_vm10 = vweird.f32 %v5730_v22  ;;  %v2421_v37 = vand.u32 2147483648, %v5730_v22  ;;  %v2427_v18 = vsub.f32 1.0, %v2426_v53  ;;  %v1645_v54 = vmul.f32 1.442695, %v1580_v29  ;;  %1193 = vadd.xlane.f32.xlu0 %v1192_v32 }
 0x1a9   :  { %vm2700_vm12 = vweird.f32 %v5762_v16  ;;  %v2419_v42 = vand.u32 2147483647, %v5730_v22  ;;  %v5891_v49 = vadd.f32 %v1895_v19, %v1894_v57  ;;  %v2017_v55 = vrot.slane %v5864_v17, 4  ;;  %vm5901_vm13 = vmor %vm2415_vm10, %vm2416_vm8 }
 0x1aa   :  { %v1189_v56 = vsel %vm52_vm0, %v1001_v13, 0.0  ;;  %v2688_v51 = vsel %vm5885_vm11, %v5728_v30, %v5842_v12  ;;  %v2000_v53 = vadd.f32 %v5844_v27, %v1999_v40  ;;  %v1775_v22 = vrot.slane %v1774_v21, 1 }
 0x1ab   :  { %v1212_v57 = vmax.f32 %v1210_v45, %v1211_v3  ;;  %1190 = vadd.xlane.f32.xlu2 %v1189_v56  ;;  %v2698_v23 = vmul.f32 %v5815_v8, %v2697_v1  ;;  %v2418_v29 = vsel %vm5901_vm13, %v5788_v63, %v2414_v7  ;;  %v2006_v19 = vadd.f32 %v5849_v52, %v2005_v60 }
 0x1ac   :  { %4239 = vrcp.f32 %v5869_v33  ;;  %v2706_v30 = vand.u32 2147483648, %v5762_v16  ;;  %v2422_v12 = vor.u32 1.1754944e-38, %v2421_v37  ;;  %v2428_v10 = vmul.f32 %v5835_v39, %v2427_v18  ;;  %v5914_v40 = vpop.eup %4237 }
 0x1ad   :  { %4241 = vpow2.f32 %v1645_v54  ;;  %v1997_v45 = vrot.slane %v5832_v9, 1  ;;  %vm2420_vm14 = vcmp.eq.f32.partialorder %v2419_v42, 8.507059e+37  ;;  %v2018_v1 = vadd.f32 %v5864_v17, %v2017_v55 }
 0x1ae   :  { %4243 = vrcp.f32 %v5891_v49  ;;  %v2423_v63 = vsel %vm2420_vm14, %v2422_v12, %v2418_v29  ;;  %v2001_v58 = vrot.slane %v2000_v53, 2  ;;  %v5919_v7 = vadd.f32 %v1775_v22, %v1774_v21 }
 0x1af   :  { %v1581_v60 = vsub.f32 %v5767_v11, %v1212_v57  ;;  %v5924_v3 = vmul.f32 %v5839_v6, %v4923_v5  ;;  %v2699_v32 = vadd.f32 %v5815_v8, %v2698_v23  ;;  %vm2701_vm15 = vweird.f32 %v5815_v8 }
 0x1b0   :  { %v2007_v13 = vrot.slane %v2006_v19, 2  ;;  %v2429_v37 = vadd.f32 %v5835_v39, %v2428_v10  ;;  %vm2431_vm1 = vweird.f32 %v5835_v39  ;;  %v2436_v18 = vand.u32 2147483648, %v5785_v50  ;;  %vm5944_vm3 = vmor %vm2700_vm12, %vm2701_vm15 }
 0x1b1   :  { %8570 = vst [vmem:[#allocation77_spill] sm:$0xff] %v5924_v3  ;;  %v2441_v21 = vmul.f32 %v5914_v40, %v5851_v46  ;;  %v2693_v5 = vsel %vm5875_vm9, %v5753_v47, %v2688_v51  ;;  %v2424_v11 = vmul.f32 %v5594_v15, %v2423_v63  ;;  %vm2430_vm2 = vweird.f32 %v5785_v50 }
 0x1b2   :  { %v5933_v54 = vpop.eup %4239  ;;  %v2019_v6 = vrot.slane %v2018_v1, 2  ;;  %v2434_v55 = vand.u32 2147483647, %v5785_v50  ;;  %v2002_v56 = vadd.f32 %v2001_v58, %v2000_v53  ;;  %4245 = vrcp.f32 %v5919_v7  ;;  %vm5963_vm5 = vmor %vm2430_vm2, %vm2431_vm1 }
 0x1b3   :  { %v5940_v44 = vpop.eup %4241  ;;  %v1647_v14 = vmul.f32 1.442695, %v1581_v60  ;;  %vm5954_vm4 = vcmp.eq.f32.partialorder %v2704_v0, 8.507059e+37  ;;  %v2707_v51 = vor.u32 1.1754944e-38, %v2706_v30  ;;  %v5959_v28 = vadd.f32 %v1997_v45, %v5832_v9 }
 0x1b4   :  { %v5950_v47 = vpop.eup %4243  ;;  %v2008_v53 = vadd.f32 %v2007_v13, %v2006_v19  ;;  %v2703_v22 = vsel %vm5944_vm3, %v5815_v8, %v2699_v32  ;;  %v2433_v16 = vsel %vm5963_vm5, %v5835_v39, %v2429_v37  ;;  %v2437_v0 = vor.u32 1.1754944e-38, %v2436_v18  ;;  %v5996_v18 = vpop.xlane.xlu2 %1073 }
 0x1b5   :  { %8575 = vst [vmem:[#allocation78_spill] sm:$0xff] %v5959_v28  ;;  %v2442_v57 = vsub.f32 1.0, %v2441_v21  ;;  %v3132_v9 = vmul.f32 %v2424_v11, %v4953_v38  ;;  %v2756_v23 = vmul.f32 %v5933_v54, %v5869_v33  ;;  %v2020_v29 = vadd.f32 %v2019_v6, %v2018_v1  ;;  %v5983_v38 = vpop.xlane.xlu0 %1067 }
 0x1b6   :  { %v1777_v30 = vrot.slane %v5940_v44, 4  ;;  %vm2435_vm6 = vcmp.eq.f32.partialorder %v2434_v55, 8.507059e+37  ;;  %v2003_v19 = vrot.slane %v2002_v56, 1  ;;  %v2456_v12 = vmul.f32 %v5950_v47, %v5891_v49 }
 0x1b7   :  { %4247 = vpow2.f32 %v1647_v14  ;;  %v5980_v8 = vmul.f32 %v5541_v48, %v2693_v5  ;;  %v2438_v39 = vsel %vm2435_vm6, %v2437_v0, %v2433_v16  ;;  %v2009_v10 = vrot.slane %v2008_v53, 1 }
 0x1b8   :  { %4249 = vrcp.f32 %v5959_v28  ;;  %v5985_v45 = vpop.eup %4245  ;;  %v2708_v1 = vsel %vm5954_vm4, %v2707_v51, %v2703_v22  ;;  %v2443_v63 = vmul.f32 %v5914_v40, %v2442_v57  ;;  %v2449_v58 = vand.u32 2147483647, %v5851_v46 }
 0x1b9   :  { %8578 = vst [vmem:[#allocation79_spill] sm:$0xff] %v5980_v8  ;;  %v2451_v60 = vand.u32 2147483648, %v5851_v46  ;;  %v5993_v48 = vsel %vm52_vm0, %v3132_v9, 0.0  ;;  %v2757_v32 = vsub.f32 1.0, %v2756_v23  ;;  %v2021_v13 = vrot.slane %v2020_v29, 1 }
 0x1ba   :  { %v1778_v37 = vadd.f32 %v5940_v44, %v1777_v30  ;;  %v2439_v21 = vmul.f32 %v5646_v34, %v2438_v39  ;;  %v5999_v5 = vadd.f32 %v2003_v19, %v2002_v56  ;;  %v2457_v11 = vsub.f32 1.0, %v2456_v12 }
 0x1bb   :  { %v1321_v6 = vrot.slane %v5983_v38, 4  ;;  %v6003_v42 = vmul.f32 %v5606_v25, %v2708_v1  ;;  %vm2445_vm7 = vweird.f32 %v5851_v46  ;;  %v6006_v55 = vadd.f32 %v2009_v10, %v2008_v53  ;;  %v6046_v10 = vpop.xlane.xlu1 %1070 }
 0x1bc   :  { %8579 = vst [vmem:[#allocation80_spill] sm:$0xff] %v5999_v5  ;;  %v2156_v14 = vmul.f32 %v5985_v45, %v5919_v7  ;;  %v2444_v51 = vadd.f32 %v5914_v40, %v2443_v63  ;;  %vm2446_vm8 = vweird.f32 %v5914_v40  ;;  %vm6014_vm9 = vcmp.eq.f32.partialorder %v2449_v58, 8.507059e+37 }
 0x1bd   :  { %8580 = vst [vmem:[#allocation81_spill] sm:$0xff] %v6003_v42  ;;  %v6010_v15 = vpop.eup %4247  ;;  %v2452_v56 = vor.u32 1.1754944e-38, %v2451_v60  ;;  %v1333_v25 = vrot.slane %v5996_v18, 4  ;;  %v2758_v22 = vmul.f32 %v5933_v54, %v2757_v32  ;;  %v6023_v16 = vadd.f32 %v2021_v13, %v2020_v29  ;;  %vm6033_vm10 = vmor %vm2445_vm7, %vm2446_vm8 }
 0x1be   :  { %8581 = vst [vmem:[#allocation82_spill] sm:$0xff] %v6006_v55  ;;  %v6019_v50 = vpop.eup %4249  ;;  %v1779_v0 = vrot.slane %v1778_v37, 2  ;;  %v6026_v57 = vmul.f32 %v2439_v21, %v4970_v61  ;;  %4251 = vrcp.f32 %v5999_v5  ;;  %v2458_v9 = vmul.f32 %v5950_v47, %v2457_v11 }
 0x1bf   :  { %8584 = vst [vmem:[#allocation83_spill] sm:$0xff] %v6019_v50  ;;  %v1322_v23 = vmax.f32 %v5983_v38, %v1321_v6  ;;  %4253 = vrcp.f32 %v6006_v55  ;;  %v2464_v29 = vand.u32 2147483647, %v5891_v49  ;;  %v2157_v19 = vsub.f32 1.0, %v2156_v14  ;;  %v8631_v50 = vld [vmem:[#allocation22_spill] sm:$0xff] }
 0x1c0   :  { %v1783_v61 = vrot.slane %v6010_v15, 4  ;;  %v2448_v12 = vsel %vm6033_vm10, %v5914_v40, %v2444_v51  ;;  %v2466_v39 = vand.u32 2147483648, %v5891_v49  ;;  %vm2760_vm11 = vweird.f32 %v5869_v33 }
 0x1c1   :  { %v1334_v46 = vmax.f32 %v5996_v18, %v1333_v25  ;;  %v2759_v1 = vadd.f32 %v5933_v54, %v2758_v22  ;;  %vm2761_vm12 = vweird.f32 %v5933_v54  ;;  %4255 = vrcp.f32 %v6023_v16 }
 0x1c2   :  { %v1780_v63 = vadd.f32 %v1779_v0, %v1778_v37  ;;  %v2459_v58 = vadd.f32 %v5950_v47, %v2458_v9  ;;  %vm2461_vm13 = vweird.f32 %v5950_v47  ;;  %v2766_v40 = vand.u32 2147483648, %v5869_v33  ;;  %vm6069_vm1 = vmor %vm2760_vm11, %vm2761_vm12 }
 0x1c3   :  { %v1323_v60 = vrot.slane %v1322_v23, 2  ;;  %v2764_v32 = vand.u32 2147483647, %v5869_v33  ;;  %v2158_v13 = vmul.f32 %v5985_v45, %v2157_v19  ;;  %v1784_v21 = vadd.f32 %v6010_v15, %v1783_v61  ;;  %v6093_v61 = vpop.xlane.xlu0 %1130 }
 0x1c4   :  { %v1327_v11 = vrot.slane %v6046_v10, 4  ;;  %v6058_v6 = vpop.eup %4251  ;;  %vm2460_vm14 = vweird.f32 %v5891_v49  ;;  %vm6061_vm15 = vcmp.eq.f32.partialorder %v2464_v29, 8.507059e+37  ;;  %v2467_v14 = vor.u32 1.1754944e-38, %v2466_v39 }
 0x1c5   :  { %8587 = vst [vmem:[#allocation84_spill] sm:$0xff] %v6058_v6  ;;  %v1335_v25 = vrot.slane %v1334_v46, 2  ;;  %v6073_v22 = vpop.eup %4253  ;;  %v6077_v0 = vsel %vm6014_vm9, %v2452_v56, %v2448_v12  ;;  %vm6081_vm2 = vmor %vm2460_vm14, %vm2461_vm13  ;;  %v2763_v33 = vsel %vm6069_vm1, %v5933_v54, %v2759_v1  ;;  %v1781_v9 = vrot.slane %v1780_v63, 1 }
 0x1c6   :  { %8592 = vst [vmem:[#allocation85_spill] sm:$0xff] %v6073_v22  ;;  %v1328_v30 = vmax.f32 %v6046_v10, %v1327_v11  ;;  %v2463_v29 = vsel %vm6081_vm2, %v5950_v47, %v2459_v58  ;;  %v2767_v34 = vor.u32 1.1754944e-38, %v2766_v40  ;;  %v2164_v56 = vand.u32 2147483647, %v5919_v7 }
 0x1c7   :  { %v1324_v19 = vmax.f32 %v1322_v23, %v1323_v60  ;;  %v6095_v12 = vpop.eup %4255  ;;  %vm2765_vm3 = vcmp.eq.f32.partialorder %v2764_v32, 8.507059e+37  ;;  %v2159_v39 = vadd.f32 %v5985_v45, %v2158_v13  ;;  %vm2161_vm4 = vweird.f32 %v5985_v45 }
 0x1c8   :  { %v1785_v54 = vrot.slane %v1784_v21, 2  ;;  %v2768_v1 = vsel %vm2765_vm3, %v2767_v34, %v2763_v33  ;;  %v1336_v11 = vmax.f32 %v1334_v46, %v1335_v25  ;;  %v1329_v51 = vrot.slane %v1328_v30, 2  ;;  %v6124_v25 = vpop.xlane.xlu2 %1016  ;;  %v6126_v33 = vpop.xlane.xlu1 %1013 }
 0x1c9   :  { %v1447_v49 = vrot.slane %v6093_v61, 4  ;;  %v6102_v47 = vsel %vm6061_vm15, %v2467_v14, %v2463_v29  ;;  %vm2160_vm5 = vweird.f32 %v5919_v7  ;;  %v2166_v23 = vand.u32 2147483648, %v5919_v7 }
 0x1ca   :  { %v6106_v58 = vadd.f32 %v1781_v9, %v1780_v63  ;;  %vm6108_vm6 = vmor %vm2160_vm5, %vm2161_vm4  ;;  %vm6112_vm7 = vcmp.eq.f32.partialorder %v2164_v56, 8.507059e+37  ;;  %v2771_v46 = vmul.f32 %v6095_v12, %v6023_v16  ;;  %v1325_v32 = vrot.slane %v1324_v19, 1 }
 0x1cb   :  { %v1448_v13 = vmax.f32 %v6093_v61, %v1447_v49  ;;  %v2769_v37 = vmul.f32 %v5756_v43, %v2768_v1  ;;  %v2163_v7 = vsel %vm6108_vm6, %v5985_v45, %v2159_v39  ;;  %v2781_v63 = vand.u32 2147483648, %v6023_v16 }
 0x1cc   :  { %v1786_v14 = vadd.f32 %v1785_v54, %v1784_v21  ;;  %v1337_v9 = vrot.slane %v1336_v11, 1  ;;  %v1330_v29 = vmax.f32 %v1328_v30, %v1329_v51  ;;  %v1219_v56 = vrot.slane %v6124_v25, 4 }
 0x1cd   :  { %v1449_v34 = vrot.slane %v1448_v13, 2  ;;  %v2167_v59 = vor.u32 1.1754944e-38, %v2166_v23  ;;  %4257 = vrcp.f32 %v6106_v58  ;;  %v1213_v43 = vrot.slane %v6126_v33, 4 }
 0x1ce   :  { %v2772_v45 = vsub.f32 1.0, %v2771_v46  ;;  %v1326_v39 = vmax.f32 %v1324_v19, %v1325_v32  ;;  %v1220_v21 = vmax.f32 %v6124_v25, %v1219_v56  ;;  %v6134_v54 = vmul.f32 %v2769_v37, %v5033_v41 }
 0x1cf   :  { %v1450_v1 = vmax.f32 %v1448_v13, %v1449_v34  ;;  %v2168_v30 = vsel %vm6112_vm7, %v2167_v59, %v2163_v7  ;;  %v1787_v51 = vrot.slane %v1786_v14, 1  ;;  %v1214_v23 = vmax.f32 %v6126_v33, %v1213_v43  ;;  %v6143_v34 = vpop.xlane.xlu0 %1076 }
 0x1d0   :  { %v6139_v40 = vor.u32 1.1754944e-38, %v2781_v63  ;;  %v1338_v2 = vmax.f32 %v1336_v11, %v1337_v9  ;;  %v1331_v53 = vrot.slane %v1330_v29, 1  ;;  %v2181_v19 = vand.u32 2147483648, %v6106_v58  ;;  %v6153_v43 = vpop.xlane.xlu2 %1019  ;;  %v6155_v46 = vpop.xlane.xlu1 %1133 }
 0x1d1   :  { %v1451_v24 = vrot.slane %v1450_v1, 1  ;;  %v1221_v32 = vrot.slane %v1220_v21, 2  ;;  %v1215_v13 = vrot.slane %v1214_v23, 2  ;;  %v2169_v41 = vmul.f32 %v5819_v62, %v2168_v30 }
 0x1d2   :  { %v2773_v59 = vmul.f32 %v6095_v12, %v2772_v45  ;;  %v1600_v60 = vsub.f32 %v5983_v38, %v1326_v39  ;;  %v6150_v11 = vadd.f32 %v1787_v51, %v1786_v14  ;;  %v1339_v56 = vrot.slane %v6143_v34, 4 }
 0x1d3   :  { %v1452_v37 = vmax.f32 %v1450_v1, %v1451_v24  ;;  %v6148_v7 = vpop.eup %4257  ;;  %v1222_v63 = vmax.f32 %v1220_v21, %v1221_v32  ;;  %v1216_v9 = vmax.f32 %v1214_v23, %v1215_v13  ;;  %v1602_v49 = vsub.f32 %v5996_v18, %v1338_v2 }
 0x1d4   :  { %v1332_v62 = vmax.f32 %v1330_v29, %v1331_v53  ;;  %v1225_v38 = vrot.slane %v6153_v43, 4  ;;  %v1340_v14 = vmax.f32 %v6143_v34, %v1339_v56  ;;  %v1453_v1 = vrot.slane %v6155_v46, 4 }
 0x1d5   :  { %v1621_v45 = vsub.f32 %v6093_v61, %v1452_v37  ;;  %v1223_v24 = vrot.slane %v1222_v63, 1  ;;  %v1217_v39 = vrot.slane %v1216_v9, 1  ;;  %vm2776_vm8 = vweird.f32 %v6095_v12 }
 0x1d6   :  { %v2171_v21 = vmul.f32 %v6148_v7, %v6106_v58  ;;  %v1685_v30 = vmul.f32 1.442695, %v1600_v60  ;;  %v1226_v2 = vmax.f32 %v6153_v43, %v1225_v38  ;;  %v1341_v61 = vrot.slane %v1340_v14, 2 }
 0x1d7   :  { %v1727_v51 = vmul.f32 1.442695, %v1621_v45  ;;  %v1224_v18 = vmax.f32 %v1222_v63, %v1223_v24  ;;  %v1218_v53 = vmax.f32 %v1216_v9, %v1217_v39  ;;  %v1454_v29 = vmax.f32 %v6155_v46, %v1453_v1  ;;  %v6264_v27 = vpop.xlane.xlu0 %1022 }
 0x1d8   :  { %vm2775_vm9 = vweird.f32 %v6023_v16  ;;  %4259 = vrcp.f32 %v6150_v11  ;;  %v1689_v23 = vmul.f32 1.442695, %v1602_v49  ;;  %v1601_v32 = vsub.f32 %v6046_v10, %v1332_v62  ;;  %v6174_v52 = vpop.xlane.xlu2 %1082  ;;  %v6176_v49 = vpop.xlane.xlu1 %1079 }
 0x1d9   :  { %v1227_v13 = vrot.slane %v1226_v2, 2  ;;  %4261 = vpow2.f32 %v1727_v51  ;;  %v1583_v37 = vsub.f32 %v6124_v25, %v1224_v18  ;;  %v1582_v60 = vsub.f32 %v6126_v33, %v1218_v53  ;;  %vm6202_vm11 = vmor %vm2775_vm9, %vm2776_vm8 }
 0x1da   :  { %v1342_v56 = vmax.f32 %v1340_v14, %v1341_v61  ;;  %v2172_v45 = vsub.f32 1.0, %v2171_v21  ;;  %v6172_v63 = vor.u32 1.1754944e-38, %v2181_v19  ;;  %v1455_v38 = vrot.slane %v1454_v29, 2 }
 0x1db   :  { %v1228_v9 = vmax.f32 %v1226_v2, %v1227_v13  ;;  %4263 = vpow2.f32 %v1685_v30  ;;  %v1651_v24 = vmul.f32 1.442695, %v1583_v37  ;;  %v1649_v39 = vmul.f32 1.442695, %v1582_v60  ;;  %v8599_v30 = vld [vmem:[#allocation15_spill] sm:$0xff] }
 0x1dc   :  { %v1343_v1 = vrot.slane %v1342_v56, 1  ;;  %4265 = vpow2.f32 %v1689_v23  ;;  %v1687_v10 = vmul.f32 1.442695, %v1601_v32  ;;  %v1456_v25 = vmax.f32 %v1454_v29, %v1455_v38 }
 0x1dd   :  { %v1229_v62 = vrot.slane %v1228_v9, 1  ;;  %4267 = vpow2.f32 %v1651_v24  ;;  %v1351_v14 = vrot.slane %v6174_v52, 4  ;;  %v1345_v19 = vrot.slane %v6176_v49, 4 }
 0x1de   :  { %v1344_v33 = vmax.f32 %v1342_v56, %v1343_v1  ;;  %v6180_v21 = vpop.eup %4259  ;;  %v6183_v51 = vmul.f32 %v2169_v41, %v8599_v30  ;;  %v6186_v2 = vadd.f32 %v6095_v12, %v2773_v59  ;;  %v1457_v53 = vrot.slane %v1456_v25, 1 }
 0x1df   :  { %v1230_v18 = vmax.f32 %v1228_v9, %v1229_v62  ;;  %v6188_v61 = vpop.eup %4261  ;;  %vm2175_vm10 = vweird.f32 %v6106_v58  ;;  %4269 = vpow2.f32 %v1649_v39  ;;  %v1352_v23 = vmax.f32 %v6174_v52, %v1351_v14 }
 0x1e0   :  { %v1603_v29 = vsub.f32 %v6143_v34, %v1344_v33  ;;  %v1346_v32 = vmax.f32 %v6176_v49, %v1345_v19  ;;  %4271 = vpow2.f32 %v1687_v10  ;;  %v2023_v41 = vrot.slane %v6188_v61, 4 }
 0x1e1   :  { %v1458_v59 = vmax.f32 %v1456_v25, %v1457_v53  ;;  %v6196_v37 = vpop.eup %4263  ;;  %v2173_v34 = vmul.f32 %v6148_v7, %v2172_v45  ;;  %v1353_v9 = vrot.slane %v1352_v23, 2  ;;  %v2778_v39 = vsel %vm6202_vm11, %v6095_v12, %v6186_v2 }
 0x1e2   :  { %v1691_v56 = vmul.f32 1.442695, %v1603_v29  ;;  %v1347_v38 = vrot.slane %v1346_v32, 2  ;;  %v6207_v24 = vpop.eup %4265  ;;  %v8602_v1 = vand.u32 2147483647, %v6023_v16  ;;  %v2186_v62 = vmul.f32 %v6180_v21, %v6150_v11 }
 0x1e3   :  { %v2024_v45 = vadd.f32 %v6188_v61, %v2023_v41  ;;  %v1622_v25 = vsub.f32 %v6155_v46, %v1458_v59  ;;  %v6223_v33 = vpop.eup %4267  ;;  %v8605_v14 = vand.u32 2147483647, %v6106_v58  ;;  %v1584_v16 = vsub.f32 %v6153_v43, %v1230_v18 }
 0x1e4   :  { %vm6215_vm12 = vcmp.eq.f32.partialorder %v8602_v1, 8.507059e+37  ;;  %4273 = vpow2.f32 %v1691_v56  ;;  %v1354_v12 = vmax.f32 %v1352_v23, %v1353_v9  ;;  %v1348_v30 = vmax.f32 %v1346_v32, %v1347_v38 }
 0x1e5   :  { %vm6227_vm13 = vcmp.eq.f32.partialorder %v8605_v14, 8.507059e+37  ;;  %vm2176_vm14 = vweird.f32 %v6148_v7  ;;  %v1897_v2 = vrot.slane %v6196_v37, 4  ;;  %v2025_v53 = vrot.slane %v2024_v45, 2  ;;  %v6235_v29 = vpop.eup %4269 }
 0x1e6   :  { %v1795_v46 = vrot.slane %v6223_v33, 4  ;;  %v2174_v41 = vadd.f32 %v6148_v7, %v2173_v34  ;;  %v1909_v59 = vrot.slane %v6207_v24, 4  ;;  %v1729_v60 = vmul.f32 1.442695, %v1622_v25  ;;  %v6239_v56 = vpop.eup %4271  ;;  %vm6247_vm15 = vmor %vm2175_vm10, %vm2176_vm14 }
 0x1e7   :  { %v1349_v1 = vrot.slane %v1348_v30, 1  ;;  %v2187_v43 = vsub.f32 1.0, %v2186_v62  ;;  %v2026_v18 = vadd.f32 %v2025_v53, %v2024_v45  ;;  %v1789_v32 = vrot.slane %v6235_v29, 4 }
 0x1e8   :  { %v1796_v23 = vadd.f32 %v6223_v33, %v1795_v46  ;;  %v1653_v9 = vmul.f32 1.442695, %v1584_v16  ;;  %4275 = vpow2.f32 %v1729_v60  ;;  %v1355_v38 = vrot.slane %v1354_v12, 1 }
 0x1e9   :  { %v1350_v14 = vmax.f32 %v1348_v30, %v1349_v1  ;;  %v1898_v25 = vadd.f32 %v6196_v37, %v1897_v2  ;;  %v2027_v62 = vrot.slane %v2026_v18, 1  ;;  %v1790_v53 = vadd.f32 %v6235_v29, %v1789_v32 }
 0x1ea   :  { %v1797_v45 = vrot.slane %v1796_v23, 2  ;;  %v6253_v46 = vpop.eup %4273  ;;  %v2178_v16 = vsel %vm6247_vm15, %v6148_v7, %v2174_v41  ;;  %v1910_v30 = vadd.f32 %v6207_v24, %v1909_v59  ;;  %v1903_v58 = vrot.slane %v6239_v56, 4 }
 0x1eb   :  { %v1604_v60 = vsub.f32 %v6176_v49, %v1350_v14  ;;  %v6261_v1 = vadd.f32 %v2027_v62, %v2026_v18  ;;  %v1791_v2 = vrot.slane %v1790_v53, 2  ;;  %v1915_v31 = vrot.slane %v6253_v46, 4 }
 0x1ec   :  { %v1798_v13 = vadd.f32 %v1797_v45, %v1796_v23  ;;  %v2783_v32 = vsel %vm6215_vm12, %v6139_v40, %v2778_v39  ;;  %v2188_v7 = vmul.f32 %v6180_v21, %v2187_v43  ;;  %4277 = vpow2.f32 %v1653_v9 }
 0x1ed   :  { %v1356_v41 = vmax.f32 %v1354_v12, %v1355_v38  ;;  %v2183_v49 = vsel %vm6227_vm13, %v6172_v63, %v2178_v16  ;;  %v2196_v59 = vand.u32 2147483648, %v6150_v11  ;;  %v1899_v18 = vrot.slane %v1898_v25, 2 }
 0x1ee   :  { %4279 = vrcp.f32 %v6261_v1  ;;  %v6275_v23 = vpop.eup %4275  ;;  %v1799_v14 = vrot.slane %v1798_v13, 1  ;;  %v1792_v34 = vadd.f32 %v1791_v2, %v1790_v53  ;;  %v1916_v10 = vadd.f32 %v6253_v46, %v1915_v31 }
 0x1ef   :  { %v1231_v40 = vrot.slane %v6264_v27, 4  ;;  %v2784_v39 = vmul.f32 %v5864_v17, %v2783_v32  ;;  %v1911_v12 = vrot.slane %v1910_v30, 2  ;;  %v1904_v43 = vadd.f32 %v6239_v56, %v1903_v58 }
 0x1f0   :  { %v1693_v19 = vmul.f32 1.442695, %v1604_v60  ;;  %v2189_v63 = vadd.f32 %v6180_v21, %v2188_v7  ;;  %vm2191_vm1 = vweird.f32 %v6180_v21  ;;  %v2029_v9 = vrot.slane %v6275_v23, 4 }
 0x1f1   :  { %v1605_v38 = vsub.f32 %v6174_v52, %v1356_v41  ;;  %v2184_v62 = vmul.f32 %v5940_v44, %v2183_v49  ;;  %vm2190_vm2 = vweird.f32 %v6150_v11  ;;  %v8610_v31 = vand.u32 2147483647, %v6150_v11  ;;  %v8616_v41 = vld [vmem:[#allocation19_spill] sm:$0xff] }
 0x1f2   :  { %v1793_v45 = vrot.slane %v1792_v34, 1  ;;  %v6293_v53 = vpop.eup %4277  ;;  %v1900_v16 = vadd.f32 %v1899_v18, %v1898_v25  ;;  %v6295_v58 = vadd.f32 %v1799_v14, %v1798_v13  ;;  %v1917_v60 = vrot.slane %v1916_v10, 2  ;;  %vm6300_vm4 = vmor %vm2190_vm2, %vm2191_vm1  ;;  %v8617_v14 = vld [vmem:[#allocation17_spill] sm:$0xff] }
 0x1f3   :  { %vm6289_vm3 = vcmp.eq.f32.partialorder %v8610_v31, 8.507059e+37  ;;  %8613 = vst [vmem:[#allocation15_spill] sm:$0xff] %v6293_v53  ;;  %v1232_v2 = vmax.f32 %v6264_v27, %v1231_v40  ;;  %v2197_v11 = vor.u32 1.1754944e-38, %v2196_v59  ;;  %v1912_v32 = vadd.f32 %v1911_v12, %v1910_v30 }
 0x1f4   :  { %v6298_v52 = vpop.eup %4279  ;;  %v1905_v7 = vrot.slane %v1904_v43, 2  ;;  %4281 = vpow2.f32 %v1693_v19  ;;  %v3156_v49 = vmul.f32 %v2784_v39, %v8616_v41  ;;  %v2193_v13 = vsel %vm6300_vm4, %v6180_v21, %v2189_v63 }
 0x1f5   :  { %v2030_v25 = vadd.f32 %v6275_v23, %v2029_v9  ;;  %v1695_v18 = vmul.f32 1.442695, %v1605_v38  ;;  %v3116_v40 = vmul.f32 %v2184_v62, %v8617_v14  ;;  %v2786_v31 = vmul.f32 %v6298_v52, %v6261_v1  ;;  %v6354_v14 = vpop.xlane.xlu1 %1025 }
 0x1f6   :  { %v6312_v42 = vadd.f32 %v1793_v45, %v1792_v34  ;;  %v1801_v30 = vrot.slane %v6293_v53, 4  ;;  %v1901_v59 = vrot.slane %v1900_v16, 1  ;;  %4283 = vrcp.f32 %v6295_v58 }
 0x1f7   :  { %v1918_v39 = vadd.f32 %v1917_v60, %v1916_v10  ;;  %v1233_v12 = vrot.slane %v1232_v2, 2  ;;  %v6318_v21 = vsel %vm52_vm0, %v6134_v54, 0.0  ;;  %v2198_v19 = vsel %vm6289_vm3, %v2197_v11, %v2193_v13 }
 0x1f8   :  { %8618 = vst [vmem:[#allocation19_spill] sm:$0xff] %v6318_v21  ;;  %v1913_v63 = vrot.slane %v1912_v32, 1  ;;  %v1906_v9 = vadd.f32 %v1905_v7, %v1904_v43  ;;  %v6324_v34 = vsel %vm52_vm0, %v6183_v51, 0.0  ;;  %v6327_v38 = vsel %vm52_vm0, %v3156_v49, 0.0  ;;  %v6403_v21 = vpop.xlane.xlu2 %1028 }
 0x1f9   :  { %8619 = vst [vmem:[#allocation17_spill] sm:$0xff] %v6324_v34  ;;  %v2031_v62 = vrot.slane %v2030_v25, 2  ;;  %4285 = vpow2.f32 %v1695_v18  ;;  %v6332_v45 = vsel %vm52_vm0, %v3116_v40, 0.0  ;;  %v2787_v54 = vsub.f32 1.0, %v2786_v31  ;;  %v8622_v31 = vld [vmem:[#allocation20_spill] sm:$0xff] }
 0x1fa   :  { %8620 = vst [vmem:[#allocation86_spill] sm:$0xff] %v6327_v38  ;;  %v6329_v10 = vpop.eup %4281  ;;  %4287 = vrcp.f32 %v6312_v42  ;;  %v1802_v17 = vadd.f32 %v6293_v53, %v1801_v30  ;;  %v2199_v43 = vmul.f32 %v6010_v15, %v2198_v19  ;;  %v6337_v60 = vadd.f32 %v1901_v59, %v1900_v16 }
 0x1fb   :  { %8621 = vst [vmem:[#allocation87_spill] sm:$0xff] %v6332_v45  ;;  %v1919_v51 = vrot.slane %v1918_v39, 1  ;;  %v1234_v44 = vmax.f32 %v1232_v2, %v1233_v12  ;;  %v6341_v11 = vmul.f32 %v5717_v36, %v6077_v0  ;;  %v6345_v7 = vmul.f32 %v5749_v26, %v6102_v47 }
 0x1fc   :  { %v6347_v41 = vadd.f32 %v1913_v63, %v1912_v32  ;;  %v1907_v49 = vrot.slane %v1906_v9, 1  ;;  %v6349_v13 = vpop.eup %4283  ;;  %v2032_v16 = vadd.f32 %v2031_v62, %v2030_v25  ;;  %v1921_v2 = vrot.slane %v6329_v10, 4  ;;  %v6359_v32 = vpop.xlane.xlu0 %1085 }
 0x1fd   :  { %v2788_v26 = vmul.f32 %v6298_v52, %v2787_v54  ;;  %v1803_v47 = vrot.slane %v1802_v17, 2  ;;  %v6364_v30 = vmul.f32 %v2199_v43, %v8622_v31  ;;  %4289 = vrcp.f32 %v6337_v60 }
 0x1fe   :  { %v6367_v25 = vadd.f32 %v1919_v51, %v1918_v39  ;;  %v1235_v59 = vrot.slane %v1234_v44, 1  ;;  %4291 = vrcp.f32 %v6347_v41  ;;  %v6372_v19 = vadd.f32 %v1907_v49, %v1906_v9 }
 0x1ff   :  { %v6361_v40 = vpop.eup %4285  ;;  %8623 = vst [vmem:[#allocation20_spill] sm:$0xff] %v6364_v30  ;;  %v2216_v63 = vmul.f32 %v6349_v13, %v6295_v58  ;;  %v1237_v62 = vrot.slane %v6354_v14, 4  ;;  %v2794_v54 = vand.u32 2147483647, %v6261_v1  ;;  %v2033_v43 = vrot.slane %v2032_v16, 1 }
 0x200   :  { %v6369_v12 = vpop.eup %4287  ;;  %v1922_v31 = vadd.f32 %v6329_v10, %v1921_v2  ;;  %v1357_v39 = vrot.slane %v6359_v32, 4  ;;  %v2789_v51 = vadd.f32 %v6298_v52, %v2788_v26  ;;  %vm2791_vm5 = vweird.f32 %v6298_v52 }
 0x201   :  { %v2796_v36 = vand.u32 2147483648, %v6261_v1  ;;  %v1804_v9 = vadd.f32 %v1803_v47, %v1802_v17  ;;  %v2201_v49 = vmul.f32 %v6369_v12, %v6312_v42  ;;  %4293 = vrcp.f32 %v6367_v25 }
 0x202   :  { %v1927_v18 = vrot.slane %v6361_v40, 4  ;;  %v1236_v0 = vmax.f32 %v1234_v44, %v1235_v59  ;;  %4295 = vrcp.f32 %v6372_v19  ;;  %vm2790_vm6 = vweird.f32 %v6261_v1 }
 0x203   :  { %v2217_v2 = vsub.f32 1.0, %v2216_v63  ;;  %v2226_v26 = vand.u32 2147483648, %v6295_v58  ;;  %v6390_v15 = vpop.eup %4289  ;;  %vm6392_vm7 = vmor %vm2790_vm6, %vm2791_vm5  ;;  %vm6396_vm8 = vcmp.eq.f32.partialorder %v2794_v54, 8.507059e+37  ;;  %v6400_v47 = vadd.f32 %v2033_v43, %v2032_v16 }
 0x204   :  { %v1923_v44 = vrot.slane %v1922_v31, 2  ;;  %v1238_v59 = vmax.f32 %v6354_v14, %v1237_v62  ;;  %v6405_v1 = vpop.eup %4291  ;;  %v2793_v63 = vsel %vm6392_vm7, %v6298_v52, %v2789_v51  ;;  %v2797_v8 = vor.u32 1.1754944e-38, %v2796_v36 }
 0x205   :  { %v1805_v35 = vrot.slane %v1804_v9, 1  ;;  %v1358_v54 = vmax.f32 %v6359_v32, %v1357_v39  ;;  %vm2220_vm9 = vweird.f32 %v6295_v58  ;;  %v2202_v20 = vsub.f32 1.0, %v2201_v49 }
 0x206   :  { %v1928_v16 = vadd.f32 %v6361_v40, %v1927_v18  ;;  %v1585_v43 = vsub.f32 %v6264_v27, %v1236_v0  ;;  %v2218_v62 = vmul.f32 %v6349_v13, %v2217_v2  ;;  %v2224_v3 = vand.u32 2147483647, %v6295_v58 }
 0x207   :  { %v6416_v22 = vor.u32 1.1754944e-38, %v2226_v26  ;;  %v2211_v38 = vand.u32 2147483648, %v6312_v42  ;;  %v6419_v52 = vpop.eup %4293  ;;  %v2798_v36 = vsel %vm6396_vm8, %v2797_v8, %v2793_v63  ;;  %4297 = vrcp.f32 %v6400_v47  ;;  %v6439_v63 = vpop.xlane.xlu1 %1088 }
 0x208   :  { %v1924_v39 = vadd.f32 %v1923_v44, %v1922_v31  ;;  %v1239_v51 = vrot.slane %v1238_v59, 2  ;;  %v6424_v18 = vpop.eup %4295  ;;  %vm2205_vm10 = vweird.f32 %v6312_v42  ;;  %v2526_v27 = vand.u32 2147483648, %v6367_v25 }
 0x209   :  { %v6428_v0 = vadd.f32 %v1805_v35, %v1804_v9  ;;  %v1359_v49 = vrot.slane %v1358_v54, 2  ;;  %v2203_v2 = vmul.f32 %v6369_v12, %v2202_v20  ;;  %v2209_v26 = vand.u32 2147483647, %v6312_v42 }
 0x20a   :  { %v1929_v55 = vrot.slane %v1928_v16, 2  ;;  %v1655_v17 = vmul.f32 1.442695, %v1585_v43  ;;  %v2799_v8 = vmul.f32 %v6188_v61, %v2798_v36  ;;  %v6434_v31 = vadd.f32 %v6349_v13, %v2218_v62 }
 0x20b   :  { %8628 = vst [vmem:[#allocation88_spill] sm:$0xff] %v6428_v0  ;;  %vm2221_vm11 = vweird.f32 %v6349_v13  ;;  %v2516_v44 = vmul.f32 %v6419_v52, %v6367_v25  ;;  %v2212_v35 = vor.u32 1.1754944e-38, %v2211_v38  ;;  %v2524_v9 = vand.u32 2147483647, %v6367_v25 }
 0x20c   :  { %v1925_v20 = vrot.slane %v1924_v39, 1  ;;  %v1240_v6 = vmax.f32 %v1238_v59, %v1239_v51  ;;  %vm2206_vm12 = vweird.f32 %v6369_v12  ;;  %v6443_v43 = vor.u32 1.1754944e-38, %v2526_v27  ;;  %vm6450_vm13 = vmor %vm2220_vm9, %vm2221_vm11  ;;  %v6457_v27 = vpop.xlane.xlu2 %1091 }
 0x20d   :  { %4299 = vrcp.f32 %v6428_v0  ;;  %v1360_v61 = vmax.f32 %v1358_v54, %v1359_v49  ;;  %v6446_v62 = vpop.eup %4297  ;;  %v2204_v38 = vadd.f32 %v6369_v12, %v2203_v2  ;;  %v2811_v59 = vand.u32 2147483648, %v6400_v47  ;;  %vm6481_vm1 = vmor %vm2205_vm10, %vm2206_vm12 }
 0x20e   :  { %v1930_v51 = vadd.f32 %v1929_v55, %v1928_v16  ;;  %v6460_v28 = vmul.f32 %v2799_v8, %v8631_v50  ;;  %v2223_v58 = vsel %vm6450_vm13, %v6349_v13, %v6434_v31  ;;  %vm6466_vm14 = vcmp.eq.f32.partialorder %v2224_v3, 8.507059e+37 }
 0x20f   :  { %vm6470_vm15 = vcmp.eq.f32.partialorder %v2209_v26, 8.507059e+37  ;;  %v2517_v2 = vsub.f32 1.0, %v2516_v44  ;;  %4301 = vpow2.f32 %v1655_v17  ;;  %v6474_v55 = vadd.f32 %v1925_v20, %v1924_v39  ;;  %v6491_v17 = vpop.xlane.xlu0 %1031  ;;  %v6504_v45 = vpop.xlane.xlu1 %1034 }
 0x210   :  { %8632 = vst [vmem:[#allocation22_spill] sm:$0xff] %v6460_v28  ;;  %v1241_v16 = vrot.slane %v1240_v6, 1  ;;  %v1361_v50 = vrot.slane %v1360_v61, 1  ;;  %v1243_v8 = vrot.slane %v6403_v21, 4  ;;  %vm2520_vm2 = vweird.f32 %v6367_v25 }
 0x211   :  { %vm2521_vm3 = vweird.f32 %v6419_v52  ;;  %v2801_v13 = vmul.f32 %v6446_v62, %v6400_v47  ;;  %v1363_v39 = vrot.slane %v6439_v63, 4  ;;  %v1369_v26 = vrot.slane %v6457_v27, 4 }
 0x212   :  { %v2208_v42 = vsel %vm6481_vm1, %v6369_v12, %v2204_v38  ;;  %v6496_v31 = vor.u32 1.1754944e-38, %v2811_v59  ;;  %v1931_v44 = vrot.slane %v1930_v51, 1  ;;  %v1362_v20 = vmax.f32 %v1360_v61, %v1361_v50  ;;  %vm6537_vm5 = vmor %vm2520_vm2, %vm2521_vm3 }
 0x213   :  { %v6498_v36 = vpop.eup %4299  ;;  %v2518_v5 = vmul.f32 %v6419_v52, %v2517_v2  ;;  %v1244_v28 = vmax.f32 %v6403_v21, %v1243_v8  ;;  %v1364_v53 = vmax.f32 %v6439_v63, %v1363_v39  ;;  %v1370_v30 = vmax.f32 %v6457_v27, %v1369_v26 }
 0x214   :  { %8639 = vst [vmem:[#allocation89_spill] sm:$0xff] %v6498_v36  ;;  %4303 = vrcp.f32 %v6474_v55  ;;  %v1242_v3 = vmax.f32 %v1240_v6, %v1241_v16  ;;  %v1606_v12 = vsub.f32 %v6359_v32, %v1362_v20  ;;  %v1249_v38 = vrot.slane %v6491_v17, 4 }
 0x215   :  { %v6509_v61 = vpop.eup %4301  ;;  %vm6511_vm4 = vcmp.eq.f32.partialorder %v2524_v9, 8.507059e+37  ;;  %v2802_v2 = vsub.f32 1.0, %v2801_v13  ;;  %v1245_v50 = vrot.slane %v1244_v28, 2  ;;  %v1365_v8 = vrot.slane %v1364_v53, 2 }
 0x216   :  { %v1371_v39 = vrot.slane %v1370_v30, 2  ;;  %v6515_v26 = vadd.f32 %v1931_v44, %v1930_v51  ;;  %v1697_v34 = vmul.f32 1.442695, %v1606_v12  ;;  %v1250_v36 = vmax.f32 %v6491_v17, %v1249_v38 }
 0x217   :  { %v1255_v6 = vrot.slane %v6504_v45, 4  ;;  %v2519_v32 = vadd.f32 %v6419_v52, %v2518_v5  ;;  %v1246_v16 = vmax.f32 %v1244_v28, %v1245_v50  ;;  %v1366_v20 = vmax.f32 %v1364_v53, %v1365_v8  ;;  %v6548_v25 = vpop.xlane.xlu0 %1094 }
 0x218   :  { %v1372_v0 = vmax.f32 %v1370_v30, %v1371_v39  ;;  %v6523_v9 = vsel %vm6466_vm14, %v6416_v22, %v2223_v58  ;;  %v6527_v13 = vsel %vm6470_vm15, %v2212_v35, %v2208_v42  ;;  %v1586_v51 = vsub.f32 %v6354_v14, %v1242_v3 }
 0x219   :  { %4305 = vpow2.f32 %v1697_v34  ;;  %v1807_v44 = vrot.slane %v6509_v61, 4  ;;  %v1247_v12 = vrot.slane %v1246_v16, 1  ;;  %v1367_v38 = vrot.slane %v1366_v20, 1 }
 0x21a   :  { %v1373_v5 = vrot.slane %v1372_v0, 1  ;;  %v6531_v28 = vpop.eup %4303  ;;  %v2803_v53 = vmul.f32 %v6446_v62, %v2802_v2  ;;  %4307 = vrcp.f32 %v6515_v26  ;;  %v1251_v34 = vrot.slane %v1250_v36, 2 }
 0x21b   :  { %v1256_v14 = vmax.f32 %v6504_v45, %v1255_v6  ;;  %v2523_v30 = vsel %vm6537_vm5, %v6419_v52, %v2519_v32  ;;  %v1248_v58 = vmax.f32 %v1246_v16, %v1247_v12  ;;  %v1368_v54 = vmax.f32 %v1366_v20, %v1367_v38 }
 0x21c   :  { %v1657_v42 = vmul.f32 1.442695, %v1586_v51  ;;  %v1374_v3 = vmax.f32 %v1372_v0, %v1373_v5  ;;  %v1252_v2 = vmax.f32 %v1250_v36, %v1251_v34  ;;  %v2531_v50 = vmul.f32 %v6531_v28, %v6474_v55  ;;  %v6571_v5 = vpop.xlane.xlu2 %1037 }
 0x21d   :  { %v1587_v8 = vsub.f32 %v6403_v21, %v1248_v58  ;;  %v1607_v39 = vsub.f32 %v6439_v63, %v1368_v54  ;;  %v1257_v6 = vrot.slane %v1256_v14, 2  ;;  %v2528_v32 = vsel %vm6511_vm4, %v6443_v43, %v2523_v30 }
 0x21e   :  { %v6561_v16 = vadd.f32 %v6509_v61, %v1807_v44  ;;  %v1253_v20 = vrot.slane %v1252_v2, 1  ;;  %v1375_v0 = vrot.slane %v6548_v25, 4  ;;  %v6568_v63 = vadd.f32 %v6446_v62, %v2803_v53 }
 0x21f   :  { %v6555_v52 = vpop.eup %4305  ;;  %v1659_v51 = vmul.f32 1.442695, %v1587_v8  ;;  %v1699_v12 = vmul.f32 1.442695, %v1607_v39  ;;  %v1258_v21 = vmax.f32 %v1256_v14, %v1257_v6  ;;  %4309 = vpow2.f32 %v1657_v42 }
 0x220   :  { %v1933_v36 = vrot.slane %v6555_v52, 4  ;;  %v6565_v38 = vpop.eup %4307  ;;  %v1608_v59 = vsub.f32 %v6457_v27, %v1374_v3  ;;  %v1254_v43 = vmax.f32 %v1252_v2, %v1253_v20  ;;  %v2532_v44 = vsub.f32 1.0, %v2531_v50 }
 0x221   :  { %4311 = vpow2.f32 %v1659_v51  ;;  %v1259_v34 = vrot.slane %v1258_v21, 1  ;;  %v6575_v30 = vmul.f32 %v6253_v46, %v2528_v32  ;;  %v1376_v53 = vmax.f32 %v6548_v25, %v1375_v0 }
 0x222   :  { %v1934_v22 = vadd.f32 %v6555_v52, %v1933_v36  ;;  %4313 = vpow2.f32 %v1699_v12  ;;  %v1588_v14 = vsub.f32 %v6491_v17, %v1254_v43  ;;  %v2546_v58 = vmul.f32 %v6565_v38, %v6515_v26 }
 0x223   :  { %v1260_v54 = vmax.f32 %v1258_v21, %v1259_v34  ;;  %v1261_v42 = vrot.slane %v6571_v5, 4  ;;  %vm2535_vm6 = vweird.f32 %v6474_v55  ;;  %v1701_v3 = vmul.f32 1.442695, %v1608_v59 }
 0x224   :  { %v1935_v27 = vrot.slane %v1934_v22, 2  ;;  %v1661_v2 = vmul.f32 1.442695, %v1588_v14  ;;  %v1377_v50 = vrot.slane %v1376_v53, 2  ;;  %v2533_v46 = vmul.f32 %v6531_v28, %v2532_v44 }
 0x225   :  { %v1589_v39 = vsub.f32 %v6504_v45, %v1260_v54  ;;  %v1262_v17 = vmax.f32 %v6571_v5, %v1261_v42  ;;  %v6586_v6 = vpop.eup %4309  ;;  %vm2806_vm7 = vweird.f32 %v6446_v62  ;;  %v2539_v32 = vand.u32 2147483647, %v6474_v55  ;;  %v6594_v45 = vpop.xlane.xlu1 %1142 }
 0x226   :  { %v1936_v8 = vadd.f32 %v1935_v27, %v1934_v22  ;;  %8644 = vst [vmem:[#allocation90_spill] sm:$0xff] %v6586_v6  ;;  %v2541_v20 = vand.u32 2147483648, %v6474_v55  ;;  %4315 = vpow2.f32 %v1661_v2  ;;  %v1378_v0 = vmax.f32 %v1376_v53, %v1377_v50 }
 0x227   :  { %v6591_v36 = vpop.eup %4311  ;;  %v2547_v51 = vsub.f32 1.0, %v2546_v58  ;;  %vm2536_vm8 = vweird.f32 %v6531_v28  ;;  %v1663_v12 = vmul.f32 1.442695, %v1589_v39  ;;  %v1263_v21 = vrot.slane %v1262_v17, 2 }
 0x228   :  { %v6596_v59 = vpop.eup %4313  ;;  %vm2805_vm9 = vweird.f32 %v6400_v47  ;;  %v1937_v43 = vrot.slane %v1936_v8, 1  ;;  %v1819_v44 = vrot.slane %v6591_v36, 4  ;;  %4317 = vpow2.f32 %v1701_v3  ;;  %vm6618_vm12 = vmor %vm2535_vm6, %vm2536_vm8 }
 0x229   :  { %v1379_v22 = vrot.slane %v1378_v0, 1  ;;  %v2534_v34 = vadd.f32 %v6531_v28, %v2533_v46  ;;  %v1813_v14 = vrot.slane %v6586_v6, 4  ;;  %v1939_v53 = vrot.slane %v6596_v59, 4  ;;  %vm6652_vm15 = vmor %vm2805_vm9, %vm2806_vm7 }
 0x22a   :  { %v1264_v58 = vmax.f32 %v1262_v17, %v1263_v21  ;;  %vm2550_vm10 = vweird.f32 %v6515_v26  ;;  %v1820_v27 = vadd.f32 %v6591_v36, %v1819_v44  ;;  %4319 = vpow2.f32 %v1663_v12 }
 0x22b   :  { %v1380_v54 = vmax.f32 %v1378_v0, %v1379_v22  ;;  %v1471_v42 = vrot.slane %v6594_v45, 4  ;;  %v2548_v2 = vmul.f32 %v6565_v38, %v2547_v51  ;;  %vm6607_vm11 = vcmp.eq.f32.partialorder %v2539_v32, 8.507059e+37 }
 0x22c   :  { %v2542_v50 = vor.u32 1.1754944e-38, %v2541_v20  ;;  %v1809_v46 = vrot.slane %v6561_v16, 2  ;;  %v6612_v39 = vpop.eup %4315  ;;  %v6622_v0 = vadd.f32 %v1937_v43, %v1936_v8  ;;  %v1821_v51 = vrot.slane %v1820_v27, 2 }
 0x22d   :  { %v1940_v32 = vadd.f32 %v6596_v59, %v1939_v53  ;;  %v1609_v12 = vsub.f32 %v6548_v25, %v1380_v54  ;;  %v2538_v20 = vsel %vm6618_vm12, %v6531_v28, %v2534_v34  ;;  %v1814_v21 = vadd.f32 %v6586_v6, %v1813_v14 }
 0x22e   :  { %v1825_v44 = vrot.slane %v6612_v39, 4  ;;  %v1265_v55 = vrot.slane %v1264_v58, 1  ;;  %v6631_v22 = vpop.eup %4317  ;;  %v8649_v49 = vand.u32 2147483647, %v6400_v47  ;;  %vm2551_vm14 = vweird.f32 %v6565_v38 }
 0x22f   :  { %v1822_v25 = vadd.f32 %v1821_v51, %v1820_v27  ;;  %v1941_v43 = vrot.slane %v1940_v32, 2  ;;  %v1472_v53 = vmax.f32 %v6594_v45, %v1471_v42  ;;  %v2549_v28 = vadd.f32 %v6565_v38, %v2548_v2  ;;  %vm6668_vm1 = vmor %vm2550_vm10, %vm2551_vm14 }
 0x230   :  { %vm6635_vm13 = vcmp.eq.f32.partialorder %v8649_v49, 8.507059e+37  ;;  %v1826_v34 = vadd.f32 %v6612_v39, %v1825_v44  ;;  %v1703_v14 = vmul.f32 1.442695, %v1609_v12  ;;  %v1266_v54 = vmax.f32 %v1264_v58, %v1265_v55  ;;  %v6643_v17 = vpop.eup %4319  ;;  %v8656_v55 = vld [vmem:[#allocation26_spill] sm:$0xff] }
 0x231   :  { %v2543_v49 = vsel %vm6607_vm11, %v2542_v50, %v2538_v20  ;;  %4321 = vrcp.f32 %v6622_v0  ;;  %v1823_v35 = vrot.slane %v1822_v25, 1  ;;  %v1942_v6 = vadd.f32 %v1941_v43, %v1940_v32 }
 0x232   :  { %v1815_v42 = vrot.slane %v1814_v21, 2  ;;  %v1945_v58 = vrot.slane %v6631_v22, 4  ;;  %v1827_v2 = vrot.slane %v1826_v34, 2  ;;  %v1590_v51 = vsub.f32 %v6571_v5, %v1266_v54 }
 0x233   :  { %v2808_v3 = vsel %vm6652_vm15, %v6446_v62, %v6568_v63  ;;  %v6662_v50 = vadd.f32 %v1823_v35, %v1822_v25  ;;  %v1943_v32 = vrot.slane %v1942_v6, 1  ;;  %v1473_v12 = vrot.slane %v1472_v53, 2 }
 0x234   :  { %v1810_v20 = vadd.f32 %v1809_v46, %v6561_v16  ;;  %v1828_v5 = vadd.f32 %v1827_v2, %v1826_v34  ;;  %v1831_v44 = vrot.slane %v6643_v17, 4  ;;  %4323 = vpow2.f32 %v1703_v14 }
 0x235   :  { %v3139_v62 = vmul.f32 %v6575_v30, %v8656_v55  ;;  %v2553_v35 = vsel %vm6668_vm1, %v6565_v38, %v2549_v28  ;;  %v2544_v63 = vmul.f32 %v6329_v10, %v2543_v49  ;;  %4325 = vrcp.f32 %v6662_v50 }
 0x236   :  { %v1816_v25 = vadd.f32 %v1815_v42, %v1814_v21  ;;  %v6681_v43 = vadd.f32 %v1943_v32, %v1942_v6  ;;  %v1946_v16 = vadd.f32 %v6631_v22, %v1945_v58  ;;  %v1665_v46 = vmul.f32 1.442695, %v1590_v51  ;;  %v8660_v42 = vld [vmem:[#allocation29_spill] sm:$0xff]  ;;  %v6707_v51 = vpop.xlane.xlu0 %1139 }
 0x237   :  { %v6684_v34 = vpop.eup %4321  ;;  %v8657_v14 = vand.u32 2147483647, %v6515_v26  ;;  %v8658_v30 = vand.u32 2147483648, %v6515_v26  ;;  %v1829_v27 = vrot.slane %v1828_v5, 1  ;;  %v1474_v38 = vmax.f32 %v1472_v53, %v1473_v12 }
 0x238   :  { %v2813_v10 = vsel %vm6635_vm13, %v6496_v31, %v2808_v3  ;;  %v1811_v21 = vrot.slane %v1810_v20, 1  ;;  %4327 = vrcp.f32 %v6681_v43  ;;  %v1832_v6 = vadd.f32 %v6643_v17, %v1831_v44 }
 0x239   :  { %vm2555_vm2 = vcmp.eq.f32.partialorder %v8657_v14, 8.507059e+37  ;;  %v2557_v54 = vor.u32 1.1754944e-38, %v8658_v30  ;;  %v6697_v28 = vmul.f32 %v6223_v33, %v6523_v9  ;;  %v6700_v49 = vsel %vm52_vm0, %v3139_v62, 0.0 }
 0x23a   :  { %8659 = vst [vmem:[#allocation26_spill] sm:$0xff] %v6700_v49  ;;  %v3140_v58 = vmul.f32 %v2544_v63, %v8660_v42  ;;  %v6703_v53 = vpop.eup %4323  ;;  %v1817_v2 = vrot.slane %v1816_v25, 1  ;;  %v2561_v31 = vmul.f32 %v6684_v34, %v6622_v0  ;;  %v1947_v8 = vrot.slane %v1946_v16, 2 }
 0x23b   :  { %v2558_v26 = vsel %vm2555_vm2, %v2557_v54, %v2553_v35  ;;  %8661 = vst [vmem:[#allocation29_spill] sm:$0xff] %v6703_v53  ;;  %4329 = vpow2.f32 %v1665_v46  ;;  %v6709_v3 = vpop.eup %4325  ;;  %v6713_v33 = vmul.f32 %v6235_v29, %v6527_v13  ;;  %v6716_v9 = vmul.f32 %v6275_v23, %v2813_v10  ;;  %v8664_v10 = vld [vmem:[#allocation31_spill] sm:$0xff] }
 0x23c   :  { %v6718_v32 = vadd.f32 %v1829_v27, %v1828_v5  ;;  %v1475_v12 = vrot.slane %v1474_v38, 1  ;;  %v2559_v47 = vmul.f32 %v6361_v40, %v2558_v26  ;;  %v6721_v44 = vadd.f32 %v1811_v21, %v1810_v20 }
 0x23d   :  { %8662 = vst [vmem:[#allocation91_spill] sm:$0xff] %v6716_v9  ;;  %v2276_v55 = vmul.f32 %v6709_v3, %v6662_v50  ;;  %v1833_v62 = vrot.slane %v1832_v6, 2  ;;  %v6727_v63 = vsel %vm52_vm0, %v3140_v58, 0.0  ;;  %v1951_v29 = vrot.slane %v6703_v53, 4 }
 0x23e   :  { %8663 = vst [vmem:[#allocation92_spill] sm:$0xff] %v6727_v63  ;;  %v1465_v23 = vrot.slane %v6707_v51, 4  ;;  %v6731_v13 = vpop.eup %4327  ;;  %v6733_v5 = vadd.f32 %v1817_v2, %v1816_v25  ;;  %v2562_v40 = vsub.f32 1.0, %v2561_v31  ;;  %v1948_v46 = vadd.f32 %v1947_v8, %v1946_v16 }
 0x23f   :  { %v2277_v20 = vsub.f32 1.0, %v2276_v55  ;;  %v2576_v14 = vmul.f32 %v6731_v13, %v6681_v43  ;;  %4331 = vrcp.f32 %v6718_v32  ;;  %v1476_v30 = vmax.f32 %v1474_v38, %v1475_v12  ;;  %v6776_v55 = vpop.xlane.xlu2 %1136 }
 0x240   :  { %v6740_v54 = vmul.f32 %v6390_v15, %v6337_v60  ;;  %v6745_v21 = vmul.f32 %v2559_v47, %v8664_v10  ;;  %4333 = vrcp.f32 %v6721_v44  ;;  %v2571_v25 = vand.u32 2147483648, %v6622_v0 }
 0x241   :  { %v6742_v27 = vpop.eup %4329  ;;  %v1834_v16 = vadd.f32 %v1833_v62, %v1832_v6  ;;  %v2569_v42 = vand.u32 2147483647, %v6622_v0  ;;  %v1952_v38 = vadd.f32 %v6703_v53, %v1951_v29  ;;  %v1466_v58 = vmax.f32 %v6707_v51, %v1465_v23 }
 0x242   :  { %8665 = vst [vmem:[#allocation31_spill] sm:$0xff] %v6745_v21  ;;  %4335 = vrcp.f32 %v6733_v5  ;;  %v2563_v2 = vmul.f32 %v6684_v34, %v2562_v40  ;;  %v2278_v31 = vmul.f32 %v6709_v3, %v2277_v20  ;;  %v1949_v8 = vrot.slane %v1948_v46, 1 }
 0x243   :  { %v2577_v12 = vsub.f32 1.0, %v2576_v14  ;;  %v1837_v47 = vrot.slane %v6742_v27, 4  ;;  %v1625_v6 = vsub.f32 %v6594_v45, %v1476_v30  ;;  %vm2565_vm3 = vweird.f32 %v6622_v0 }
 0x244   :  { %v2572_v62 = vor.u32 1.1754944e-38, %v2571_v25  ;;  %v2284_v29 = vand.u32 2147483647, %v6662_v50  ;;  %v1835_v23 = vrot.slane %v1834_v16, 1  ;;  %vm2566_vm4 = vweird.f32 %v6684_v34 }
 0x245   :  { %v6761_v10 = vpop.eup %4331  ;;  %vm6764_vm5 = vcmp.eq.f32.partialorder %v2569_v42, 8.507059e+37  ;;  %v2286_v20 = vand.u32 2147483648, %v6662_v50  ;;  %v1953_v14 = vrot.slane %v1952_v38, 2  ;;  %v1467_v45 = vrot.slane %v1466_v58, 2  ;;  %vm6787_vm8 = vmor %vm2565_vm3, %vm2566_vm4 }
 0x246   :  { %v6769_v30 = vpop.eup %4333  ;;  %v2564_v26 = vadd.f32 %v6684_v34, %v2563_v2  ;;  %v2279_v25 = vadd.f32 %v6709_v3, %v2278_v31  ;;  %vm2281_vm6 = vweird.f32 %v6709_v3  ;;  %v6774_v35 = vadd.f32 %v1949_v8, %v1948_v46 }
 0x247   :  { %vm2280_vm7 = vweird.f32 %v6662_v50  ;;  %v2578_v42 = vmul.f32 %v6731_v13, %v2577_v12  ;;  %v1838_v9 = vadd.f32 %v6742_v27, %v1837_v47  ;;  %v1735_v21 = vmul.f32 1.442695, %v1625_v6 }
 0x248   :  { %v6781_v63 = vpop.eup %4335  ;;  %vm6791_vm9 = vcmp.eq.f32.partialorder %v2284_v29, 8.507059e+37  ;;  %v2584_v50 = vand.u32 2147483647, %v6681_v43  ;;  %v2291_v31 = vmul.f32 %v6761_v10, %v6718_v32  ;;  %v6798_v8 = vadd.f32 %v1835_v23, %v1834_v16  ;;  %vm6800_vm10 = vmor %vm2280_vm7, %vm2281_vm6  ;;  %v6814_v23 = vpop.xlane.xlu1 %1151 }
 0x249   :  { %v2287_v0 = vor.u32 1.1754944e-38, %v2286_v20  ;;  %vm2580_vm11 = vweird.f32 %v6681_v43  ;;  %v1954_v47 = vadd.f32 %v1953_v14, %v1952_v38  ;;  %v1459_v6 = vrot.slane %v6776_v55, 4 }
 0x24a   :  { %v2568_v29 = vsel %vm6787_vm8, %v6684_v34, %v2564_v26  ;;  %v2283_v49 = vsel %vm6800_vm10, %v6709_v3, %v2279_v25  ;;  %v2586_v16 = vand.u32 2147483648, %v6681_v43  ;;  %4337 = vrcp.f32 %v6774_v35 }
 0x24b   :  { %v2579_v20 = vadd.f32 %v6731_v13, %v2578_v42  ;;  %vm2581_vm12 = vweird.f32 %v6731_v13  ;;  %v1839_v38 = vrot.slane %v1838_v9, 2  ;;  %4339 = vpow2.f32 %v1735_v21 }
 0x24c   :  { %vm6818_vm13 = vcmp.eq.f32.partialorder %v2584_v50, 8.507059e+37  ;;  %v2292_v34 = vsub.f32 1.0, %v2291_v31  ;;  %v2301_v26 = vand.u32 2147483648, %v6718_v32  ;;  %4341 = vrcp.f32 %v6798_v8  ;;  %vm6832_vm14 = vmor %vm2580_vm11, %vm2581_vm12  ;;  %v8680_v50 = vld [vmem:[#allocation34_spill] sm:$0xff] }
 0x24d   :  { %v2288_v3 = vsel %vm6791_vm9, %v2287_v0, %v2283_v49  ;;  %v1955_v25 = vrot.slane %v1954_v47, 1  ;;  %v1460_v2 = vmax.f32 %v6776_v55, %v1459_v6  ;;  %v1489_v42 = vrot.slane %v6814_v23, 4 }
 0x24e   :  { %v2573_v21 = vsel %vm6764_vm5, %v2572_v62, %v2568_v29  ;;  %v2587_v31 = vor.u32 1.1754944e-38, %v2586_v16  ;;  %v2316_v12 = vand.u32 2147483648, %v6798_v8  ;;  %v1468_v53 = vmax.f32 %v1466_v58, %v1467_v45 }
 0x24f   :  { %v2583_v49 = vsel %vm6832_vm14, %v6731_v13, %v2579_v20  ;;  %v1840_v46 = vadd.f32 %v1839_v38, %v1838_v9  ;;  %v1461_v0 = vrot.slane %v1460_v2, 2  ;;  %v1490_v6 = vmax.f32 %v6814_v23, %v1489_v42 }
 0x250   :  { %v6841_v40 = vpop.eup %4337  ;;  %v2289_v43 = vmul.f32 %v6591_v36, %v2288_v3  ;;  %v2293_v62 = vmul.f32 %v6761_v10, %v2292_v34  ;;  %vm2295_vm15 = vweird.f32 %v6718_v32  ;;  %v2299_v29 = vand.u32 2147483647, %v6718_v32 }
 0x251   :  { %v6847_v16 = vpop.eup %4339  ;;  %v6850_v58 = vmul.f32 %v6555_v52, %v2573_v21  ;;  %v6852_v13 = vor.u32 1.1754944e-38, %v2301_v26  ;;  %v6855_v45 = vadd.f32 %v1955_v25, %v1954_v47  ;;  %v2588_v36 = vsel %vm6818_vm13, %v2587_v31, %v2583_v49 }
 0x252   :  { %8678 = vst [vmem:[#allocation93_spill] sm:$0xff] %v6847_v16  ;;  %v6857_v20 = vpop.eup %4341  ;;  %vm2296_vm1 = vweird.f32 %v6761_v10  ;;  %v1462_v38 = vmax.f32 %v1460_v2, %v1461_v0  ;;  %v8679_v34 = vsub.f32 1.0, %v6740_v54  ;;  %v6865_v52 = vor.u32 1.1754944e-38, %v2316_v12 }
 0x253   :  { %v1841_v26 = vrot.slane %v1840_v46, 1  ;;  %v1469_v42 = vrot.slane %v1468_v53, 1  ;;  %v1491_v21 = vrot.slane %v1490_v6, 2  ;;  %v3123_v47 = vmul.f32 %v2289_v43, %v8680_v50  ;;  %vm6893_vm5 = vmor %vm2295_vm15, %vm2296_vm1 }
 0x254   :  { %v2473_v3 = vmul.f32 %v6390_v15, %v8679_v34  ;;  %v2294_v25 = vadd.f32 %v6761_v10, %v2293_v62  ;;  %v2047_v9 = vrot.slane %v6847_v16, 4  ;;  %v1463_v14 = vrot.slane %v1462_v38, 1 }
 0x255   :  { %v6871_v31 = vmul.f32 %v6596_v59, %v2588_v36  ;;  %v6875_v54 = vmul.f32 %v6857_v20, %v6798_v8  ;;  %4343 = vrcp.f32 %v6855_v45  ;;  %v1492_v2 = vmax.f32 %v1490_v6, %v1491_v21 }
 0x256   :  { %v1464_v12 = vmax.f32 %v1462_v38, %v1463_v14  ;;  %v2474_v49 = vadd.f32 %v6390_v15, %v2473_v3  ;;  %vm2476_vm2 = vweird.f32 %v6390_v15  ;;  %v2486_v0 = vmul.f32 %v6424_v18, %v6372_v19 }
 0x257   :  { %vm6882_vm3 = vcmp.eq.f32.partialorder %v2299_v29, 8.507059e+37  ;;  %v6886_v59 = vadd.f32 %v1841_v26, %v1840_v46  ;;  %v1470_v62 = vmax.f32 %v1468_v53, %v1469_v42  ;;  %v1493_v36 = vrot.slane %v1492_v2, 1 }
 0x258   :  { %vm2475_vm4 = vweird.f32 %v6337_v60  ;;  %v1623_v38 = vsub.f32 %v6776_v55, %v1464_v12  ;;  %v2479_v29 = vand.u32 2147483647, %v6337_v60  ;;  %v2481_v34 = vand.u32 2147483648, %v6337_v60 }
 0x259   :  { %v2487_v46 = vsub.f32 1.0, %v2486_v0  ;;  %v6901_v53 = vsel %vm52_vm0, %v3123_v47, 0.0  ;;  %v2298_v3 = vsel %vm6893_vm5, %v6761_v10, %v2294_v25  ;;  %v2307_v32 = vsub.f32 1.0, %v6875_v54  ;;  %vm6909_vm6 = vmor %vm2475_vm4, %vm2476_vm2 }
 0x25a   :  { %v1494_v26 = vmax.f32 %v1492_v2, %v1493_v36  ;;  %v6914_v55 = vadd.f32 %v6847_v16, %v2047_v9  ;;  %v1731_v60 = vmul.f32 1.442695, %v1623_v38  ;;  %v2478_v21 = vsel %vm6909_vm6, %v6390_v15, %v2474_v49  ;;  %v8687_v38 = vld [vmem:[#allocation13_spill] sm:$0xff] }
 0x25b   :  { %v2496_v50 = vand.u32 2147483648, %v6372_v19  ;;  %v6920_v10 = vpop.eup %4343  ;;  %v2488_v25 = vmul.f32 %v6424_v18, %v2487_v46  ;;  %vm2491_vm7 = vweird.f32 %v6424_v18  ;;  %v2494_v14 = vand.u32 2147483647, %v6372_v19 }
 0x25c   :  { %v1628_v47 = vsub.f32 %v6814_v23, %v1494_v26  ;;  %v1624_v9 = vsub.f32 %v6707_v51, %v1470_v62  ;;  %4345 = vpow2.f32 %v1731_v60  ;;  %vm2480_vm8 = vcmp.eq.f32.partialorder %v2479_v29, 8.507059e+37 }
 0x25d   :  { %v2482_v54 = vor.u32 1.1754944e-38, %v2481_v34  ;;  %v2489_v15 = vadd.f32 %v6424_v18, %v2488_v25  ;;  %vm2490_vm9 = vweird.f32 %v6372_v19  ;;  %v2501_v12 = vmul.f32 %v6405_v1, %v6347_v41 }
 0x25e   :  { %v1741_v2 = vmul.f32 1.442695, %v1628_v47  ;;  %vm2492_vm10 = vmor %vm2490_vm9, %vm2491_vm7  ;;  %v2497_v49 = vor.u32 1.1754944e-38, %v2496_v50  ;;  %v2509_v0 = vand.u32 2147483647, %v6347_v41  ;;  %v2511_v36 = vand.u32 2147483648, %v6347_v41 }
 0x25f   :  { %v2483_v23 = vsel %vm2480_vm8, %v2482_v54, %v2478_v21  ;;  %v2493_v51 = vsel %vm2492_vm10, %v6424_v18, %v2489_v15  ;;  %vm2495_vm11 = vcmp.eq.f32.partialorder %v2494_v14, 8.507059e+37  ;;  %v2502_v62 = vsub.f32 1.0, %v2501_v12  ;;  %v8690_v21 = vld [vmem:[#allocation16_spill] sm:$0xff] }
 0x260   :  { %4347 = vpow2.f32 %v1741_v2  ;;  %v2303_v6 = vsel %vm6882_vm3, %v6852_v13, %v2298_v3  ;;  %v2498_v19 = vsel %vm2495_vm11, %v2497_v49, %v2493_v51  ;;  %v3134_v29 = vmul.f32 %v6341_v11, %v8687_v38 }
 0x261   :  { %4349 = vrcp.f32 %v6886_v59  ;;  %v1733_v34 = vmul.f32 1.442695, %v1624_v9  ;;  %v2484_v46 = vmul.f32 %v6196_v37, %v2483_v23  ;;  %v2503_v26 = vmul.f32 %v6405_v1, %v2502_v62 }
 0x262   :  { %vm2506_vm12 = vweird.f32 %v6405_v1  ;;  %v6943_v18 = vpop.eup %4345  ;;  %vm2505_vm13 = vweird.f32 %v6347_v41  ;;  %vm6946_vm14 = vcmp.eq.f32.partialorder %v2509_v0, 8.507059e+37  ;;  %v2512_v13 = vor.u32 1.1754944e-38, %v2511_v36  ;;  %v8693_v36 = vld [vmem:[#allocation18_spill] sm:$0xff] }
 0x263   :  { %v3305_v3 = vsel %vm52_vm0, %v6026_v57, 0.0  ;;  %v2035_v11 = vrot.slane %v6943_v18, 4  ;;  %v2499_v37 = vmul.f32 %v6239_v56, %v2498_v19  ;;  %v2504_v42 = vadd.f32 %v6405_v1, %v2503_v26  ;;  %vm2507_vm15 = vmor %vm2505_vm13, %vm2506_vm12 }
 0x264   :  { %v3306_v60 = vrot.slane %v3305_v3, 4  ;;  %v3135_v50 = vmul.f32 %v6345_v7, %v8690_v21  ;;  %v8691_v41 = vrot.slane %v5792_v4, 4  ;;  %v8692_v25 = vrot.slane %v5993_v48, 4 }
 0x265   :  { %v3312_v57 = vsel %vm52_vm0, %v3134_v29, 0.0  ;;  %v2036_v56 = vadd.f32 %v6943_v18, %v2035_v11  ;;  %v2508_v54 = vsel %vm2507_vm15, %v6405_v1, %v2504_v42  ;;  %v2304_v7 = vmul.f32 %v6612_v39, %v2303_v6  ;;  %v8694_v6 = vld [vmem:[#allocation21_spill] sm:$0xff] }
 0x266   :  { %v3293_v47 = vadd.f32 %v8691_v41, %v5792_v4  ;;  %v3300_v14 = vadd.f32 %v8692_v25, %v5993_v48  ;;  %v6964_v9 = vpop.eup %4347  ;;  %v3307_v2 = vadd.f32 %v3306_v60, %v3305_v3  ;;  %v3313_v15 = vrot.slane %v3312_v57, 4 }
 0x267   :  { %v6968_v12 = vpop.eup %4349  ;;  %4351 = vpow2.f32 %v1733_v34  ;;  %v2065_v4 = vrot.slane %v6964_v9, 4  ;;  %v2513_v48 = vsel %vm6946_vm14, %v2512_v13, %v2508_v54  ;;  %v2308_v23 = vmul.f32 %v6857_v20, %v2307_v32  ;;  %v8695_v13 = vld [vmem:[#allocation23_spill] sm:$0xff] }
 0x268   :  { %v2037_v49 = vrot.slane %v2036_v56, 2  ;;  %v2514_v0 = vmul.f32 %v6207_v24, %v2513_v48  ;;  %v3136_v51 = vmul.f32 %v2484_v46, %v8693_v36  ;;  %v3301_v62 = vrot.slane %v3300_v14, 2  ;;  %v8697_v36 = vld [vmem:[#allocation36_spill] sm:$0xff] }
 0x269   :  { %v2066_v1 = vadd.f32 %v6964_v9, %v2065_v4  ;;  %v3314_v19 = vadd.f32 %v3313_v15, %v3312_v57  ;;  %v3319_v38 = vsel %vm52_vm0, %v3135_v50, 0.0  ;;  %vm2311_vm1 = vweird.f32 %v6857_v20 }
 0x26a   :  { %v2038_v39 = vadd.f32 %v2037_v49, %v2036_v56  ;;  %v3137_v29 = vmul.f32 %v2499_v37, %v8694_v6  ;;  %v3294_v34 = vrot.slane %v3293_v47, 2  ;;  %v3308_v26 = vrot.slane %v3307_v2, 2 }
 0x26b   :  { %v2049_v32 = vrot.slane %v6914_v55, 2  ;;  %v2067_v43 = vrot.slane %v2066_v1, 2  ;;  %v3138_v24 = vmul.f32 %v2514_v0, %v8695_v13  ;;  %v3320_v3 = vrot.slane %v3319_v38, 4 }
 0x26c   :  { %vm2310_vm2 = vweird.f32 %v6798_v8  ;;  %v2321_v46 = vmul.f32 %v6968_v12, %v6886_v59  ;;  %v2039_v11 = vrot.slane %v2038_v39, 1  ;;  %v3315_v42 = vrot.slane %v3314_v19, 2 }
 0x26d   :  { %v3326_v60 = vsel %vm52_vm0, %v3136_v51, 0.0  ;;  %v6987_v21 = vpop.eup %4351  ;;  %v2068_v37 = vadd.f32 %v2067_v43, %v2066_v1  ;;  %v3302_v50 = vadd.f32 %v3301_v62, %v3300_v14  ;;  %v3321_v41 = vadd.f32 %v3320_v3, %v3319_v38  ;;  %vm7011_vm3 = vmor %vm2310_vm2, %vm2311_vm1 }
 0x26e   :  { %8696 = vst [vmem:[#allocation34_spill] sm:$0xff] %v6987_v21  ;;  %v3327_v25 = vrot.slane %v3326_v60, 4  ;;  %v6989_v57 = vadd.f32 %v2039_v11, %v2038_v39  ;;  %v3295_v56 = vadd.f32 %v3294_v34, %v3293_v47  ;;  %v3309_v54 = vadd.f32 %v3308_v26, %v3307_v2 }
 0x26f   :  { %v3333_v15 = vsel %vm52_vm0, %v3137_v29, 0.0  ;;  %v2069_v4 = vrot.slane %v2068_v37, 1  ;;  %v3322_v48 = vrot.slane %v3321_v41, 2  ;;  %v3340_v0 = vsel %vm52_vm0, %v3138_v24, 0.0 }
 0x270   :  { %v3328_v49 = vadd.f32 %v3327_v25, %v3326_v60  ;;  %v6994_v6 = vmul.f32 %v2304_v7, %v8697_v36  ;;  %v2331_v51 = vand.u32 2147483648, %v6886_v59  ;;  %v2041_v14 = vrot.slane %v6987_v21, 4 }
 0x271   :  { %v3316_v1 = vadd.f32 %v3315_v42, %v3314_v19  ;;  %v6998_v62 = vadd.f32 %v2069_v4, %v2068_v37  ;;  %v3303_v38 = vrot.slane %v3302_v50, 1  ;;  %v3323_v47 = vadd.f32 %v3322_v48, %v3321_v41 }
 0x272   :  { %v3329_v2 = vrot.slane %v3328_v49, 2  ;;  %v7001_v39 = vadd.f32 %v6857_v20, %v2308_v23  ;;  %4353 = vrcp.f32 %v6989_v57  ;;  %v3334_v29 = vrot.slane %v3333_v15, 4 }
 0x273   :  { %v3341_v34 = vrot.slane %v3340_v0, 4  ;;  %v2322_v26 = vsub.f32 1.0, %v2321_v46  ;;  %v7005_v7 = vadd.f32 %v2049_v32, %v6914_v55  ;;  %v3296_v43 = vrot.slane %v3295_v56, 1 }
 0x274   :  { %v3310_v13 = vrot.slane %v3309_v54, 1  ;;  %v3317_v24 = vrot.slane %v3316_v1, 1  ;;  %v3330_v19 = vadd.f32 %v3329_v2, %v3328_v49  ;;  %v3335_v3 = vadd.f32 %v3334_v29, %v3333_v15 }
 0x275   :  { %v3342_v11 = vadd.f32 %v3341_v34, %v3340_v0  ;;  %v2042_v42 = vadd.f32 %v6987_v21, %v2041_v14  ;;  %4355 = vrcp.f32 %v6998_v62  ;;  %v3304_v55 = vadd.f32 %v3303_v38, %v3302_v50  ;;  %v7031_v14 = vpop.xlane.xlu0 %1148 }
 0x276   :  { %v3324_v32 = vrot.slane %v3323_v47, 1  ;;  %v2313_v46 = vsel %vm7011_vm3, %v6857_v20, %v7001_v39  ;;  %v3331_v60 = vrot.slane %v3330_v19, 1  ;;  %v3336_v37 = vrot.slane %v3335_v3, 2 }
 0x277   :  { %v3343_v41 = vrot.slane %v3342_v11, 2  ;;  %vm2326_vm4 = vweird.f32 %v6968_v12  ;;  %v2051_v25 = vrot.slane %v7005_v7, 1  ;;  %v3297_v15 = vadd.f32 %v3296_v43, %v3295_v56 }
 0x278   :  { %v3311_v4 = vadd.f32 %v3310_v13, %v3309_v54  ;;  %v7023_v48 = vpop.eup %4353  ;;  %v8700_v49 = vand.u32 2147483647, %v6798_v8  ;;  %v3318_v0 = vadd.f32 %v3317_v24, %v3316_v1  ;;  %v3337_v36 = vadd.f32 %v3336_v37, %v3335_v3 }
 0x279   :  { %v3344_v20 = vadd.f32 %v3343_v41, %v3342_v11  ;;  %vm3699_vm6 = vcmask 1041409   ;;  %v2323_v38 = vmul.f32 %v6968_v12, %v2322_v26  ;;  %v2043_v2 = vrot.slane %v2042_v42, 2 }
 0x27a   :  { %vm7027_vm5 = vcmp.eq.f32.partialorder %v8700_v49, 8.507059e+37  ;;  %v3325_v39 = vadd.f32 %v3324_v32, %v3323_v47  ;;  %v3720_v56 = vsel %vm3699_vm6, %v3304_v55, %v3297_v15  ;;  %v3332_v54 = vadd.f32 %v3331_v60, %v3330_v19  ;;  %v8703_v49 = vld [vmem:[#allocation88_spill] sm:$0xff] }
 0x27b   :  { %v3338_v29 = vrot.slane %v3337_v36, 1  ;;  %v3345_v34 = vrot.slane %v3344_v20, 1  ;;  %vm3701_vm7 = vcmask 1042434   ;;  %v7035_v8 = vpop.eup %4355  ;;  %v2816_v1 = vmul.f32 %v7023_v48, %v6989_v57 }
 0x27c   :  { %vm3703_vm8 = vcmask 1043459   ;;  %v3721_v43 = vsel %vm3701_vm7, %v3311_v4, %v3720_v56  ;;  %v1483_v13 = vrot.slane %v7031_v14, 4  ;;  %vm3705_vm9 = vcmask 1044484  }
 0x27d   :  { %v3339_v24 = vadd.f32 %v3338_v29, %v3337_v36  ;;  %v3346_v26 = vadd.f32 %v3345_v34, %v3344_v20  ;;  %v3722_v47 = vsel %vm3703_vm8, %v3318_v0, %v3721_v43  ;;  %v2324_v19 = vadd.f32 %v6968_v12, %v2323_v38  ;;  %v8704_v0 = vld [vmem:[#allocation89_spill] sm:$0xff] }
 0x27e   :  { %vm8466_vm10 = vcmask 1045509   ;;  %v3723_v3 = vsel %vm3705_vm9, %v3325_v39, %v3722_v47  ;;  %v1484_v11 = vmax.f32 %v7031_v14, %v1483_v13  ;;  %v2044_v23 = vadd.f32 %v2043_v2, %v2042_v42 }
 0x27f   :  { %v2891_v55 = vmul.f32 %v7035_v8, %v6998_v62  ;;  %vm8464_vm11 = vcmask 1046534   ;;  %v3724_v32 = vsel %vm8466_vm10, %v3332_v54, %v3723_v3  ;;  %v2817_v60 = vsub.f32 1.0, %v2816_v1 }
 0x280   :  { %vm8465_vm12 = vcmask 1047559   ;;  %v3725_v37 = vsel %vm8464_vm11, %v3339_v24, %v3724_v32  ;;  %v1485_v41 = vrot.slane %v1484_v11, 2  ;;  %vm2325_vm13 = vweird.f32 %v6886_v59 }
 0x281   :  { %v2329_v15 = vand.u32 2147483647, %v6886_v59  ;;  %v3726_v4 = vsel %vm8465_vm12, %v3346_v26, %v3725_v37  ;;  %v2231_v42 = vmul.f32 %v8704_v0, %v8703_v49  ;;  %v7056_v36 = vsel %vm52_vm0, %v6994_v6, 0.0  ;;  %vm7063_vm14 = vmor %vm2325_vm13, %vm2326_vm4  ;;  %v8713_v37 = vld [vmem:[#allocation20_spill] sm:$0xff] }
 0x282   :  { %v2318_v20 = vsel %vm7027_vm5, %v6865_v52, %v2313_v46  ;;  %v7068_v2 = vadd.f32 %v2051_v25, %v7005_v7  ;;  %3766 = vrot.lane.b32.xlu0 %v3726_v4, %s4458_s7  ;;  %v1486_v39 = vmax.f32 %v1484_v11, %v1485_v41  ;;  %v2328_v6 = vsel %vm7063_vm14, %v6968_v12, %v2324_v19  ;;  %v8707_v52 = vld [vmem:[#allocation17_spill] sm:$0xff]  ;;  %v8709_v19 = vld [vmem:[#allocation87_spill] sm:$0xff] }
 0x283   :  { %v2045_v56 = vrot.slane %v2044_v23, 1  ;;  %v2892_v50 = vsub.f32 1.0, %v2891_v55  ;;  %v8708_v46 = vrot.slane %v8707_v52, 4  ;;  %v2332_v7 = vor.u32 1.1754944e-38, %v2331_v51 }
 0x284   :  { %v2818_v25 = vmul.f32 %v7023_v48, %v2817_v60  ;;  %v1487_v34 = vrot.slane %v1486_v39, 1  ;;  %vm2330_vm15 = vcmp.eq.f32.partialorder %v2329_v15, 8.507059e+37  ;;  %v2824_v43 = vand.u32 2147483647, %v6989_v57 }
 0x285   :  { %v3181_v54 = vadd.f32 %v8708_v46, %v8707_v52  ;;  %v2232_v12 = vsub.f32 1.0, %v2231_v42  ;;  %v7084_v13 = vmul.f32 %v6643_v17, %v2318_v20  ;;  %v7086_v24 = vsel %vm2330_vm15, %v2332_v7, %v2328_v6 }
 0x286   :  { %4357 = vrcp.f32 %v7068_v2  ;;  %v1488_v26 = vmax.f32 %v1486_v39, %v1487_v34  ;;  %v7089_v47 = vadd.f32 %v2045_v56, %v2044_v23  ;;  %v2893_v59 = vmul.f32 %v7035_v8, %v2892_v50 }
 0x287   :  { %v3182_v51 = vrot.slane %v3181_v54, 2  ;;  %v8710_v3 = vrot.slane %v8709_v19, 4  ;;  %v2819_v55 = vadd.f32 %v7023_v48, %v2818_v25  ;;  %vm2820_vm1 = vweird.f32 %v6989_v57 }
 0x288   :  { %vm2821_vm2 = vweird.f32 %v7023_v48  ;;  %v1627_v17 = vsub.f32 %v7031_v14, %v1488_v26  ;;  %vm7099_vm3 = vcmp.eq.f32.partialorder %v2824_v43, 8.507059e+37  ;;  %v2826_v23 = vand.u32 2147483648, %v6989_v57 }
 0x289   :  { %v3188_v11 = vadd.f32 %v8710_v3, %v8709_v19  ;;  %v2233_v60 = vmul.f32 %v8704_v0, %v2232_v12  ;;  %v3193_v41 = vsel %vm52_vm0, %v8713_v37, 0.0  ;;  %vm2895_vm4 = vweird.f32 %v6998_v62  ;;  %vm7110_vm5 = vmor %vm2820_vm1, %vm2821_vm2 }
 0x28a   :  { %v2899_v15 = vand.u32 2147483647, %v6998_v62  ;;  %v2901_v4 = vand.u32 2147483648, %v6998_v62  ;;  %v1739_v42 = vmul.f32 1.442695, %v1627_v17  ;;  %v2894_v20 = vadd.f32 %v7035_v8, %v2893_v59 }
 0x28b   :  { %vm2896_vm13 = vweird.f32 %v7035_v8  ;;  %v3183_v57 = vadd.f32 %v3182_v51, %v3181_v54  ;;  %v3189_v38 = vrot.slane %v3188_v11, 2  ;;  %v2823_v6 = vsel %vm7110_vm5, %v7023_v48, %v2819_v55  ;;  %v8723_v55 = vld [vmem:[#allocation24_spill] sm:$0xff]  ;;  %v8726_v54 = vld [vmem:[#allocation25_spill] sm:$0xff] }
 0x28c   :  { %v7116_v39 = vpop.eup %4357  ;;  %4359 = vpow2.f32 %v1739_v42  ;;  %v2246_v56 = vmul.f32 %v6769_v30, %v6721_v44  ;;  %v3194_v50 = vrot.slane %v3193_v41, 4  ;;  %v2234_v52 = vadd.f32 %v8704_v0, %v2233_v60  ;;  %vm7127_vm15 = vmor %vm2895_vm4, %vm2896_vm13 }
 0x28d   :  { %8716 = vst [vmem:[#allocation13_spill] sm:$0xff] %v7116_v39  ;;  %vm2236_vm14 = vweird.f32 %v8704_v0  ;;  %v3184_v46 = vrot.slane %v3183_v57, 1  ;;  %v3190_v7 = vadd.f32 %v3189_v38, %v3188_v11  ;;  %v2827_v25 = vor.u32 1.1754944e-38, %v2826_v23 }
 0x28e   :  { %vm7131_vm1 = vcmp.eq.f32.partialorder %v2899_v15, 8.507059e+37  ;;  %v2241_v34 = vand.u32 2147483648, %v8703_v49  ;;  %v3195_v43 = vadd.f32 %v3194_v50, %v3193_v41  ;;  %v2898_v12 = vsel %vm7127_vm15, %v7035_v8, %v2894_v20 }
 0x28f   :  { %vm2235_vm2 = vweird.f32 %v8703_v49  ;;  %v2239_v26 = vand.u32 2147483647, %v8703_v49  ;;  %v3191_v62 = vrot.slane %v3190_v7, 1  ;;  %v7143_v59 = vsel %vm7099_vm3, %v2827_v25, %v2823_v6  ;;  %v7168_v6 = vpop.xlane.xlu2 %1145  ;;  %v7177_v25 = vpop.xlane.xlu0 %1157 }
 0x290   :  { %v2902_v51 = vor.u32 1.1754944e-38, %v2901_v4  ;;  %vm7145_vm4 = vmor %vm2235_vm2, %vm2236_vm14  ;;  %v2247_v3 = vsub.f32 1.0, %v2246_v56  ;;  %v3196_v11 = vrot.slane %v3195_v43, 2  ;;  %v3118_v17 = vmul.f32 %v6713_v33, %v8723_v55  ;;  %v7170_v56 = vpop.xlane.xlu1 %1097 }
 0x291   :  { %v2238_v8 = vsel %vm7145_vm4, %v8704_v0, %v2234_v52  ;;  %v3185_v49 = vadd.f32 %v3184_v46, %v3183_v57  ;;  %v3192_v23 = vadd.f32 %v3191_v62, %v3190_v7  ;;  %v2242_v37 = vor.u32 1.1754944e-38, %v2241_v34 }
 0x292   :  { %v7154_v60 = vpop.eup %4359  ;;  %v2903_v32 = vsel %vm7131_vm1, %v2902_v51, %v2898_v12  ;;  %v2254_v41 = vand.u32 2147483647, %v6721_v44  ;;  %v3197_v15 = vadd.f32 %v3196_v11, %v3195_v43  ;;  %vm2240_vm3 = vcmp.eq.f32.partialorder %v2239_v26, 8.507059e+37  ;;  %v8727_v12 = vld [vmem:[#allocation15_spill] sm:$0xff] }
 0x293   :  { %v2059_v4 = vrot.slane %v7154_v60, 4  ;;  %vm2250_vm5 = vweird.f32 %v6721_v44  ;;  %v3700_v0 = vsel %vm3699_vm6, %v3192_v23, %v3185_v49  ;;  %v2243_v42 = vsel %vm2240_vm3, %v2242_v37, %v2238_v8 }
 0x294   :  { %v2248_v33 = vmul.f32 %v6769_v30, %v2247_v3  ;;  %v2256_v14 = vand.u32 2147483648, %v6721_v44  ;;  %v3198_v20 = vrot.slane %v3197_v15, 1  ;;  %v7165_v57 = vmul.f32 %v6964_v9, %v2903_v32 }
 0x295   :  { %v2060_v38 = vadd.f32 %v7154_v60, %v2059_v4  ;;  %v2261_v50 = vmul.f32 %v6781_v63, %v6733_v5  ;;  %v3200_v52 = vsel %vm52_vm0, %v3118_v17, 0.0  ;;  %v1477_v46 = vrot.slane %v7168_v6, 4 }
 0x296   :  { %v1381_v7 = vrot.slane %v7170_v56, 4  ;;  %vm2251_vm13 = vweird.f32 %v6769_v30  ;;  %vm7180_vm14 = vcmp.eq.f32.partialorder %v2254_v41, 8.507059e+37  ;;  %v3119_v48 = vmul.f32 %v6697_v28, %v8726_v54 }
 0x297   :  { %v2061_v34 = vrot.slane %v2060_v38, 2  ;;  %v1501_v43 = vrot.slane %v7177_v25, 4  ;;  %v2244_v26 = vmul.f32 %v8727_v12, %v2243_v42  ;;  %v3199_v62 = vadd.f32 %v3198_v20, %v3197_v15  ;;  %vm7198_vm15 = vmor %vm2250_vm5, %vm2251_vm13  ;;  %v8730_v42 = vld [vmem:[#allocation28_spill] sm:$0xff]  ;;  %v7210_v44 = vpop.xlane.xlu2 %1154 }
 0x298   :  { %v1478_v51 = vmax.f32 %v7168_v6, %v1477_v46  ;;  %v1382_v19 = vmax.f32 %v7170_v56, %v1381_v7  ;;  %v2249_v3 = vadd.f32 %v6769_v30, %v2248_v33  ;;  %v3201_v11 = vrot.slane %v3200_v52, 4  ;;  %v7212_v54 = vpop.xlane.xlu1 %1160 }
 0x299   :  { %v2062_v8 = vadd.f32 %v2061_v34, %v2060_v38  ;;  %v1502_v55 = vmax.f32 %v7177_v25, %v1501_v43  ;;  %v2257_v17 = vor.u32 1.1754944e-38, %v2256_v14  ;;  %v2262_v49 = vsub.f32 1.0, %v2261_v50 }
 0x29a   :  { %v1479_v23 = vrot.slane %v1478_v51, 2  ;;  %v1383_v28 = vrot.slane %v1382_v19, 2  ;;  %v2269_v32 = vand.u32 2147483647, %v6733_v5  ;;  %v3207_v37 = vsel %vm52_vm0, %v3119_v48, 0.0 }
 0x29b   :  { %v2063_v41 = vrot.slane %v2062_v8, 1  ;;  %v1503_v15 = vrot.slane %v1502_v55, 2  ;;  %vm2265_vm1 = vweird.f32 %v6733_v5  ;;  %v3120_v33 = vmul.f32 %v2244_v26, %v8730_v42 }
 0x29c   :  { %v7205_v14 = vsel %vm3701_vm7, %v3199_v62, %v3700_v0  ;;  %v1480_v20 = vmax.f32 %v1478_v51, %v1479_v23  ;;  %v1384_v38 = vmax.f32 %v1382_v19, %v1383_v28  ;;  %v2253_v50 = vsel %vm7198_vm15, %v6769_v30, %v2249_v3  ;;  %v7218_v51 = vpop.xlane.xlu0 %1166 }
 0x29d   :  { %v3202_v46 = vadd.f32 %v3201_v11, %v3200_v52  ;;  %v1504_v7 = vmax.f32 %v1502_v55, %v1503_v15  ;;  %v2263_v48 = vmul.f32 %v6781_v63, %v2262_v49  ;;  %v2271_v34 = vand.u32 2147483648, %v6733_v5 }
 0x29e   :  { %v3208_v43 = vrot.slane %v3207_v37, 4  ;;  %v1481_v12 = vrot.slane %v1480_v20, 1  ;;  %v1385_v0 = vrot.slane %v1384_v38, 1  ;;  %v1495_v26 = vrot.slane %v7210_v44, 4 }
 0x29f   :  { %v1507_v62 = vrot.slane %v7212_v54, 4  ;;  %v7220_v30 = vadd.f32 %v2063_v41, %v2062_v8  ;;  %v2258_v52 = vsel %vm7180_vm14, %v2257_v17, %v2253_v50  ;;  %vm2266_vm2 = vweird.f32 %v6781_v63 }
 0x2a0   :  { %vm7225_vm4 = vcmp.eq.f32.partialorder %v2269_v32, 8.507059e+37  ;;  %v3214_v3 = vsel %vm52_vm0, %v3120_v33, 0.0  ;;  %v1482_v11 = vmax.f32 %v1480_v20, %v1481_v12  ;;  %v1505_v55 = vrot.slane %v1504_v7, 1  ;;  %vm7243_vm3 = vmor %vm2265_vm1, %vm2266_vm2 }
 0x2a1   :  { %v1496_v49 = vmax.f32 %v7210_v44, %v1495_v26  ;;  %v3203_v23 = vrot.slane %v3202_v46, 2  ;;  %v1386_v28 = vmax.f32 %v1384_v38, %v1385_v0  ;;  %v1508_v8 = vmax.f32 %v7212_v54, %v1507_v62  ;;  %v7248_v0 = vpop.xlane.xlu2 %1163 }
 0x2a2   :  { %v1519_v41 = vrot.slane %v7218_v51, 4  ;;  %v2264_v9 = vadd.f32 %v6781_v63, %v2263_v48  ;;  %v1626_v17 = vsub.f32 %v7168_v6, %v1482_v11  ;;  %v1506_v32 = vmax.f32 %v1504_v7, %v1505_v55 }
 0x2a3   :  { %v1497_v15 = vrot.slane %v1496_v49, 2  ;;  %v3209_v4 = vadd.f32 %v3208_v43, %v3207_v37  ;;  %4361 = vrcp.f32 %v7220_v30  ;;  %v1509_v42 = vrot.slane %v1508_v8, 2 }
 0x2a4   :  { %v1520_v33 = vmax.f32 %v7218_v51, %v1519_v41  ;;  %v2259_v20 = vmul.f32 %v6509_v61, %v2258_v52  ;;  %v1630_v38 = vsub.f32 %v7177_v25, %v1506_v32  ;;  %v2272_v6 = vor.u32 1.1754944e-38, %v2271_v34  ;;  %v7250_v61 = vpop.xlane.xlu1 %1169 }
 0x2a5   :  { %v1498_v50 = vmax.f32 %v1496_v49, %v1497_v15  ;;  %v3215_v37 = vrot.slane %v3214_v3, 4  ;;  %v1610_v7 = vsub.f32 %v7170_v56, %v1386_v28  ;;  %v1510_v43 = vmax.f32 %v1508_v8, %v1509_v42  ;;  %v7257_v49 = vpop.xlane.xlu0 %1175  ;;  %v8735_v56 = vld [vmem:[#allocation30_spill] sm:$0xff] }
 0x2a6   :  { %v1521_v12 = vrot.slane %v1520_v33, 2  ;;  %v2268_v25 = vsel %vm7243_vm3, %v6781_v63, %v2264_v9  ;;  %v1737_v26 = vmul.f32 1.442695, %v1626_v17  ;;  %v1745_v5 = vmul.f32 1.442695, %v1630_v38 }
 0x2a7   :  { %v7255_v62 = vadd.f32 %v3203_v23, %v3202_v46  ;;  %v3210_v52 = vrot.slane %v3209_v4, 2  ;;  %v1499_v11 = vrot.slane %v1498_v50, 1  ;;  %v1511_v34 = vrot.slane %v1510_v43, 1 }
 0x2a8   :  { %v1522_v55 = vmax.f32 %v1520_v33, %v1521_v12  ;;  %v3121_v28 = vmul.f32 %v2259_v20, %v8735_v56  ;;  %4363 = vpow2.f32 %v1745_v5  ;;  %v1513_v8 = vrot.slane %v7248_v0, 4 }
 0x2a9   :  { %v1525_v41 = vrot.slane %v7250_v61, 4  ;;  %v2273_v63 = vsel %vm7225_vm4, %v2272_v6, %v2268_v25  ;;  %v7264_v9 = vpop.eup %4361  ;;  %v1705_v46 = vmul.f32 1.442695, %v1610_v7  ;;  %v1500_v23 = vmax.f32 %v1498_v50, %v1499_v11 }
 0x2aa   :  { %v1512_v17 = vmax.f32 %v1510_v43, %v1511_v34  ;;  %v1523_v32 = vrot.slane %v1522_v55, 1  ;;  %4365 = vpow2.f32 %v1737_v26  ;;  %v1514_v15 = vmax.f32 %v7248_v0, %v1513_v8  ;;  %v8736_v43 = vld [vmem:[#allocation90_spill] sm:$0xff] }
 0x2ab   :  { %v1526_v42 = vmax.f32 %v7250_v61, %v1525_v41  ;;  %v1537_v33 = vrot.slane %v7257_v49, 4  ;;  %v1629_v20 = vsub.f32 %v7210_v44, %v1500_v23  ;;  %v7271_v19 = vadd.f32 %v3215_v37, %v3214_v3  ;;  %v8737_v37 = vld [vmem:[#allocation45_spill] sm:$0xff] }
 0x2ac   :  { %v1631_v38 = vsub.f32 %v7212_v54, %v1512_v17  ;;  %v1524_v48 = vmax.f32 %v1522_v55, %v1523_v32  ;;  %v2876_v6 = vmul.f32 %v7264_v9, %v7220_v30  ;;  %v1515_v50 = vrot.slane %v1514_v15, 2 }
 0x2ad   :  { %v1527_v7 = vrot.slane %v1526_v42, 2  ;;  %v2274_v12 = vmul.f32 %v8736_v43, %v2273_v63  ;;  %4367 = vpow2.f32 %v1705_v46  ;;  %v1743_v25 = vmul.f32 1.442695, %v1629_v20 }
 0x2ae   :  { %v1747_v26 = vmul.f32 1.442695, %v1631_v38  ;;  %v7276_v5 = vadd.f32 %v3210_v52, %v3209_v4  ;;  %v7278_v11 = vpop.eup %4363  ;;  %v1516_v44 = vmax.f32 %v1514_v15, %v1515_v50  ;;  %v1538_v54 = vmax.f32 %v7257_v49, %v1537_v33  ;;  %v8739_v52 = vld [vmem:[#allocation32_spill] sm:$0xff] }
 0x2af   :  { %v1528_v34 = vmax.f32 %v1526_v42, %v1527_v7  ;;  %v3221_v3 = vsel %vm52_vm0, %v3121_v28, 0.0  ;;  %v7284_v55 = vmul.f32 %v7165_v57, %v8737_v37  ;;  %v2077_v56 = vrot.slane %v7278_v11, 4 }
 0x2b0   :  { %4369 = vpow2.f32 %v1743_v25  ;;  %v1633_v8 = vsub.f32 %v7218_v51, %v1524_v48  ;;  %v7288_v41 = vpop.eup %4365  ;;  %v2877_v4 = vsub.f32 1.0, %v2876_v6  ;;  %v3122_v63 = vmul.f32 %v2274_v12, %v8739_v52 }
 0x2b1   :  { %8738 = vst [vmem:[#allocation16_spill] sm:$0xff] %v7288_v41  ;;  %4371 = vpow2.f32 %v1747_v26  ;;  %v3205_v46 = vrot.slane %v7255_v62, 1  ;;  %v2078_v23 = vadd.f32 %v7278_v11, %v2077_v56  ;;  %v1517_v28 = vrot.slane %v1516_v44, 1 }
 0x2b2   :  { %v1529_v17 = vrot.slane %v1528_v34, 1  ;;  %v3222_v32 = vrot.slane %v3221_v3, 4  ;;  %vm2880_vm5 = vweird.f32 %v7220_v30  ;;  %v1539_v57 = vrot.slane %v1538_v54, 2 }
 0x2b3   :  { %v3212_v15 = vrot.slane %v7276_v5, 1  ;;  %v3217_v51 = vrot.slane %v7271_v19, 2  ;;  %v7296_v42 = vpop.eup %4367  ;;  %v2053_v33 = vrot.slane %v7288_v41, 4  ;;  %v2079_v20 = vrot.slane %v2078_v23, 2 }
 0x2b4   :  { %v1751_v38 = vmul.f32 1.442695, %v1633_v8  ;;  %v1518_v48 = vmax.f32 %v1516_v44, %v1517_v28  ;;  %v2878_v6 = vmul.f32 %v7264_v9, %v2877_v4  ;;  %v2884_v50 = vand.u32 2147483647, %v7220_v30 }
 0x2b5   :  { %v1530_v7 = vmax.f32 %v1528_v34, %v1529_v17  ;;  %v1540_v43 = vmax.f32 %v1538_v54, %v1539_v57  ;;  %v2080_v25 = vadd.f32 %v2079_v20, %v2078_v23  ;;  %v3223_v37 = vadd.f32 %v3222_v32, %v3221_v3 }
 0x2b6   :  { %v7301_v12 = vpop.eup %4369  ;;  %v1632_v26 = vsub.f32 %v7248_v0, %v1518_v48  ;;  %v3228_v56 = vsel %vm52_vm0, %v3122_v63, 0.0  ;;  %vm2881_vm13 = vweird.f32 %v7264_v9  ;;  %v1957_v44 = vrot.slane %v7296_v42, 4 }
 0x2b7   :  { %v7305_v52 = vpop.eup %4371  ;;  %v2071_v8 = vrot.slane %v7301_v12, 4  ;;  %v1541_v4 = vrot.slane %v1540_v43, 1  ;;  %v2054_v34 = vadd.f32 %v7288_v41, %v2053_v33  ;;  %v2081_v54 = vrot.slane %v2080_v25, 1  ;;  %vm7324_vm14 = vmor %vm2880_vm5, %vm2881_vm13 }
 0x2b8   :  { %v2083_v28 = vrot.slane %v7305_v52, 4  ;;  %4373 = vpow2.f32 %v1751_v38  ;;  %v2879_v0 = vadd.f32 %v7264_v9, %v2878_v6  ;;  %v1634_v63 = vsub.f32 %v7250_v61, %v1530_v7 }
 0x2b9   :  { %v2072_v3 = vadd.f32 %v7301_v12, %v2071_v8  ;;  %v1542_v23 = vmax.f32 %v1540_v43, %v1541_v4  ;;  %v2886_v17 = vand.u32 2147483648, %v7220_v30  ;;  %v1749_v57 = vmul.f32 1.442695, %v1632_v26 }
 0x2ba   :  { %v2084_v32 = vadd.f32 %v7305_v52, %v2083_v28  ;;  %v3224_v20 = vrot.slane %v3223_v37, 2  ;;  %v7317_v48 = vadd.f32 %v2081_v54, %v2080_v25  ;;  %v3229_v29 = vrot.slane %v3228_v56, 4 }
 0x2bb   :  { %v2073_v33 = vrot.slane %v2072_v3, 2  ;;  %v1636_v1 = vsub.f32 %v7257_v49, %v1542_v23  ;;  %vm7328_vm15 = vcmp.eq.f32.partialorder %v2884_v50, 8.507059e+37  ;;  %v2055_v6 = vrot.slane %v2054_v34, 2 }
 0x2bc   :  { %v1958_v7 = vadd.f32 %v7296_v42, %v1957_v44  ;;  %v3218_v43 = vadd.f32 %v3217_v51, %v7271_v19  ;;  %v2883_v49 = vsel %vm7324_vm14, %v7264_v9, %v2879_v0  ;;  %v2085_v26 = vrot.slane %v2084_v32, 2 }
 0x2bd   :  { %v2074_v25 = vadd.f32 %v2073_v33, %v2072_v3  ;;  %v1753_v30 = vmul.f32 1.442695, %v1634_v63  ;;  %v2887_v4 = vor.u32 1.1754944e-38, %v2886_v17  ;;  %4375 = vpow2.f32 %v1749_v57  ;;  %v8745_v63 = vld [vmem:[#allocation41_spill] sm:$0xff] }
 0x2be   :  { %v7337_v8 = vpop.eup %4373  ;;  %v1757_v50 = vmul.f32 1.442695, %v1636_v1  ;;  %v3225_v54 = vadd.f32 %v3224_v20, %v3223_v37  ;;  %4377 = vrcp.f32 %v7317_v48  ;;  %v2086_v23 = vadd.f32 %v2085_v26, %v2084_v32  ;;  %v7365_v32 = vpop.xlane.xlu2 %1172 }
 0x2bf   :  { %8744 = vst [vmem:[#allocation18_spill] sm:$0xff] %v7337_v8  ;;  %v2075_v28 = vrot.slane %v2074_v25, 1  ;;  %v3230_v44 = vadd.f32 %v3229_v29, %v3228_v56  ;;  %v2888_v19 = vsel %vm7328_vm15, %v2887_v4, %v2883_v49  ;;  %v2056_v51 = vadd.f32 %v2055_v6, %v2054_v34  ;;  %v8751_v4 = vld [vmem:[#allocation83_spill] sm:$0xff] }
 0x2c0   :  { %v1959_v38 = vrot.slane %v1958_v7, 2  ;;  %4379 = vpow2.f32 %v1757_v50  ;;  %v2095_v0 = vrot.slane %v7337_v8, 4  ;;  %v7347_v1 = vmul.f32 %v7084_v13, %v8745_v63 }
 0x2c1   :  { %v7342_v9 = vadd.f32 %v2075_v28, %v2074_v25  ;;  %4381 = vpow2.f32 %v1753_v30  ;;  %v3231_v3 = vrot.slane %v3230_v44, 2  ;;  %v7351_v37 = vmul.f32 %v6742_v27, %v7086_v24  ;;  %v7367_v27 = vpop.xlane.xlu1 %1178  ;;  %v8750_v30 = vld [vmem:[#allocation78_spill] sm:$0xff] }
 0x2c2   :  { %4383 = vrcp.f32 %v7089_v47  ;;  %v3206_v29 = vadd.f32 %v3205_v46, %v7255_v62  ;;  %v7359_v56 = vmul.f32 %v6943_v18, %v7143_v59  ;;  %v7363_v34 = vsel %vm52_vm0, %v7284_v55, 0.0 }
 0x2c3   :  { %8747 = vst [vmem:[#allocation23_spill] sm:$0xff] %v7363_v34  ;;  %v2087_v13 = vrot.slane %v2086_v23, 1  ;;  %v3219_v17 = vrot.slane %v3218_v43, 1  ;;  %v7369_v24 = vpop.eup %4375  ;;  %v2889_v57 = vmul.f32 %v7154_v60, %v2888_v19  ;;  %v1960_v20 = vadd.f32 %v1959_v38, %v1958_v7 }
 0x2c4   :  { %8746 = vst [vmem:[#allocation21_spill] sm:$0xff] %v7359_v56  ;;  %4385 = vrcp.f32 %v7342_v9  ;;  %v3213_v18 = vadd.f32 %v3212_v15, %v7276_v5  ;;  %v7376_v59 = vpop.eup %4377  ;;  %v2057_v62 = vrot.slane %v2056_v51, 1  ;;  %v2096_v55 = vadd.f32 %v7337_v8, %v2095_v0 }
 0x2c5   :  { %8748 = vst [vmem:[#allocation36_spill] sm:$0xff] %v7369_v24  ;;  %v3226_v46 = vrot.slane %v3225_v54, 1  ;;  %v3232_v33 = vadd.f32 %v3231_v3, %v3230_v44  ;;  %v3704_v60 = vsel %vm3703_vm8, %v3206_v29, %v7205_v14  ;;  %v1531_v7 = vrot.slane %v7365_v32, 4  ;;  %v8752_v44 = vld [vmem:[#allocation44_spill] sm:$0xff] }
 0x2c6   :  { %v7379_v61 = vpop.eup %4379  ;;  %v1543_v49 = vrot.slane %v7367_v27, 4  ;;  %v7388_v5 = vadd.f32 %v2087_v13, %v2086_v23  ;;  %v2089_v15 = vrot.slane %v7369_v24, 4  ;;  %v3220_v26 = vadd.f32 %v3219_v17, %v3218_v43  ;;  %v7402_v13 = vpop.xlane.xlu0 %1184 }
 0x2c7   :  { %v7386_v25 = vpop.eup %4381  ;;  %v7393_v50 = vmul.f32 %v8751_v4, %v8750_v30  ;;  %v3163_v19 = vmul.f32 %v2889_v57, %v8752_v44  ;;  %v1961_v14 = vrot.slane %v1960_v20, 1  ;;  %v2113_v38 = vrot.slane %v7379_v61, 4 }
 0x2c8   :  { %8749 = vst [vmem:[#allocation88_spill] sm:$0xff] %v7386_v25  ;;  %v7395_v28 = vpop.eup %4383  ;;  %v3233_v0 = vrot.slane %v3232_v33, 1  ;;  %v7399_v3 = vadd.f32 %v2057_v62, %v2056_v51  ;;  %v2097_v63 = vrot.slane %v2096_v55, 2  ;;  %v3227_v23 = vadd.f32 %v3226_v46, %v3225_v54 }
 0x2c9   :  { %v3706_v29 = vsel %vm3705_vm9, %v3213_v18, %v3704_v60  ;;  %v2921_v17 = vmul.f32 %v7376_v59, %v7317_v48  ;;  %v2101_v6 = vrot.slane %v7386_v25, 4  ;;  %v1532_v57 = vmax.f32 %v7365_v32, %v1531_v7 }
 0x2ca   :  { %8753 = vst [vmem:[#allocation89_spill] sm:$0xff] %v7399_v3  ;;  %v7404_v43 = vpop.eup %4385  ;;  %v1544_v44 = vmax.f32 %v7367_v27, %v1543_v49  ;;  %4387 = vrcp.f32 %v7388_v5  ;;  %v2090_v51 = vadd.f32 %v7369_v24, %v2089_v15  ;;  %v2114_v54 = vadd.f32 %v7379_v61, %v2113_v38 }
 0x2cb   :  { %v3234_v18 = vadd.f32 %v3233_v0, %v3232_v33  ;;  %v7415_v62 = vsel %vm52_vm0, %v3163_v19, 0.0  ;;  %v7417_v46 = vadd.f32 %v1961_v14, %v1960_v20  ;;  %v3708_v60 = vsel %vm8466_vm10, %v3220_v26, %v3706_v29 }
 0x2cc   :  { %8754 = vst [vmem:[#allocation17_spill] sm:$0xff] %v7415_v62  ;;  %v1555_v34 = vrot.slane %v7402_v13, 4  ;;  %4389 = vrcp.f32 %v7399_v3  ;;  %v2906_v7 = vmul.f32 %v7404_v43, %v7342_v9  ;;  %v2115_v49 = vrot.slane %v2114_v54, 2 }
 0x2cd   :  { %v3710_v15 = vsel %vm8464_vm11, %v3227_v23, %v3708_v60  ;;  %v2922_v8 = vsub.f32 1.0, %v2921_v17  ;;  %v2098_v38 = vadd.f32 %v2097_v63, %v2096_v55  ;;  %v2102_v33 = vadd.f32 %v7386_v25, %v2101_v6 }
 0x2ce   :  { %v3712_v19 = vsel %vm8465_vm12, %v3234_v18, %v3710_v15  ;;  %v2091_v20 = vrot.slane %v2090_v51, 2  ;;  %v2116_v14 = vadd.f32 %v2115_v49, %v2114_v54  ;;  %v1533_v26 = vrot.slane %v1532_v57, 2 }
 0x2cf   :  { %3762 = vrot.lane.b32.xlu1 %v3712_v19, %s4458_s7  ;;  %v1545_v0 = vrot.slane %v1544_v44, 2  ;;  %4391 = vrcp.f32 %v7417_v46  ;;  %v2929_v24 = vand.u32 2147483647, %v7317_v48  ;;  %v1556_v23 = vmax.f32 %v7402_v13, %v1555_v34 }
 0x2d0   :  { %v7432_v17 = vpop.eup %4387  ;;  %vm2925_vm1 = vweird.f32 %v7317_v48  ;;  %v2931_v55 = vand.u32 2147483648, %v7317_v48  ;;  %v2907_v6 = vsub.f32 1.0, %v2906_v7  ;;  %v1534_v63 = vmax.f32 %v1532_v57, %v1533_v26 }
 0x2d1   :  { %v1546_v54 = vmax.f32 %v1544_v44, %v1545_v0  ;;  %v2916_v18 = vand.u32 2147483648, %v7342_v9  ;;  %v2103_v60 = vrot.slane %v2102_v33, 2  ;;  %v2117_v49 = vrot.slane %v2116_v14, 1 }
 0x2d2   :  { %v1557_v15 = vrot.slane %v1556_v23, 2  ;;  %v7437_v19 = vpop.eup %4389  ;;  %v2923_v29 = vmul.f32 %v7376_v59, %v2922_v8  ;;  %v2914_v34 = vand.u32 2147483647, %v7342_v9  ;;  %v2099_v25 = vrot.slane %v2098_v38, 1 }
 0x2d3   :  { %8755 = vst [vmem:[#allocation87_spill] sm:$0xff] %v7437_v19  ;;  %v2092_v62 = vadd.f32 %v2091_v20, %v2090_v51  ;;  %v2936_v41 = vmul.f32 %v7432_v17, %v7388_v5  ;;  %v1535_v16 = vrot.slane %v1534_v63, 1  ;;  %v1547_v7 = vrot.slane %v1546_v54, 1 }
 0x2d4   :  { %v1558_v57 = vmax.f32 %v1556_v23, %v1557_v15  ;;  %vm2926_vm2 = vweird.f32 %v7376_v59  ;;  %vm7444_vm4 = vcmp.eq.f32.partialorder %v2929_v24, 8.507059e+37  ;;  %v2932_v26 = vor.u32 1.1754944e-38, %v2931_v55 }
 0x2d5   :  { %v2908_v0 = vmul.f32 %v7404_v43, %v2907_v6  ;;  %vm2910_vm3 = vweird.f32 %v7342_v9  ;;  %v7450_v8 = vpop.eup %4391  ;;  %v2917_v51 = vor.u32 1.1754944e-38, %v2916_v18  ;;  %v2104_v20 = vadd.f32 %v2103_v60, %v2102_v33  ;;  %vm7470_vm14 = vmor %vm2925_vm1, %vm2926_vm2 }
 0x2d6   :  { %v7452_v56 = vadd.f32 %v2117_v49, %v2116_v14  ;;  %v1536_v21 = vmax.f32 %v1534_v63, %v1535_v16  ;;  %v2924_v23 = vadd.f32 %v7376_v59, %v2923_v29  ;;  %vm7455_vm5 = vcmp.eq.f32.partialorder %v2914_v34, 8.507059e+37 }
 0x2d7   :  { %v7459_v24 = vadd.f32 %v2099_v25, %v2098_v38  ;;  %v1548_v55 = vmax.f32 %v1546_v54, %v1547_v7  ;;  %v1559_v19 = vrot.slane %v1558_v57, 1  ;;  %v2937_v6 = vsub.f32 1.0, %v2936_v41  ;;  %v8768_v7 = vld [vmem:[#allocation85_spill] sm:$0xff] }
 0x2d8   :  { %v2093_v3 = vrot.slane %v2092_v62, 1  ;;  %v1635_v39 = vsub.f32 %v7365_v32, %v1536_v21  ;;  %v2712_v18 = vsub.f32 1.0, %v7393_v50  ;;  %v2909_v33 = vadd.f32 %v7404_v43, %v2908_v0  ;;  %v8762_v32 = vld [vmem:[#allocation80_spill] sm:$0xff] }
 0x2d9   :  { %vm2911_vm13 = vweird.f32 %v7404_v43  ;;  %v1637_v16 = vsub.f32 %v7367_v27, %v1548_v55  ;;  %v1560_v14 = vmax.f32 %v1558_v57, %v1559_v19  ;;  %v2105_v41 = vrot.slane %v2104_v20, 1  ;;  %v8763_v50 = vld [vmem:[#allocation84_spill] sm:$0xff] }
 0x2da   :  { %4393 = vrcp.f32 %v7452_v56  ;;  %v1755_v21 = vmul.f32 1.442695, %v1635_v39  ;;  %v2726_v38 = vmul.f32 %v8763_v50, %v8762_v32  ;;  %v2928_v27 = vsel %vm7470_vm14, %v7376_v59, %v2924_v23  ;;  %vm7484_vm15 = vmor %vm2910_vm3, %vm2911_vm13 }
 0x2db   :  { %v2946_v29 = vand.u32 2147483648, %v7388_v5  ;;  %v1759_v63 = vmul.f32 1.442695, %v1637_v16  ;;  %v1639_v48 = vsub.f32 %v7402_v13, %v1560_v14  ;;  %v2938_v39 = vmul.f32 %v7432_v17, %v2937_v6 }
 0x2dc   :  { %v7489_v60 = vadd.f32 %v2093_v3, %v2092_v62  ;;  %4395 = vpow2.f32 %v1755_v21  ;;  %v2713_v49 = vmul.f32 %v8751_v4, %v2712_v18  ;;  %v2913_v59 = vsel %vm7484_vm15, %v7404_v43, %v2909_v33  ;;  %v8767_v62 = vld [vmem:[#allocation82_spill] sm:$0xff] }
 0x2dd   :  { %4397 = vpow2.f32 %v1759_v63  ;;  %v1763_v19 = vmul.f32 1.442695, %v1639_v48  ;;  %v2727_v13 = vsub.f32 1.0, %v2726_v38  ;;  %v2933_v9 = vsel %vm7444_vm4, %v2932_v26, %v2928_v27 }
 0x2de   :  { %vm2940_vm1 = vweird.f32 %v7388_v5  ;;  %4399 = vrcp.f32 %v7459_v24  ;;  %v7499_v34 = vadd.f32 %v2105_v41, %v2104_v20  ;;  %vm2941_vm2 = vweird.f32 %v7432_v17 }
 0x2df   :  { %v2944_v3 = vand.u32 2147483647, %v7388_v5  ;;  %4401 = vpow2.f32 %v1763_v19  ;;  %v2741_v43 = vmul.f32 %v8768_v7, %v8767_v62  ;;  %v2918_v44 = vsel %vm7455_vm5, %v2917_v51, %v2913_v59  ;;  %vm7525_vm3 = vmor %vm2940_vm1, %vm2941_vm2  ;;  %v8796_v51 = vld [vmem:[#allocation76_spill] sm:$0xff] }
 0x2e0   :  { %8766 = vst [vmem:[#allocation20_spill] sm:$0xff] %v7499_v34  ;;  %v7505_v57 = vpop.eup %4393  ;;  %v7510_v26 = vadd.f32 %v7432_v17, %v2938_v39  ;;  %v2714_v0 = vadd.f32 %v8751_v4, %v2713_v49  ;;  %vm2716_vm4 = vweird.f32 %v8751_v4  ;;  %v7515_v20 = vmul.f32 %v7278_v11, %v2933_v9 }
 0x2e1   :  { %v7517_v23 = vor.u32 1.1754944e-38, %v2946_v29  ;;  %4403 = vrcp.f32 %v7489_v60  ;;  %v2728_v55 = vmul.f32 %v8763_v50, %v2727_v13  ;;  %vm2715_vm5 = vweird.f32 %v8750_v30 }
 0x2e2   :  { %8769 = vst [vmem:[#allocation24_spill] sm:$0xff] %v7515_v20  ;;  %v7521_v6 = vpop.eup %4395  ;;  %4405 = vrcp.f32 %v7499_v34  ;;  %v2721_v11 = vand.u32 2147483648, %v8750_v30  ;;  %v2742_v15 = vsub.f32 1.0, %v2741_v43  ;;  %v7535_v33 = vmul.f32 %v7301_v12, %v2918_v44  ;;  %vm7542_vm13 = vmor %vm2715_vm5, %vm2716_vm4  ;;  %v8790_v20 = vld [vmem:[#allocation73_spill] sm:$0xff] }
 0x2e3   :  { %v7532_v18 = vpop.eup %4397  ;;  %v3011_v16 = vmul.f32 %v7505_v57, %v7452_v56  ;;  %v2107_v5 = vrot.slane %v7521_v6, 4  ;;  %v2719_v25 = vand.u32 2147483647, %v8750_v30  ;;  %v2718_v38 = vsel %vm7542_vm13, %v8751_v4, %v2714_v0 }
 0x2e4   :  { %v7547_v41 = vpop.eup %4399  ;;  %v2119_v21 = vrot.slane %v7532_v18, 4  ;;  %v2734_v27 = vand.u32 2147483647, %v8762_v32  ;;  %v2729_v30 = vadd.f32 %v8763_v50, %v2728_v55  ;;  %vm2731_vm14 = vweird.f32 %v8763_v50 }
 0x2e5   :  { %v7558_v29 = vpop.eup %4401  ;;  %v2108_v63 = vadd.f32 %v7521_v6, %v2107_v5  ;;  %v2736_v48 = vand.u32 2147483648, %v8762_v32  ;;  %v2722_v49 = vor.u32 1.1754944e-38, %v2721_v11  ;;  %v2743_v59 = vmul.f32 %v8768_v7, %v2742_v15 }
 0x2e6   :  { %v2120_v54 = vadd.f32 %v7532_v18, %v2119_v21  ;;  %v2131_v39 = vrot.slane %v7558_v29, 4  ;;  %v3012_v19 = vsub.f32 1.0, %v3011_v16  ;;  %vm2720_vm15 = vcmp.eq.f32.partialorder %v2719_v25, 8.507059e+37  ;;  %v8779_v21 = vld [vmem:[#allocation77_spill] sm:$0xff] }
 0x2e7   :  { %v7567_v4 = vpop.eup %4403  ;;  %v2109_v13 = vrot.slane %v2108_v63, 2  ;;  %vm2730_vm1 = vweird.f32 %v8762_v32  ;;  %v2723_v0 = vsel %vm2720_vm15, %v2722_v49, %v2718_v38  ;;  %vm2735_vm4 = vcmp.eq.f32.partialorder %v2734_v27, 8.507059e+37 }
 0x2e8   :  { %v7570_v9 = vpop.eup %4405  ;;  %v2121_v43 = vrot.slane %v2120_v54, 2  ;;  %v2132_v44 = vadd.f32 %v7558_v29, %v2131_v39  ;;  %vm7575_vm2 = vmor %vm2730_vm1, %vm2731_vm14  ;;  %vm7579_vm5 = vcmp.eq.f32.partialorder %v2944_v3, 8.507059e+37  ;;  %v2737_v16 = vor.u32 1.1754944e-38, %v2736_v48 }
 0x2e9   :  { %8774 = vst [vmem:[#allocation25_spill] sm:$0xff] %v7570_v9  ;;  %v2110_v15 = vadd.f32 %v2109_v13, %v2108_v63  ;;  %v2733_v32 = vsel %vm7575_vm2, %v8763_v50, %v2729_v30  ;;  %vm2746_vm13 = vweird.f32 %v8768_v7  ;;  %v2744_v25 = vadd.f32 %v8768_v7, %v2743_v59  ;;  %v8780_v50 = vld [vmem:[#allocation74_spill] sm:$0xff] }
 0x2ea   :  { %v2122_v5 = vadd.f32 %v2121_v43, %v2120_v54  ;;  %v2133_v14 = vrot.slane %v2132_v44, 2  ;;  %v3417_v38 = vsel %vm52_vm0, %v8779_v21, 0.0  ;;  %vm2745_vm14 = vweird.f32 %v8767_v62  ;;  %v8782_v43 = vld [vmem:[#allocation72_spill] sm:$0xff] }
 0x2eb   :  { %v2111_v27 = vrot.slane %v2110_v15, 1  ;;  %v2749_v3 = vand.u32 2147483647, %v8767_v62  ;;  %v2751_v63 = vand.u32 2147483648, %v8767_v62  ;;  %v2738_v49 = vsel %vm2735_vm4, %v2737_v16, %v2733_v32  ;;  %vm7602_vm1 = vmor %vm2745_vm14, %vm2746_vm13  ;;  %v8785_v62 = vld [vmem:[#allocation9_spill] sm:$0xff]  ;;  %v8786_v32 = vld [vmem:[#allocation79_spill] sm:$0xff] }
 0x2ec   :  { %v2123_v39 = vrot.slane %v2122_v5, 1  ;;  %v8781_v30 = vrot.slane %v8780_v50, 4  ;;  %v3418_v54 = vrot.slane %v3417_v38, 4  ;;  %vm3015_vm15 = vweird.f32 %v7452_v56 }
 0x2ed   :  { %v7597_v59 = vadd.f32 %v2111_v27, %v2110_v15  ;;  %v2134_v13 = vadd.f32 %v2133_v14, %v2132_v44  ;;  %v2724_v55 = vmul.f32 %v8782_v43, %v2723_v0  ;;  %v3150_v16 = vmul.f32 %v8786_v32, %v8785_v62  ;;  %v8787_v15 = vld [vmem:[#allocation10_spill] sm:$0xff]  ;;  %v8788_v27 = vld [vmem:[#allocation81_spill] sm:$0xff]  ;;  %v8789_v0 = vld [vmem:[#allocation75_spill] sm:$0xff] }
 0x2ee   :  { %v3412_v48 = vadd.f32 %v8781_v30, %v8780_v50  ;;  %v3013_v12 = vmul.f32 %v7505_v57, %v3012_v19  ;;  %v2748_v50 = vsel %vm7602_vm1, %v8768_v7, %v2744_v25  ;;  %v3151_v44 = vmul.f32 %v8788_v27, %v8787_v15  ;;  %v8792_v32 = vld [vmem:[#allocation11_spill] sm:$0xff] }
 0x2ef   :  { %v3419_v14 = vadd.f32 %v3418_v54, %v3417_v38  ;;  %4407 = vrcp.f32 %v7597_v59  ;;  %v2739_v30 = vmul.f32 %v8789_v0, %v2738_v49  ;;  %v2752_v43 = vor.u32 1.1754944e-38, %v2751_v63  ;;  %v8793_v54 = vld [vmem:[#allocation47_spill] sm:$0xff] }
 0x2f0   :  { %v8791_v9 = vrot.slane %v8790_v20, 4  ;;  %v3019_v62 = vand.u32 2147483647, %v7452_v56  ;;  %v7620_v19 = vadd.f32 %v2123_v39, %v2122_v5  ;;  %vm2750_vm2 = vcmp.eq.f32.partialorder %v2749_v3, 8.507059e+37  ;;  %v8795_v39 = vld [vmem:[#allocation12_spill] sm:$0xff] }
 0x2f1   :  { %v3413_v21 = vrot.slane %v3412_v48, 2  ;;  %v2135_v7 = vrot.slane %v2134_v13, 1  ;;  %v2753_v25 = vsel %vm2750_vm2, %v2752_v43, %v2748_v50  ;;  %v3152_v15 = vmul.f32 %v2724_v55, %v8792_v32 }
 0x2f2   :  { %v3405_v34 = vadd.f32 %v8791_v9, %v8790_v20  ;;  %v3424_v38 = vsel %vm52_vm0, %v3150_v16, 0.0  ;;  %v7626_v49 = vmul.f32 %v7535_v33, %v8793_v54  ;;  %v8794_v20 = vsel %vm7525_vm3, %v7432_v17, %v7510_v26 }
 0x2f3   :  { %v2948_v9 = vsel %vm7579_vm5, %v7517_v23, %v8794_v20  ;;  %v3420_v5 = vrot.slane %v3419_v14, 2  ;;  %v3431_v3 = vsel %vm52_vm0, %v3151_v44, 0.0  ;;  %v3014_v63 = vadd.f32 %v7505_v57, %v3013_v12 }
 0x2f4   :  { %vm3016_vm4 = vweird.f32 %v7505_v57  ;;  %v3153_v55 = vmul.f32 %v2739_v30, %v8795_v39  ;;  %v3406_v33 = vrot.slane %v3405_v34, 2  ;;  %4409 = vrcp.f32 %v7620_v19 }
 0x2f5   :  { %v2754_v16 = vmul.f32 %v8796_v51, %v2753_v25  ;;  %v3414_v50 = vadd.f32 %v3413_v21, %v3412_v48  ;;  %v3425_v17 = vrot.slane %v3424_v38, 4  ;;  %v7642_v26 = vpop.eup %4407  ;;  %v3021_v23 = vand.u32 2147483648, %v7452_v56  ;;  %vm7650_vm3 = vmor %vm3015_vm15, %vm3016_vm4  ;;  %v8801_v25 = vld [vmem:[#allocation14_spill] sm:$0xff] }
 0x2f6   :  { %v7645_v11 = vadd.f32 %v2135_v7, %v2134_v13  ;;  %v3432_v27 = vrot.slane %v3431_v3, 4  ;;  %v3438_v12 = vsel %vm52_vm0, %v3152_v15, 0.0  ;;  %vm7654_vm5 = vcmp.eq.f32.partialorder %v3019_v62, 8.507059e+37 }
 0x2f7   :  { %v2996_v48 = vmul.f32 %v7642_v26, %v7597_v59  ;;  %v3421_v30 = vadd.f32 %v3420_v5, %v3419_v14  ;;  %v3426_v43 = vadd.f32 %v3425_v17, %v3424_v38  ;;  %v3018_v13 = vsel %vm7650_vm3, %v7505_v57, %v3014_v63 }
 0x2f8   :  { %v3407_v21 = vadd.f32 %v3406_v33, %v3405_v34  ;;  %v3433_v7 = vadd.f32 %v3432_v27, %v3431_v3  ;;  %v3439_v56 = vrot.slane %v3438_v12, 4  ;;  %v3154_v32 = vmul.f32 %v2754_v16, %v8801_v25 }
 0x2f9   :  { %v3415_v15 = vrot.slane %v3414_v50, 1  ;;  %v3427_v54 = vrot.slane %v3426_v43, 2  ;;  %v3445_v62 = vsel %vm52_vm0, %v3153_v55, 0.0  ;;  %4411 = vrcp.f32 %v7645_v11 }
 0x2fa   :  { %v3434_v20 = vrot.slane %v3433_v7, 2  ;;  %v3440_v39 = vadd.f32 %v3439_v56, %v3438_v12  ;;  %v3446_v51 = vrot.slane %v3445_v62, 4  ;;  %v7666_v14 = vpop.eup %4409  ;;  %v3022_v38 = vor.u32 1.1754944e-38, %v3021_v23 }
 0x2fb   :  { %v2997_v5 = vsub.f32 1.0, %v2996_v48  ;;  %v3422_v17 = vrot.slane %v3421_v30, 1  ;;  %v3428_v57 = vadd.f32 %v3427_v54, %v3426_v43  ;;  %v3408_v34 = vrot.slane %v3407_v21, 1 }
 0x2fc   :  { %v3435_v3 = vadd.f32 %v3434_v20, %v3433_v7  ;;  %v3441_v63 = vrot.slane %v3440_v39, 2  ;;  %v3447_v33 = vadd.f32 %v3446_v51, %v3445_v62  ;;  %v3023_v16 = vsel %vm7654_vm5, %v3022_v38, %v3018_v13 }
 0x2fd   :  { %v3416_v27 = vadd.f32 %v3415_v15, %v3414_v50  ;;  %v3429_v55 = vrot.slane %v3428_v57, 1  ;;  %v3452_v44 = vsel %vm52_vm0, %v3154_v32, 0.0  ;;  %v3026_v12 = vmul.f32 %v7666_v14, %v7620_v19 }
 0x2fe   :  { %v3436_v56 = vrot.slane %v3435_v3, 1  ;;  %v3442_v25 = vadd.f32 %v3441_v63, %v3440_v39  ;;  %v3448_v23 = vrot.slane %v3447_v33, 2  ;;  %v7674_v48 = vmul.f32 %v7305_v52, %v2948_v9 }
 0x2ff   :  { %v2998_v43 = vmul.f32 %v7642_v26, %v2997_v5  ;;  %v3423_v7 = vadd.f32 %v3422_v17, %v3421_v30  ;;  %v3453_v54 = vrot.slane %v3452_v44, 4  ;;  %v7677_v62 = vpop.eup %4411  ;;  %v3024_v50 = vmul.f32 %v7379_v61, %v3023_v16  ;;  %v7691_v17 = vpop.xlane.xlu2 %1181 }
 0x300   :  { %v3409_v0 = vadd.f32 %v3408_v34, %v3407_v21  ;;  %v3430_v13 = vadd.f32 %v3429_v55, %v3428_v57  ;;  %v3443_v32 = vrot.slane %v3442_v25, 1  ;;  %vm3001_vm13 = vweird.f32 %v7642_v26  ;;  %v8802_v57 = vld [vmem:[#allocation54_spill] sm:$0xff] }
 0x301   :  { %v3006_v15 = vand.u32 2147483648, %v7597_v59  ;;  %v3437_v20 = vadd.f32 %v3436_v56, %v3435_v3  ;;  %v3449_v39 = vadd.f32 %v3448_v23, %v3447_v33  ;;  %v3027_v51 = vsub.f32 1.0, %v3026_v12 }
 0x302   :  { %v3444_v52 = vadd.f32 %v3443_v32, %v3442_v25  ;;  %v3454_v9 = vadd.f32 %v3453_v54, %v3452_v44  ;;  %v3734_v38 = vsel %vm3699_vm6, %v3416_v27, %v3409_v0  ;;  %v7684_v30 = vadd.f32 %v7642_v26, %v2998_v43  ;;  %v8805_v54 = vld [vmem:[#allocation65_spill] sm:$0xff] }
 0x303   :  { %v7688_v61 = vmul.f32 %v7677_v62, %v7645_v11  ;;  %v3450_v21 = vrot.slane %v3449_v39, 1  ;;  %v3735_v5 = vsel %vm3701_vm7, %v3423_v7, %v3734_v38  ;;  %v7694_v34 = vmul.f32 %v3024_v50, %v8802_v57  ;;  %v8806_v50 = vld [vmem:[#allocation69_spill] sm:$0xff] }
 0x304   :  { %vm3000_vm14 = vweird.f32 %v7597_v59  ;;  %v3455_v3 = vrot.slane %v3454_v9, 2  ;;  %v3736_v63 = vsel %vm3703_vm8, %v3430_v13, %v3735_v5  ;;  %v3004_v33 = vand.u32 2147483647, %v7597_v59 }
 0x305   :  { %v7699_v16 = vor.u32 1.1754944e-38, %v3006_v15  ;;  %v3451_v27 = vadd.f32 %v3450_v21, %v3449_v39  ;;  %v3737_v55 = vsel %vm3705_vm9, %v3437_v20, %v3736_v63  ;;  %vm7704_vm15 = vmor %vm3000_vm14, %vm3001_vm13  ;;  %v3028_v12 = vmul.f32 %v7666_v14, %v3027_v51  ;;  %v8807_v51 = vld [vmem:[#allocation66_spill] sm:$0xff] }
 0x306   :  { %v3456_v56 = vadd.f32 %v3455_v3, %v3454_v9  ;;  %v3738_v25 = vsel %vm8466_vm10, %v3444_v52, %v3737_v55  ;;  %v1549_v23 = vrot.slane %v7691_v17, 4  ;;  %v3057_v43 = vsub.f32 1.0, %v7688_v61  ;;  %v8808_v52 = vld [vmem:[#allocation70_spill] sm:$0xff] }
 0x307   :  { %v3739_v7 = vsel %vm8464_vm11, %v3451_v27, %v3738_v25  ;;  %v2351_v0 = vmul.f32 %v8806_v50, %v8805_v54  ;;  %v2359_v15 = vand.u32 2147483647, %v8805_v54  ;;  %v2361_v20 = vand.u32 2147483648, %v8805_v54  ;;  %v8813_v25 = vld [vmem:[#allocation67_spill] sm:$0xff] }
 0x308   :  { %v3457_v13 = vrot.slane %v3456_v56, 1  ;;  %v1550_v32 = vmax.f32 %v7691_v17, %v1549_v23  ;;  %vm2355_vm1 = vweird.f32 %v8805_v54  ;;  %vm2356_vm2 = vweird.f32 %v8806_v50  ;;  %v8814_v23 = vld [vmem:[#allocation71_spill] sm:$0xff] }
 0x309   :  { %v2352_v39 = vsub.f32 1.0, %v2351_v0  ;;  %v2366_v9 = vmul.f32 %v8808_v52, %v8807_v51  ;;  %vm2370_vm4 = vweird.f32 %v8807_v51  ;;  %vm2371_vm3 = vweird.f32 %v8808_v52 }
 0x30a   :  { %v3458_v38 = vadd.f32 %v3457_v13, %v3456_v56  ;;  %v1551_v61 = vrot.slane %v1550_v32, 2  ;;  %vm7729_vm5 = vcmp.eq.f32.partialorder %v2359_v15, 8.507059e+37  ;;  %v2376_v3 = vand.u32 2147483648, %v8807_v51 }
 0x30b   :  { %v2353_v21 = vmul.f32 %v8806_v50, %v2352_v39  ;;  %v2367_v57 = vsub.f32 1.0, %v2366_v9  ;;  %vm7734_vm13 = vcmp.eq.f32.partialorder %v3004_v33, 8.507059e+37  ;;  %v2362_v56 = vor.u32 1.1754944e-38, %v2361_v20 }
 0x30c   :  { %v3740_v27 = vsel %vm8465_vm12, %v3458_v38, %v3739_v7  ;;  %v1552_v55 = vmax.f32 %v1550_v32, %v1551_v61  ;;  %v2381_v0 = vmul.f32 %v8814_v23, %v8813_v25  ;;  %vm3031_vm14 = vweird.f32 %v7666_v14  ;;  %vm2357_vm12 = vmor %vm2355_vm1, %vm2356_vm2  ;;  %v8815_v61 = vld [vmem:[#allocation6_spill] sm:$0xff] }
 0x30d   :  { %3770 = vrot.lane.b32.xlu1 %v3740_v27, %s4458_s7  ;;  %v2354_v13 = vadd.f32 %v8806_v50, %v2353_v21  ;;  %v2368_v15 = vmul.f32 %v8808_v52, %v2367_v57  ;;  %v2374_v33 = vand.u32 2147483647, %v8807_v51  ;;  %vm2385_vm11 = vweird.f32 %v8813_v25  ;;  %v8816_v21 = vld [vmem:[#allocation68_spill] sm:$0xff]  ;;  %vm2372_vm1 = vmor %vm2370_vm4, %vm2371_vm3 }
 0x30e   :  { %v1553_v39 = vrot.slane %v1552_v55, 1  ;;  %v2377_v7 = vor.u32 1.1754944e-38, %v2376_v3  ;;  %v2382_v32 = vsub.f32 1.0, %v2381_v0  ;;  %vm2386_vm10 = vweird.f32 %v8814_v23  ;;  %v8817_v3 = vld [vmem:[#allocation59_spill] sm:$0xff] }
 0x30f   :  { %v2358_v20 = vsel %vm2357_vm12, %v8806_v50, %v2354_v13  ;;  %v2369_v9 = vadd.f32 %v8808_v52, %v2368_v15  ;;  %v2391_v38 = vand.u32 2147483648, %v8813_v25  ;;  %v3127_v57 = vmul.f32 %v8816_v21, %v8815_v61  ;;  %vm2387_vm2 = vmor %vm2385_vm11, %vm2386_vm10  ;;  %v8821_v21 = vld [vmem:[#allocation7_spill] sm:$0xff] }
 0x310   :  { %v1554_v27 = vmax.f32 %v1552_v55, %v1553_v39  ;;  %v2363_v59 = vsel %vm7729_vm5, %v2362_v56, %v2358_v20  ;;  %v2383_v54 = vmul.f32 %v8814_v23, %v2382_v32  ;;  %v2389_v50 = vand.u32 2147483647, %v8813_v25  ;;  %v8818_v20 = vld [vmem:[#allocation60_spill] sm:$0xff] }
 0x311   :  { %v2364_v0 = vmul.f32 %v8817_v3, %v2363_v59  ;;  %v2373_v13 = vsel %vm2372_vm1, %v8808_v52, %v2369_v9  ;;  %vm2375_vm12 = vcmp.eq.f32.partialorder %v2374_v33, 8.507059e+37  ;;  %v3263_v15 = vsel %vm52_vm0, %v3127_v57, 0.0  ;;  %v8819_v52 = vld [vmem:[#allocation5_spill] sm:$0xff] }
 0x312   :  { %v1638_v55 = vsub.f32 %v7691_v17, %v1554_v27  ;;  %v2378_v5 = vsel %vm2375_vm12, %v2377_v7, %v2373_v13  ;;  %v2384_v56 = vadd.f32 %v8814_v23, %v2383_v54  ;;  %v3264_v39 = vrot.slane %v3263_v15, 4 }
 0x313   :  { %v3029_v51 = vadd.f32 %v7666_v14, %v3028_v12  ;;  %v2379_v61 = vmul.f32 %v8818_v20, %v2378_v5  ;;  %v2392_v59 = vor.u32 1.1754944e-38, %v2391_v38  ;;  %v3128_v33 = vmul.f32 %v2364_v0, %v8819_v52  ;;  %v7808_v5 = vpop.xlane.xlu1 %1187 }
 0x314   :  { %v3058_v32 = vmul.f32 %v7677_v62, %v3057_v43  ;;  %v1761_v9 = vmul.f32 1.442695, %v1638_v55  ;;  %v2388_v17 = vsel %vm2387_vm2, %v8814_v23, %v2384_v56  ;;  %vm2390_vm4 = vcmp.eq.f32.partialorder %v2389_v50, 8.507059e+37  ;;  %v8822_v43 = vld [vmem:[#allocation62_spill] sm:$0xff]  ;;  %v8825_v50 = vld [vmem:[#allocation8_spill] sm:$0xff] }
 0x315   :  { %v8820_v12 = vsel %vm7704_vm15, %v7642_v26, %v7684_v30  ;;  %v2393_v25 = vsel %vm2390_vm4, %v2392_v59, %v2388_v17  ;;  %v3129_v38 = vmul.f32 %v2379_v61, %v8821_v21  ;;  %v3270_v57 = vsel %vm52_vm0, %v3128_v33, 0.0  ;;  %v8828_v21 = vld [vmem:[#allocation55_spill] sm:$0xff] }
 0x316   :  { %v3008_v7 = vsel %vm7734_vm13, %v7699_v16, %v8820_v12  ;;  %4413 = vpow2.f32 %v1761_v9  ;;  %v2394_v27 = vmul.f32 %v8822_v43, %v2393_v25  ;;  %v3265_v54 = vadd.f32 %v3264_v39, %v3263_v15 }
 0x317   :  { %v3271_v23 = vrot.slane %v3270_v57, 4  ;;  %vm3030_vm10 = vweird.f32 %v7620_v19  ;;  %v3034_v44 = vand.u32 2147483647, %v7620_v19  ;;  %v3036_v26 = vand.u32 2147483648, %v7620_v19 }
 0x318   :  { %v3277_v30 = vsel %vm52_vm0, %v3129_v38, 0.0  ;;  %vm7796_vm11 = vmor %vm3030_vm10, %vm3031_vm14  ;;  %v3066_v63 = vand.u32 2147483648, %v7645_v11  ;;  %v3130_v3 = vmul.f32 %v2394_v27, %v8825_v50  ;;  %v3009_v15 = vmul.f32 %v7521_v6, %v3008_v7 }
 0x319   :  { %v3272_v0 = vadd.f32 %v3271_v23, %v3270_v57  ;;  %v3278_v13 = vrot.slane %v3277_v30, 4  ;;  %v3033_v19 = vsel %vm7796_vm11, %v7666_v14, %v3029_v51  ;;  %v3059_v55 = vadd.f32 %v7677_v62, %v3058_v32 }
 0x31a   :  { %vm3061_vm15 = vweird.f32 %v7677_v62  ;;  %v3266_v56 = vrot.slane %v3265_v54, 2  ;;  %v3284_v61 = vsel %vm52_vm0, %v3130_v3, 0.0  ;;  %vm3035_vm3 = vcmp.eq.f32.partialorder %v3034_v44, 8.507059e+37  ;;  %v1194_v44 = vpop.xlane.xlu0 %1193 }
 0x31b   :  { %v3273_v39 = vrot.slane %v3272_v0, 2  ;;  %v3279_v20 = vadd.f32 %v3278_v13, %v3277_v30  ;;  %v3037_v59 = vor.u32 1.1754944e-38, %v3036_v26  ;;  %v1561_v52 = vrot.slane %v7808_v5, 4 }
 0x31c   :  { %v3285_v6 = vrot.slane %v3284_v61, 4  ;;  %v7812_v33 = vpop.eup %4413  ;;  %vm3060_vm5 = vweird.f32 %v7645_v11  ;;  %v3064_v14 = vand.u32 2147483647, %v7645_v11  ;;  %v3067_v51 = vor.u32 1.1754944e-38, %v3066_v63 }
 0x31d   :  { %v3280_v32 = vrot.slane %v3279_v20, 2  ;;  %v3038_v9 = vsel %vm3035_vm3, %v3037_v59, %v3033_v19  ;;  %vm7818_vm13 = vmor %vm3060_vm5, %vm3061_vm15  ;;  %v2125_v12 = vrot.slane %v7812_v33, 4  ;;  %v1562_v7 = vmax.f32 %v7808_v5, %v1561_v52 }
 0x31e   :  { %v3286_v25 = vadd.f32 %v3285_v6, %v3284_v61  ;;  %v3171_v38 = vmul.f32 %v3009_v15, %v8828_v21  ;;  %v3063_v11 = vsel %vm7818_vm13, %v7677_v62, %v3059_v55  ;;  %v3267_v57 = vadd.f32 %v3266_v56, %v3265_v54 }
 0x31f   :  { %v3274_v43 = vadd.f32 %v3273_v39, %v3272_v0  ;;  %v2126_v27 = vadd.f32 %v7812_v33, %v2125_v12  ;;  %v1563_v23 = vrot.slane %v1562_v7, 2  ;;  %v3281_v26 = vadd.f32 %v3280_v32, %v3279_v20 }
 0x320   :  { %v3287_v30 = vrot.slane %v3286_v25, 2  ;;  %v7831_v16 = vsel %vm52_vm0, %v7694_v34, 0.0  ;;  %v3039_v63 = vmul.f32 %v7532_v18, %v3038_v9  ;;  %vm3065_vm14 = vcmp.eq.f32.partialorder %v3064_v14, 8.507059e+37  ;;  %v7838_v34 = vpop.xlane.xlu2 %1190  ;;  %v8829_v18 = vld [vmem:[#allocation56_spill] sm:$0xff] }
 0x321   :  { %v1573_v50 = vrot.slane %v1194_v44, 4  ;;  %v3068_v3 = vsel %vm3065_vm14, %v3067_v51, %v3063_v11  ;;  %v2127_v13 = vrot.slane %v2126_v27, 2  ;;  %v1564_v15 = vmax.f32 %v1562_v7, %v1563_v23 }
 0x322   :  { %v3288_v62 = vadd.f32 %v3287_v30, %v3286_v25  ;;  %v7835_v54 = vsel %vm52_vm0, %v3171_v38, 0.0  ;;  %v3268_v19 = vrot.slane %v3267_v57, 1  ;;  %v3275_v55 = vrot.slane %v3274_v43, 1 }
 0x323   :  { %v1574_v0 = vmax.f32 %v1194_v44, %v1573_v50  ;;  %v3579_v56 = vrot.slane %v7831_v16, 4  ;;  %v2128_v39 = vadd.f32 %v2127_v13, %v2126_v27  ;;  %v1565_v20 = vrot.slane %v1564_v15, 1 }
 0x324   :  { %v3282_v61 = vrot.slane %v3281_v26, 1  ;;  %v7841_v59 = vmul.f32 %v3039_v63, %v8829_v18  ;;  %v7844_v52 = vmul.f32 %v7558_v29, %v3068_v3  ;;  %v1567_v14 = vrot.slane %v7838_v34, 4 }
 0x325   :  { %v1575_v6 = vrot.slane %v1574_v0, 2  ;;  %v3572_v51 = vrot.slane %v7835_v54, 4  ;;  %v2129_v32 = vrot.slane %v2128_v39, 1  ;;  %v1566_v9 = vmax.f32 %v1564_v15, %v1565_v20 }
 0x326   :  { %v3289_v17 = vrot.slane %v3288_v62, 1  ;;  %v1568_v7 = vmax.f32 %v7838_v34, %v1567_v14  ;;  %v7849_v25 = vadd.f32 %v3268_v19, %v3267_v57  ;;  %v7851_v21 = vadd.f32 %v3275_v55, %v3274_v43 }
 0x327   :  { %v1576_v12 = vmax.f32 %v1574_v0, %v1575_v6  ;;  %v7853_v38 = vadd.f32 %v2129_v32, %v2128_v39  ;;  %v1640_v29 = vsub.f32 %v7808_v5, %v1566_v9  ;;  %v8830_v11 = vrot.slane %v6901_v53, 4  ;;  %v8832_v5 = vld [vmem:[#allocation46_spill] sm:$0xff] }
 0x328   :  { %v7859_v23 = vadd.f32 %v3282_v61, %v3281_v26  ;;  %v1569_v63 = vrot.slane %v1568_v7, 2  ;;  %v8831_v50 = vrot.slane %v7056_v36, 4  ;;  %v3249_v57 = vsel %vm52_vm0, %v7347_v1, 0.0 }
 0x329   :  { %v3237_v27 = vadd.f32 %v8830_v11, %v6901_v53  ;;  %v1577_v30 = vrot.slane %v1576_v12, 1  ;;  %4415 = vrcp.f32 %v7853_v38  ;;  %v3051_v43 = vand.u32 2147483648, %v7853_v38 }
 0x32a   :  { %v3244_v3 = vadd.f32 %v8831_v50, %v7056_v36  ;;  %v3126_v13 = vmul.f32 %v7351_v37, %v8832_v5  ;;  %v7870_v15 = vadd.f32 %v3289_v17, %v3288_v62  ;;  %v1765_v53 = vmul.f32 1.442695, %v1640_v29 }
 0x32b   :  { %v1578_v26 = vmax.f32 %v1576_v12, %v1577_v30  ;;  %v1570_v0 = vmax.f32 %v1568_v7, %v1569_v63  ;;  %v3238_v19 = vrot.slane %v3237_v27, 2  ;;  %v3049_v55 = vand.u32 2147483647, %v7853_v38 }
 0x32c   :  { %v7873_v39 = vor.u32 1.1754944e-38, %v3051_v43  ;;  %v3245_v36 = vrot.slane %v3244_v3, 2  ;;  %v3250_v20 = vrot.slane %v3249_v57, 4  ;;  %4417 = vpow2.f32 %v1765_v53 }
 0x32d   :  { %v1642_v1 = vsub.f32 %v1194_v44, %v1578_v26  ;;  %v1571_v61 = vrot.slane %v1570_v0, 1  ;;  %v3239_v18 = vadd.f32 %v3238_v19, %v3237_v27  ;;  %v3256_v37 = vsel %vm52_vm0, %v3126_v13, 0.0 }
 0x32e   :  { %v3246_v6 = vadd.f32 %v3245_v36, %v3244_v3  ;;  %v3251_v14 = vadd.f32 %v3250_v20, %v3249_v57  ;;  %v2591_v62 = vmul.f32 %v6841_v40, %v6774_v35  ;;  %vm3045_vm1 = vweird.f32 %v7853_v38 }
 0x32f   :  { %v1769_v32 = vmul.f32 1.442695, %v1642_v1  ;;  %v1572_v9 = vmax.f32 %v1570_v0, %v1571_v61  ;;  %v3240_v17 = vrot.slane %v3239_v18, 1  ;;  %v3257_v12 = vrot.slane %v3256_v37, 4  ;;  %v4416_v7 = vpop.eup %4415 }
 0x330   :  { %v3247_v29 = vrot.slane %v3246_v6, 1  ;;  %v3252_v11 = vrot.slane %v3251_v14, 2  ;;  %v2592_v30 = vsub.f32 1.0, %v2591_v62  ;;  %vm2595_vm12 = vweird.f32 %v6774_v35 }
 0x331   :  { %v3041_v44 = vmul.f32 %v4416_v7, %v7853_v38  ;;  %vm3046_vm2 = vweird.f32 %v4416_v7  ;;  %vm7881_vm4 = vcmp.eq.f32.partialorder %v3049_v55, 8.507059e+37  ;;  %4419 = vpow2.f32 %v1769_v32 }
 0x332   :  { %v1641_v63 = vsub.f32 %v7838_v34, %v1572_v9  ;;  %v3241_v50 = vadd.f32 %v3240_v17, %v3239_v18  ;;  %v3248_v3 = vadd.f32 %v3247_v29, %v3246_v6  ;;  %v3253_v57 = vadd.f32 %v3252_v11, %v3251_v14  ;;  %v7886_v5 = vpop.eup %4417  ;;  %vm3047_vm3 = vmor %vm3045_vm1, %vm3046_vm2 }
 0x333   :  { %v3258_v43 = vadd.f32 %v3257_v12, %v3256_v37  ;;  %v3042_v13 = vsub.f32 1.0, %v3041_v44  ;;  %v2593_v26 = vmul.f32 %v6841_v40, %v2592_v30  ;;  %vm2596_vm10 = vweird.f32 %v6841_v40 }
 0x334   :  { %v1767_v53 = vmul.f32 1.442695, %v1641_v63  ;;  %v2137_v0 = vrot.slane %v7886_v5, 4  ;;  %v3254_v19 = vrot.slane %v3253_v57, 1  ;;  %v3713_v36 = vsel %vm3699_vm6, %v3248_v3, %v3241_v50  ;;  %vm7897_vm11 = vmor %vm2595_vm12, %vm2596_vm10 }
 0x335   :  { %v3259_v55 = vrot.slane %v3258_v43, 2  ;;  %v3043_v20 = vmul.f32 %v4416_v7, %v3042_v13  ;;  %v2594_v34 = vadd.f32 %v6841_v40, %v2593_v26  ;;  %v2599_v1 = vand.u32 2147483647, %v6774_v35 }
 0x336   :  { %4421 = vpow2.f32 %v1767_v53  ;;  %v2138_v61 = vadd.f32 %v7886_v5, %v2137_v0  ;;  %v3255_v18 = vadd.f32 %v3254_v19, %v3253_v57  ;;  %v2601_v37 = vand.u32 2147483648, %v6774_v35 }
 0x337   :  { %v3260_v6 = vadd.f32 %v3259_v55, %v3258_v43  ;;  %v7902_v62 = vpop.eup %4419  ;;  %v3044_v32 = vadd.f32 %v4416_v7, %v3043_v20  ;;  %v2598_v9 = vsel %vm7897_vm11, %v6841_v40, %v2594_v34  ;;  %vm7907_vm15 = vcmp.eq.f32.partialorder %v2599_v1, 8.507059e+37 }
 0x338   :  { %v2606_v12 = vmul.f32 %v6920_v10, %v6855_v45  ;;  %v2139_v29 = vrot.slane %v2138_v61, 2  ;;  %v2149_v35 = vrot.slane %v7902_v62, 4  ;;  %v3714_v30 = vsel %vm3701_vm7, %v3255_v18, %v3713_v36 }
 0x339   :  { %v3261_v11 = vrot.slane %v3260_v6, 1  ;;  %v3048_v44 = vsel %vm3047_vm3, %v4416_v7, %v3044_v32  ;;  %v2602_v63 = vor.u32 1.1754944e-38, %v2601_v37  ;;  %vm2610_vm5 = vweird.f32 %v6855_v45 }
 0x33a   :  { %v2607_v40 = vsub.f32 1.0, %v2606_v12  ;;  %v3053_v50 = vsel %vm7881_vm4, %v7873_v39, %v3048_v44  ;;  %v2140_v3 = vadd.f32 %v2139_v29, %v2138_v61  ;;  %v2150_v57 = vadd.f32 %v7902_v62, %v2149_v35 }
 0x33b   :  { %v3262_v38 = vadd.f32 %v3261_v11, %v3260_v6  ;;  %v7926_v13 = vmul.f32 %v7812_v33, %v3053_v50  ;;  %v2603_v7 = vsel %vm7907_vm15, %v2602_v63, %v2598_v9  ;;  %vm2611_vm13 = vweird.f32 %v6920_v10  ;;  %v8845_v11 = vld [vmem:[#allocation35_spill] sm:$0xff]  ;;  %v8846_v63 = vld [vmem:[#allocation29_spill] sm:$0xff] }
 0x33c   :  { %v7923_v43 = vpop.eup %4421  ;;  %v2608_v53 = vmul.f32 %v6920_v10, %v2607_v40  ;;  %v2141_v26 = vrot.slane %v2140_v3, 1  ;;  %v2151_v0 = vrot.slane %v2150_v57, 2  ;;  %v2604_v55 = vmul.f32 %v6631_v22, %v2603_v7  ;;  %vm7946_vm1 = vmor %vm2610_vm5, %vm2611_vm13 }
 0x33d   :  { %v2143_v39 = vrot.slane %v7923_v43, 4  ;;  %v3715_v27 = vsel %vm3703_vm8, %v3262_v38, %v3714_v30  ;;  %v2614_v36 = vand.u32 2147483647, %v6855_v45  ;;  %vm8839_vm14 = vcmask 1045509   ;;  %v8849_v38 = vld [vmem:[#allocation37_spill] sm:$0xff] }
 0x33e   :  { %v3716_v19 = vsel %vm3705_vm9, %v7849_v25, %v3715_v27  ;;  %v2609_v33 = vadd.f32 %v6920_v10, %v2608_v53  ;;  %v7939_v20 = vadd.f32 %v2141_v26, %v2140_v3  ;;  %v2152_v34 = vadd.f32 %v2151_v0, %v2150_v57  ;;  %v8850_v53 = vld [vmem:[#allocation26_spill] sm:$0xff] }
 0x33f   :  { %v2144_v1 = vadd.f32 %v7923_v43, %v2143_v39  ;;  %v3717_v61 = vsel %vm8839_vm14, %v7851_v21, %v3716_v19  ;;  %vm8842_vm12 = vcmask 1046534   ;;  %vm2615_vm2 = vcmp.eq.f32.partialorder %v2614_v36, 8.507059e+37  ;;  %v8852_v39 = vld [vmem:[#allocation43_spill] sm:$0xff]  ;;  %v8853_v19 = vld [vmem:[#allocation92_spill] sm:$0xff] }
 0x340   :  { %v3718_v22 = vsel %vm8842_vm12, %v7859_v23, %v3717_v61  ;;  %v2613_v25 = vsel %vm7946_vm1, %v6920_v10, %v2609_v33  ;;  %v2616_v6 = vand.u32 2147483648, %v6855_v45  ;;  %4423 = vrcp.f32 %v7939_v20 }
 0x341   :  { %v2153_v14 = vrot.slane %v2152_v34, 1  ;;  %v2145_v21 = vrot.slane %v2144_v1, 2  ;;  %vm8843_vm4 = vcmask 1047559   ;;  %v2621_v23 = vmul.f32 %v7450_v8, %v7417_v46 }
 0x342   :  { %v3719_v37 = vsel %vm8843_vm4, %v7870_v15, %v3718_v22  ;;  %v2617_v32 = vor.u32 1.1754944e-38, %v2616_v6  ;;  %vm2625_vm10 = vweird.f32 %v7417_v46  ;;  %vm2626_vm11 = vweird.f32 %v7450_v8  ;;  %v8844_v15 = vld [vmem:[#allocation33_spill] sm:$0xff] }
 0x343   :  { %3764 = vrot.lane.b32.xlu2 %v3719_v37, %s4458_s7  ;;  %v7964_v10 = vadd.f32 %v2153_v14, %v2152_v34  ;;  %v2146_v45 = vadd.f32 %v2145_v21, %v2144_v1  ;;  %v2629_v9 = vand.u32 2147483647, %v7417_v46  ;;  %v2631_v17 = vand.u32 2147483648, %v7417_v46  ;;  %v8855_v34 = vld [vmem:[#allocation31_spill] sm:$0xff]  ;;  %vm2627_vm3 = vmor %vm2625_vm10, %vm2626_vm11 }
 0x344   :  { %v2618_v12 = vsel %vm2615_vm2, %v2617_v32, %v2613_v25  ;;  %v2622_v29 = vsub.f32 1.0, %v2621_v23  ;;  %v3142_v35 = vmul.f32 %v6850_v58, %v8844_v15  ;;  %v3143_v30 = vmul.f32 %v6871_v31, %v8845_v11 }
 0x345   :  { %4425 = vrcp.f32 %v7964_v10  ;;  %v2147_v44 = vrot.slane %v2146_v45, 1  ;;  %v2619_v40 = vmul.f32 %v8846_v63, %v2618_v12  ;;  %vm7974_vm15 = vcmp.eq.f32.partialorder %v2629_v9, 8.507059e+37 }
 0x346   :  { %v2623_v3 = vmul.f32 %v7450_v8, %v2622_v29  ;;  %v2632_v57 = vor.u32 1.1754944e-38, %v2631_v17  ;;  %v3144_v7 = vmul.f32 %v2604_v55, %v8849_v38  ;;  %v8851_v58 = vrot.slane %v8850_v53, 4  ;;  %v7983_v0 = vpop.eup %4423 }
 0x347   :  { %v7985_v31 = vadd.f32 %v2147_v44, %v2146_v45  ;;  %v3145_v27 = vmul.f32 %v2619_v40, %v8852_v39  ;;  %v8854_v33 = vrot.slane %v8853_v19, 4  ;;  %v3361_v1 = vsel %vm52_vm0, %v8855_v34, 0.0  ;;  %v8856_v40 = vld [vmem:[#allocation48_spill] sm:$0xff] }
 0x348   :  { %v3349_v26 = vadd.f32 %v8851_v58, %v8850_v53  ;;  %v2624_v61 = vadd.f32 %v7450_v8, %v2623_v3  ;;  %v3362_v18 = vrot.slane %v3361_v1, 4  ;;  %v3368_v22 = vsel %vm52_vm0, %v3142_v35, 0.0 }
 0x349   :  { %v3356_v36 = vadd.f32 %v8854_v33, %v8853_v19  ;;  %4427 = vrcp.f32 %v7985_v31  ;;  %v3369_v6 = vrot.slane %v3368_v22, 4  ;;  %v3375_v14 = vsel %vm52_vm0, %v3143_v30, 0.0 }
 0x34a   :  { %v3350_v55 = vrot.slane %v3349_v26, 2  ;;  %v2628_v21 = vsel %vm2627_vm3, %v7450_v8, %v2624_v61  ;;  %v3363_v32 = vadd.f32 %v3362_v18, %v3361_v1  ;;  %v3376_v23 = vrot.slane %v3375_v14, 4 }
 0x34b   :  { %v3357_v25 = vrot.slane %v3356_v36, 2  ;;  %v8002_v45 = vpop.eup %4425  ;;  %v2633_v9 = vsel %vm7974_vm15, %v2632_v57, %v2628_v21  ;;  %v3370_v12 = vadd.f32 %v3369_v6, %v3368_v22  ;;  %v3382_v29 = vsel %vm52_vm0, %v3144_v7, 0.0 }
 0x34c   :  { %v3351_v37 = vadd.f32 %v3350_v55, %v3349_v26  ;;  %v2634_v46 = vmul.f32 %v7296_v42, %v2633_v9  ;;  %v3364_v35 = vrot.slane %v3363_v32, 2  ;;  %v3377_v11 = vadd.f32 %v3376_v23, %v3375_v14 }
 0x34d   :  { %v3358_v17 = vadd.f32 %v3357_v25, %v3356_v36  ;;  %v3371_v44 = vrot.slane %v3370_v12, 2  ;;  %v3383_v8 = vrot.slane %v3382_v29, 4  ;;  %v3389_v63 = vsel %vm52_vm0, %v3145_v27, 0.0 }
 0x34e   :  { %v3352_v15 = vrot.slane %v3351_v37, 1  ;;  %v3146_v3 = vmul.f32 %v2634_v46, %v8856_v40  ;;  %v3365_v53 = vadd.f32 %v3364_v35, %v3363_v32  ;;  %v3378_v50 = vrot.slane %v3377_v11, 2 }
 0x34f   :  { %v3359_v30 = vrot.slane %v3358_v17, 1  ;;  %v8010_v57 = vpop.eup %4427  ;;  %v3372_v26 = vadd.f32 %v3371_v44, %v3370_v12  ;;  %v3384_v7 = vadd.f32 %v3383_v8, %v3382_v29  ;;  %v3390_v39 = vrot.slane %v3389_v63, 4 }
 0x350   :  { %v3353_v38 = vadd.f32 %v3352_v15, %v3351_v37  ;;  %v3366_v42 = vrot.slane %v3365_v53, 1  ;;  %v3379_v19 = vadd.f32 %v3378_v50, %v3377_v11  ;;  %v3396_v33 = vsel %vm52_vm0, %v3146_v3, 0.0 }
 0x351   :  { %v3360_v58 = vadd.f32 %v3359_v30, %v3358_v17  ;;  %v2831_v36 = vmul.f32 %v7395_v28, %v7089_v47  ;;  %v3373_v34 = vrot.slane %v3372_v26, 1  ;;  %v3385_v27 = vrot.slane %v3384_v7, 2 }
 0x352   :  { %v3391_v1 = vadd.f32 %v3390_v39, %v3389_v63  ;;  %v3397_v61 = vrot.slane %v3396_v33, 4  ;;  %v3367_v55 = vadd.f32 %v3366_v42, %v3365_v53  ;;  %v3380_v18 = vrot.slane %v3379_v19, 1 }
 0x353   :  { %v3727_v22 = vsel %vm3699_vm6, %v3360_v58, %v3353_v38  ;;  %v2832_v25 = vsub.f32 1.0, %v2831_v36  ;;  %v3374_v6 = vadd.f32 %v3373_v34, %v3372_v26  ;;  %v3386_v14 = vadd.f32 %v3385_v27, %v3384_v7  ;;  %v8859_v38 = vld [vmem:[#allocation13_spill] sm:$0xff]  ;;  %v8863_v34 = vld [vmem:[#allocation87_spill] sm:$0xff] }
 0x354   :  { %v3392_v21 = vrot.slane %v3391_v1, 2  ;;  %v3398_v37 = vadd.f32 %v3397_v61, %v3396_v33  ;;  %v3381_v32 = vadd.f32 %v3380_v18, %v3379_v19  ;;  %v3728_v23 = vsel %vm3701_vm7, %v3367_v55, %v3727_v22  ;;  %v8862_v36 = vld [vmem:[#allocation89_spill] sm:$0xff]  ;;  %v8881_v18 = vld [vmem:[#allocation38_spill] sm:$0xff] }
 0x355   :  { %v2833_v9 = vmul.f32 %v7395_v28, %v2832_v25  ;;  %vm2835_vm5 = vweird.f32 %v7089_v47  ;;  %v3387_v17 = vrot.slane %v3386_v14, 1  ;;  %v3729_v46 = vsel %vm3703_vm8, %v3374_v6, %v3728_v23  ;;  %v8869_v23 = vld [vmem:[#allocation91_spill] sm:$0xff] }
 0x356   :  { %v3393_v12 = vadd.f32 %v3392_v21, %v3391_v1  ;;  %v3399_v29 = vrot.slane %v3398_v37, 2  ;;  %v3730_v15 = vsel %vm3705_vm9, %v3381_v32, %v3729_v46  ;;  %vm2836_vm13 = vweird.f32 %v7395_v28  ;;  %v8864_v1 = vld [vmem:[#allocation34_spill] sm:$0xff]  ;;  %v8868_v32 = vld [vmem:[#allocation27_spill] sm:$0xff] }
 0x357   :  { %v2834_v35 = vadd.f32 %v7395_v28, %v2833_v9  ;;  %v2839_v11 = vand.u32 2147483647, %v7089_v47  ;;  %v3388_v30 = vadd.f32 %v3387_v17, %v3386_v14  ;;  %vm8024_vm14 = vmor %vm2835_vm5, %vm2836_vm13  ;;  %v2841_v40 = vand.u32 2147483648, %v7089_v47 }
 0x358   :  { %v3394_v44 = vrot.slane %v3393_v12, 1  ;;  %v3400_v8 = vadd.f32 %v3399_v29, %v3398_v37  ;;  %v2846_v53 = vmul.f32 %v8859_v38, %v7068_v2  ;;  %vm2850_vm12 = vweird.f32 %v7068_v2  ;;  %v8871_v29 = vld [vmem:[#allocation21_spill] sm:$0xff] }
 0x359   :  { %v2838_v3 = vsel %vm8024_vm14, %v7395_v28, %v2834_v35  ;;  %vm2840_vm1 = vcmp.eq.f32.partialorder %v2839_v11, 8.507059e+37  ;;  %vm8860_vm2 = vcmask 1045509   ;;  %v2842_v7 = vor.u32 1.1754944e-38, %v2841_v40  ;;  %v8873_v11 = vld [vmem:[#allocation19_spill] sm:$0xff] }
 0x35a   :  { %v3395_v50 = vadd.f32 %v3394_v44, %v3393_v12  ;;  %v3401_v58 = vrot.slane %v3400_v8, 1  ;;  %v3731_v26 = vsel %vm8860_vm2, %v3388_v30, %v3730_v15  ;;  %v2847_v39 = vsub.f32 1.0, %v2846_v53  ;;  %v8870_v12 = vld [vmem:[#allocation39_spill] sm:$0xff]  ;;  %v8872_v15 = vld [vmem:[#allocation40_spill] sm:$0xff] }
 0x35b   :  { %vm2851_vm4 = vweird.f32 %v8859_v38  ;;  %v2854_v47 = vand.u32 2147483647, %v7068_v2  ;;  %v2856_v42 = vand.u32 2147483648, %v7068_v2  ;;  %vm8861_vm10 = vcmask 1046534   ;;  %v8877_v2 = vld [vmem:[#allocation86_spill] sm:$0xff] }
 0x35c   :  { %v3402_v19 = vadd.f32 %v3401_v58, %v3400_v8  ;;  %v3732_v28 = vsel %vm8861_vm10, %v3395_v50, %v3731_v26  ;;  %v2843_v33 = vsel %vm2840_vm1, %v2842_v7, %v2838_v3  ;;  %v2861_v27 = vmul.f32 %v8863_v34, %v8862_v36  ;;  %vm2852_vm13 = vmor %vm2850_vm12, %vm2851_vm4  ;;  %v8879_v7 = vld [vmem:[#allocation22_spill] sm:$0xff] }
 0x35d   :  { %v2844_v61 = vmul.f32 %v8864_v1, %v2843_v33  ;;  %v2848_v55 = vmul.f32 %v8859_v38, %v2847_v39  ;;  %vm8044_vm11 = vcmp.eq.f32.partialorder %v2854_v47, 8.507059e+37  ;;  %v2857_v22 = vor.u32 1.1754944e-38, %v2856_v42  ;;  %v8880_v47 = vld [vmem:[#allocation93_spill] sm:$0xff] }
 0x35e   :  { %vm8867_vm15 = vcmask 1047559   ;;  %v2862_v6 = vsub.f32 1.0, %v2861_v27  ;;  %vm2865_vm3 = vweird.f32 %v8862_v36  ;;  %vm2866_vm5 = vweird.f32 %v8863_v34 }
 0x35f   :  { %v3733_v25 = vsel %vm8867_vm15, %v3402_v19, %v3732_v28  ;;  %v2849_v14 = vadd.f32 %v8859_v38, %v2848_v55  ;;  %v2869_v21 = vand.u32 2147483647, %v8862_v36  ;;  %v2871_v37 = vand.u32 2147483648, %v8862_v36  ;;  %vm2867_vm1 = vmor %vm2865_vm3, %vm2866_vm5 }
 0x360   :  { %3768 = vrot.lane.b32.xlu2 %v3733_v25, %s4458_s7  ;;  %v3158_v9 = vmul.f32 %v8869_v23, %v8868_v32  ;;  %v2863_v17 = vmul.f32 %v8863_v34, %v2862_v6  ;;  %v3159_v46 = vmul.f32 %v8871_v29, %v8870_v12  ;;  %v3160_v35 = vmul.f32 %v2844_v61, %v8872_v15  ;;  %v8883_v12 = vld [vmem:[#allocation42_spill] sm:$0xff] }
 0x361   :  { %v8874_v30 = vrot.slane %v8873_v11, 4  ;;  %v2853_v8 = vsel %vm2852_vm13, %v8859_v38, %v2849_v14  ;;  %vm8069_vm14 = vcmp.eq.f32.partialorder %v2869_v21, 8.507059e+37  ;;  %v2872_v40 = vor.u32 1.1754944e-38, %v2871_v37  ;;  %v8882_v14 = vld [vmem:[#allocation16_spill] sm:$0xff] }
 0x362   :  { %v8878_v3 = vrot.slane %v8877_v2, 4  ;;  %v2858_v50 = vsel %vm8044_vm11, %v2857_v22, %v2853_v8  ;;  %v2864_v58 = vadd.f32 %v8863_v34, %v2863_v17  ;;  %v3473_v39 = vsel %vm52_vm0, %v8879_v7, 0.0 }
 0x363   :  { %v3461_v44 = vadd.f32 %v8874_v30, %v8873_v11  ;;  %v2859_v38 = vmul.f32 %v8880_v47, %v2858_v50  ;;  %v3474_v19 = vrot.slane %v3473_v39, 4  ;;  %v3480_v28 = vsel %vm52_vm0, %v3158_v9, 0.0  ;;  %v3797_v30 = vld [vmem:[%s8341_s8 + $0x18] sm:$0xff] }
 0x364   :  { %v3468_v53 = vadd.f32 %v8878_v3, %v8877_v2  ;;  %v2868_v33 = vsel %vm2867_vm1, %v8863_v34, %v2864_v58  ;;  %v3481_v1 = vrot.slane %v3480_v28, 4  ;;  %v3487_v61 = vsel %vm52_vm0, %v3159_v46, 0.0 }
 0x365   :  { %v3462_v26 = vrot.slane %v3461_v44, 2  ;;  %v2873_v55 = vsel %vm8069_vm14, %v2872_v40, %v2868_v33  ;;  %v3161_v22 = vmul.f32 %v2859_v38, %v8881_v18  ;;  %v3475_v6 = vadd.f32 %v3474_v19, %v3473_v39 }
 0x366   :  { %v3469_v42 = vrot.slane %v3468_v53, 2  ;;  %v2874_v36 = vmul.f32 %v8882_v14, %v2873_v55  ;;  %v3482_v37 = vadd.f32 %v3481_v1, %v3480_v28  ;;  %v3488_v32 = vrot.slane %v3487_v61, 4 }
 0x367   :  { %v3463_v27 = vadd.f32 %v3462_v26, %v3461_v44  ;;  %v3476_v9 = vrot.slane %v3475_v6, 2  ;;  %v3494_v34 = vsel %vm52_vm0, %v3160_v35, 0.0  ;;  %v3501_v17 = vsel %vm52_vm0, %v3161_v22, 0.0 }
 0x368   :  { %v3470_v25 = vadd.f32 %v3469_v42, %v3468_v53  ;;  %v3162_v29 = vmul.f32 %v2874_v36, %v8883_v12  ;;  %v3483_v15 = vrot.slane %v3482_v37, 2  ;;  %v3489_v11 = vadd.f32 %v3488_v32, %v3487_v61 }
 0x369   :  { %v3464_v21 = vrot.slane %v3463_v27, 1  ;;  %v3477_v8 = vadd.f32 %v3476_v9, %v3475_v6  ;;  %v3495_v63 = vrot.slane %v3494_v34, 4  ;;  %v3502_v40 = vrot.slane %v3501_v17, 4 }
 0x36a   :  { %v3471_v23 = vrot.slane %v3470_v25, 1  ;;  %v3484_v2 = vadd.f32 %v3483_v15, %v3482_v37  ;;  %v3490_v3 = vrot.slane %v3489_v11, 2  ;;  %v3508_v53 = vsel %vm52_vm0, %v3162_v29, 0.0 }
 0x36b   :  { %v3465_v46 = vadd.f32 %v3464_v21, %v3463_v27  ;;  %vm3802_vm12 = vcmask 523264   ;;  %v3478_v35 = vrot.slane %v3477_v8, 1  ;;  %v3496_v50 = vadd.f32 %v3495_v63, %v3494_v34 }
 0x36c   :  { %v3472_v44 = vadd.f32 %v3471_v23, %v3470_v25  ;;  %v3503_v58 = vadd.f32 %v3502_v40, %v3501_v17  ;;  %v3509_v26 = vrot.slane %v3508_v53, 4  ;;  %4011 = vmatpush.xpose.msk.msrb.mxu2 %vm3802_vm12, %v3797_v30  ;;  %v3485_v7 = vrot.slane %v3484_v2, 1 }
 0x36d   :  { %v3491_v39 = vadd.f32 %v3490_v3, %v3489_v11  ;;  %v2951_v38 = vmul.f32 %v7567_v4, %v7489_v60  ;;  %v3479_v42 = vadd.f32 %v3478_v35, %v3477_v8  ;;  %v3497_v19 = vrot.slane %v3496_v50, 2  ;;  %v3796_v11 = vld [vmem:[%s8341_s8 + $0x10] sm:$0xff] }
 0x36e   :  { %v3741_v47 = vsel %vm3699_vm6, %v3472_v44, %v3465_v46  ;;  %v3504_v28 = vrot.slane %v3503_v58, 2  ;;  %v3510_v33 = vadd.f32 %v3509_v26, %v3508_v53  ;;  %v3486_v27 = vadd.f32 %v3485_v7, %v3484_v2  ;;  %v8890_v7 = vld [vmem:[#allocation20_spill] sm:$0xff] }
 0x36f   :  { %v3492_v1 = vrot.slane %v3491_v39, 1  ;;  %v2952_v61 = vsub.f32 1.0, %v2951_v38  ;;  %vm2955_vm2 = vweird.f32 %v7489_v60  ;;  %v3498_v55 = vadd.f32 %v3497_v19, %v3496_v50  ;;  %v8887_v50 = vld [vmem:[#allocation36_spill] sm:$0xff] }
 0x370   :  { %v3505_v18 = vadd.f32 %v3504_v28, %v3503_v58  ;;  %v3511_v22 = vrot.slane %v3510_v33, 2  ;;  %v3742_v25 = vsel %vm3701_vm7, %v3479_v42, %v3741_v47  ;;  %vm2956_vm4 = vweird.f32 %v7567_v4  ;;  %4012 = vmatpush.xpose.msk.msrb.mxu2 %vm3802_vm12, %v3796_v11  ;;  %v8904_v26 = vld [vmem:[#allocation88_spill] sm:$0xff] }
 0x371   :  { %v3493_v6 = vadd.f32 %v3492_v1, %v3491_v39  ;;  %v3743_v14 = vsel %vm3703_vm8, %v3486_v27, %v3742_v25  ;;  %v2953_v36 = vmul.f32 %v7567_v4, %v2952_v61  ;;  %v3499_v21 = vrot.slane %v3498_v55, 1  ;;  %vm2957_vm10 = vmor %vm2955_vm2, %vm2956_vm4  ;;  %v8891_v39 = vld [vmem:[#allocation25_spill] sm:$0xff]  ;;  %v8893_v1 = vld [vmem:[#allocation24_spill] sm:$0xff] }
 0x372   :  { %v3506_v37 = vrot.slane %v3505_v18, 1  ;;  %v3512_v32 = vadd.f32 %v3511_v22, %v3510_v33  ;;  %v2959_v23 = vand.u32 2147483647, %v7489_v60  ;;  %v2961_v17 = vand.u32 2147483648, %v7489_v60  ;;  %v8892_v27 = vld [vmem:[#allocation49_spill] sm:$0xff]  ;;  %v8895_v25 = vld [vmem:[#allocation52_spill] sm:$0xff] }
 0x373   :  { %v3744_v9 = vsel %vm3705_vm9, %v3493_v6, %v3743_v14  ;;  %v2954_v34 = vadd.f32 %v7567_v4, %v2953_v36  ;;  %v2966_v12 = vmul.f32 %v7547_v41, %v7459_v24  ;;  %v3500_v29 = vadd.f32 %v3499_v21, %v3498_v55  ;;  %v8896_v14 = vld [vmem:[#allocation17_spill] sm:$0xff] }
 0x374   :  { %v3507_v46 = vadd.f32 %v3506_v37, %v3505_v18  ;;  %v3513_v15 = vrot.slane %v3512_v32, 1  ;;  %vm2960_vm11 = vcmp.eq.f32.partialorder %v2959_v23, 8.507059e+37  ;;  %v2962_v44 = vor.u32 1.1754944e-38, %v2961_v17  ;;  %v8894_v18 = vld [vmem:[#allocation50_spill] sm:$0xff] }
 0x375   :  { %v2958_v30 = vsel %vm2957_vm10, %v7567_v4, %v2954_v34  ;;  %v2967_v8 = vsub.f32 1.0, %v2966_v12  ;;  %vm2970_vm15 = vweird.f32 %v7459_v24  ;;  %vm8884_vm3 = vcmask 1045509  }
 0x376   :  { %v3514_v63 = vadd.f32 %v3513_v15, %v3512_v32  ;;  %v3745_v40 = vsel %vm8884_vm3, %v3500_v29, %v3744_v9  ;;  %vm2971_vm5 = vweird.f32 %v7547_v41  ;;  %v2974_v60 = vand.u32 2147483647, %v7459_v24 }
 0x377   :  { %vm8885_vm13 = vcmask 1046534   ;;  %v2963_v3 = vsel %vm2960_vm11, %v2962_v44, %v2958_v30  ;;  %v2968_v53 = vmul.f32 %v7547_v41, %v2967_v8  ;;  %v2976_v4 = vand.u32 2147483648, %v7459_v24  ;;  %vm2972_vm10 = vmor %vm2970_vm15, %vm2971_vm5  ;;  %v8903_v44 = vld [vmem:[#allocation51_spill] sm:$0xff] }
 0x378   :  { %v3746_v2 = vsel %vm8885_vm13, %v3507_v46, %v3745_v40  ;;  %vm8886_vm14 = vcmask 1047559   ;;  %v2964_v58 = vmul.f32 %v8887_v50, %v2963_v3  ;;  %vm8131_vm1 = vcmp.eq.f32.partialorder %v2974_v60, 8.507059e+37 }
 0x379   :  { %v3747_v35 = vsel %vm8886_vm14, %v3514_v63, %v3746_v2  ;;  %v2981_v47 = vmul.f32 %v8891_v39, %v8890_v7  ;;  %v2969_v38 = vadd.f32 %v7547_v41, %v2968_v53  ;;  %v2977_v42 = vor.u32 1.1754944e-38, %v2976_v4 }
 0x37a   :  { %3772 = vrot.lane.b32.xlu0 %v3747_v35, %s4458_s7  ;;  %vm2985_vm2 = vweird.f32 %v8890_v7  ;;  %vm2986_vm4 = vweird.f32 %v8891_v39  ;;  %v2989_v28 = vand.u32 2147483647, %v8890_v7  ;;  %v2991_v33 = vand.u32 2147483648, %v8890_v7 }
 0x37b   :  { %v2982_v19 = vsub.f32 1.0, %v2981_v47  ;;  %v3166_v61 = vmul.f32 %v8893_v1, %v8892_v27  ;;  %v2973_v55 = vsel %vm2972_vm10, %v7547_v41, %v2969_v38  ;;  %v3167_v22 = vmul.f32 %v7674_v48, %v8894_v18  ;;  %v8900_v41 = vld [vmem:[#allocation18_spill] sm:$0xff]  ;;  %v8901_v48 = vld [vmem:[#allocation23_spill] sm:$0xff]  ;;  %vm2987_vm15 = vmor %vm2985_vm2, %vm2986_vm4 }
 0x37c   :  { %v3168_v6 = vmul.f32 %v2964_v58, %v8895_v25  ;;  %v8897_v36 = vrot.slane %v8896_v14, 4  ;;  %v2978_v21 = vsel %vm8131_vm1, %v2977_v42, %v2973_v55  ;;  %vm8159_vm11 = vcmp.eq.f32.partialorder %v2989_v28, 8.507059e+37  ;;  %v8905_v27 = vld [vmem:[#allocation53_spill] sm:$0xff] }
 0x37d   :  { %v2983_v37 = vmul.f32 %v8891_v39, %v2982_v19  ;;  %v2992_v23 = vor.u32 1.1754944e-38, %v2991_v33  ;;  %v2979_v9 = vmul.f32 %v8900_v41, %v2978_v21  ;;  %v8902_v17 = vrot.slane %v8901_v48, 4 }
 0x37e   :  { %v3517_v24 = vadd.f32 %v8897_v36, %v8896_v14  ;;  %v3529_v29 = vsel %vm52_vm0, %v7626_v49, 0.0  ;;  %v3536_v11 = vsel %vm52_vm0, %v3166_v61, 0.0  ;;  %v3543_v30 = vsel %vm52_vm0, %v3167_v22, 0.0 }
 0x37f   :  { %v3524_v12 = vadd.f32 %v8902_v17, %v8901_v48  ;;  %v2984_v46 = vadd.f32 %v8891_v39, %v2983_v37  ;;  %v3530_v15 = vrot.slane %v3529_v29, 4  ;;  %v3169_v8 = vmul.f32 %v2979_v9, %v8903_v44 }
 0x380   :  { %v3518_v34 = vrot.slane %v3517_v24, 2  ;;  %v3537_v60 = vrot.slane %v3536_v11, 4  ;;  %v3544_v3 = vrot.slane %v3543_v30, 4  ;;  %v3550_v53 = vsel %vm52_vm0, %v3168_v6, 0.0 }
 0x381   :  { %v3525_v40 = vrot.slane %v3524_v12, 2  ;;  %v2988_v2 = vsel %vm2987_vm15, %v8891_v39, %v2984_v46  ;;  %v3531_v49 = vadd.f32 %v3530_v15, %v3529_v29  ;;  %v3551_v42 = vrot.slane %v3550_v53, 4 }
 0x382   :  { %v3519_v63 = vadd.f32 %v3518_v34, %v3517_v24  ;;  %v2993_v4 = vsel %vm8159_vm11, %v2992_v23, %v2988_v2  ;;  %v3538_v58 = vadd.f32 %v3537_v60, %v3536_v11  ;;  %v3545_v38 = vadd.f32 %v3544_v3, %v3543_v30 }
 0x383   :  { %v3526_v50 = vadd.f32 %v3525_v40, %v3524_v12  ;;  %v2994_v7 = vmul.f32 %v8904_v26, %v2993_v4  ;;  %v3532_v47 = vrot.slane %v3531_v49, 2  ;;  %v3557_v39 = vsel %vm52_vm0, %v3169_v8, 0.0  ;;  %v3795_v4 = vld [vmem:[%s8341_s8 + $0x8] sm:$0xff] }
 0x384   :  { %v3520_v35 = vrot.slane %v3519_v63, 1  ;;  %v3539_v33 = vrot.slane %v3538_v58, 2  ;;  %v3546_v55 = vrot.slane %v3545_v38, 2  ;;  %v3552_v18 = vadd.f32 %v3551_v42, %v3550_v53  ;;  %4013 = vmatpush.xpose.msk.msrb.mxu2 %vm3802_vm12, %v3795_v4  ;;  %v3794_v42 = vld [vmem:[%s8341_s8] sm:$0xff] }
 0x385   :  { %v3527_v28 = vrot.slane %v3526_v50, 1  ;;  %v3170_v1 = vmul.f32 %v2994_v7, %v8905_v27  ;;  %v3533_v61 = vadd.f32 %v3532_v47, %v3531_v49  ;;  %v3558_v6 = vrot.slane %v3557_v39, 4 }
 0x386   :  { %v3521_v19 = vadd.f32 %v3520_v35, %v3519_v63  ;;  %v3540_v25 = vadd.f32 %v3539_v33, %v3538_v58  ;;  %v3071_v14 = vmul.f32 %v7983_v0, %v7939_v20  ;;  %v3547_v24 = vadd.f32 %v3546_v55, %v3545_v38 }
 0x387   :  { %v3528_v22 = vadd.f32 %v3527_v28, %v3526_v50  ;;  %v3534_v36 = vrot.slane %v3533_v61, 1  ;;  %v3553_v21 = vrot.slane %v3552_v18, 2  ;;  %v3564_v37 = vsel %vm52_vm0, %v3170_v1, 0.0 }
 0x388   :  { %v3541_v32 = vrot.slane %v3540_v25, 1  ;;  %v3559_v23 = vadd.f32 %v3558_v6, %v3557_v39  ;;  %v3565_v41 = vrot.slane %v3564_v37, 4  ;;  %v3548_v48 = vrot.slane %v3547_v24, 1  ;;  %4014 = vmatpush.xpose.msk.msrb.mxu2 %vm3802_vm12, %v3794_v42 }
 0x389   :  { %v3748_v9 = vsel %vm3699_vm6, %v3528_v22, %v3521_v19  ;;  %v3535_v34 = vadd.f32 %v3534_v36, %v3533_v61  ;;  %v3554_v17 = vadd.f32 %v3553_v21, %v3552_v18  ;;  %v3072_v12 = vsub.f32 1.0, %v3071_v14 }
 0x38a   :  { %v3542_v29 = vadd.f32 %v3541_v32, %v3540_v25  ;;  %v3560_v46 = vrot.slane %v3559_v23, 2  ;;  %v3566_v15 = vadd.f32 %v3565_v41, %v3564_v37  ;;  %vm3075_vm3 = vweird.f32 %v7939_v20  ;;  %v8913_v32 = vld [vmem:[#allocation58_spill] sm:$0xff] }
 0x38b   :  { %v3549_v11 = vadd.f32 %v3548_v48, %v3547_v24  ;;  %v3555_v30 = vrot.slane %v3554_v17, 1  ;;  %v3749_v44 = vsel %vm3701_vm7, %v3535_v34, %v3748_v9  ;;  %v3073_v8 = vmul.f32 %v7983_v0, %v3072_v12  ;;  %v8914_v9 = vld [vmem:[#allocation57_spill] sm:$0xff] }
 0x38c   :  { %v3561_v63 = vadd.f32 %v3560_v46, %v3559_v23  ;;  %v3567_v40 = vrot.slane %v3566_v15, 2  ;;  %v3750_v60 = vsel %vm3703_vm8, %v3542_v29, %v3749_v44  ;;  %vm3076_vm5 = vweird.f32 %v7983_v0  ;;  %v8915_v48 = vld [vmem:[#allocation61_spill] sm:$0xff]  ;;  %v8916_v44 = vld [vmem:[#allocation63_spill] sm:$0xff] }
 0x38d   :  { %v3556_v2 = vadd.f32 %v3555_v30, %v3554_v17  ;;  %v3751_v49 = vsel %vm3705_vm9, %v3549_v11, %v3750_v60  ;;  %v3074_v3 = vadd.f32 %v7983_v0, %v3073_v8  ;;  %v3079_v53 = vand.u32 2147483647, %v7939_v20  ;;  %vm8201_vm13 = vmor %vm3075_vm3, %vm3076_vm5 }
 0x38e   :  { %v3562_v35 = vrot.slane %v3561_v63, 1  ;;  %v3568_v50 = vadd.f32 %v3567_v40, %v3566_v15  ;;  %v3081_v26 = vand.u32 2147483648, %v7939_v20  ;;  %v3086_v7 = vmul.f32 %v8010_v57, %v7985_v31 }
 0x38f   :  { %vm8908_vm14 = vcmask 1045509   ;;  %v3078_v38 = vsel %vm8201_vm13, %v7983_v0, %v3074_v3  ;;  %vm3080_vm1 = vcmp.eq.f32.partialorder %v3079_v53, 8.507059e+37  ;;  %vm3090_vm2 = vweird.f32 %v7985_v31  ;;  %v8917_v3 = vld [vmem:[#allocation64_spill] sm:$0xff] }
 0x390   :  { %v3752_v47 = vsel %vm8908_vm14, %v3556_v2, %v3751_v49  ;;  %v3563_v19 = vadd.f32 %v3562_v35, %v3561_v63  ;;  %v3569_v20 = vrot.slane %v3568_v50, 1  ;;  %v3082_v28 = vor.u32 1.1754944e-38, %v3081_v26 }
 0x391   :  { %v3087_v33 = vsub.f32 1.0, %v3086_v7  ;;  %vm3091_vm4 = vweird.f32 %v8010_v57  ;;  %v3094_v39 = vand.u32 2147483647, %v7985_v31  ;;  %v3096_v27 = vand.u32 2147483648, %v7985_v31 }
 0x392   :  { %v3101_v0 = vmul.f32 %v8002_v45, %v7964_v10  ;;  %v3570_v1 = vadd.f32 %v3569_v20, %v3568_v50  ;;  %vm8909_vm10 = vcmask 1046534   ;;  %v3083_v55 = vsel %vm3080_vm1, %v3082_v28, %v3078_v38  ;;  %vm3092_vm13 = vmor %vm3090_vm2, %vm3091_vm4  ;;  %v3763_v38 = vpop.permute.xlu1 %3762 }
 0x393   :  { %v3753_v61 = vsel %vm8909_vm10, %v3563_v19, %v3752_v47  ;;  %v3088_v18 = vmul.f32 %v8010_v57, %v3087_v33  ;;  %v3084_v22 = vmul.f32 %v7886_v5, %v3083_v55  ;;  %vm8226_vm11 = vcmp.eq.f32.partialorder %v3094_v39, 8.507059e+37  ;;  %vm8919_vm2 = vmmov %vm8909_vm10 }
 0x394   :  { %v3097_v6 = vor.u32 1.1754944e-38, %v3096_v27  ;;  %v3102_v14 = vsub.f32 1.0, %v3101_v0  ;;  %vm8912_vm15 = vcmask 1047559   ;;  %vm3105_vm3 = vweird.f32 %v7964_v10 }
 0x395   :  { %v3754_v36 = vsel %vm8912_vm15, %v3570_v1, %v3753_v61  ;;  %v3089_v24 = vadd.f32 %v8010_v57, %v3088_v18  ;;  %vm3106_vm5 = vweird.f32 %v8002_v45  ;;  %v3109_v21 = vand.u32 2147483647, %v7964_v10  ;;  %vm8920_vm4 = vmmov %vm8912_vm15 }
 0x396   :  { %3774 = vrot.lane.b32.xlu2 %v3754_v36, %s4458_s7  ;;  %v3103_v5 = vmul.f32 %v8002_v45, %v3102_v14  ;;  %v3111_v37 = vand.u32 2147483648, %v7964_v10  ;;  %v3174_v23 = vmul.f32 %v7926_v13, %v8913_v32  ;;  %v3175_v34 = vmul.f32 %v7844_v52, %v8914_v9  ;;  %vm3107_vm1 = vmor %vm3105_vm3, %vm3106_vm5 }
 0x397   :  { %v3093_v41 = vsel %vm3092_vm13, %v8010_v57, %v3089_v24  ;;  %v3176_v17 = vmul.f32 %v3084_v22, %v8915_v48  ;;  %v3573_v31 = vadd.f32 %v3572_v51, %v7835_v54  ;;  %vm3110_vm14 = vcmp.eq.f32.partialorder %v3109_v21, 8.507059e+37 }
 0x398   :  { %v3098_v12 = vsel %vm8226_vm11, %v3097_v6, %v3093_v41  ;;  %v3104_v29 = vadd.f32 %v8002_v45, %v3103_v5  ;;  %v3112_v46 = vor.u32 1.1754944e-38, %v3111_v37  ;;  %v3580_v57 = vadd.f32 %v3579_v56, %v7831_v16  ;;  %v3628_v41 = vld [vmem:[%s8333_s0 + $0x8] sm:$0xff] }
 0x399   :  { %v3099_v13 = vmul.f32 %v7923_v43, %v3098_v12  ;;  %v3574_v52 = vrot.slane %v3573_v31, 2  ;;  %v3585_v54 = vsel %vm52_vm0, %v7841_v59, 0.0  ;;  %v3592_v11 = vsel %vm52_vm0, %v3174_v23, 0.0 }
 0x39a   :  { %v3108_v51 = vsel %vm3107_vm1, %v8002_v45, %v3104_v29  ;;  %v3586_v15 = vrot.slane %v3585_v54, 4  ;;  %v3599_v43 = vsel %vm52_vm0, %v3175_v34, 0.0  ;;  %v3581_v63 = vrot.slane %v3580_v57, 2 }
 0x39b   :  { %v3113_v30 = vsel %vm3110_vm14, %v3112_v46, %v3108_v51  ;;  %v3177_v8 = vmul.f32 %v3099_v13, %v8916_v44  ;;  %v3575_v10 = vadd.f32 %v3574_v52, %v3573_v31  ;;  %v3593_v2 = vrot.slane %v3592_v11, 4  ;;  %v3629_v44 = vld [vmem:[%s8333_s0 + $0x10] sm:$0xff] }
 0x39c   :  { %v3114_v40 = vmul.f32 %v7902_v62, %v3113_v30  ;;  %v3587_v60 = vadd.f32 %v3586_v15, %v3585_v54  ;;  %v3600_v16 = vrot.slane %v3599_v43, 4  ;;  %v3582_v49 = vadd.f32 %v3581_v63, %v3580_v57  ;;  %v3627_v62 = vld [vmem:[%s8333_s0] sm:$0xff]  ;;  %v3767_v30 = vpop.permute.xlu0 %3766 }
 0x39d   :  { %v3576_v56 = vrot.slane %v3575_v10, 1  ;;  %v3606_v59 = vsel %vm52_vm0, %v3176_v17, 0.0  ;;  %v3613_v45 = vsel %vm52_vm0, %v3177_v8, 0.0  ;;  %v3594_v35 = vadd.f32 %v3593_v2, %v3592_v11  ;;  %v3765_v23 = vpop.permute.xlu2 %3764  ;;  %v3631_v2 = vld [vmem:[%s8333_s0 + $0x20] sm:$0xff] }
 0x39e   :  { %v3178_v53 = vmul.f32 %v3114_v40, %v8917_v3  ;;  %v3588_v4 = vrot.slane %v3587_v60, 2  ;;  %v3601_v50 = vadd.f32 %v3600_v16, %v3599_v43  ;;  %v3583_v26 = vrot.slane %v3582_v49, 1  ;;  %v3633_v3 = vld [vmem:[%s8333_s0 + $0x30] sm:$0xff] }
 0x39f   :  { %v3577_v58 = vadd.f32 %v3576_v56, %v3575_v10  ;;  %v3607_v7 = vrot.slane %v3606_v59, 4  ;;  %v3614_v47 = vrot.slane %v3613_v45, 4  ;;  %v3595_v19 = vrot.slane %v3594_v35, 2  ;;  %v3630_v10 = vld [vmem:[%s8333_s0 + $0x18] sm:$0xff]  ;;  %v3632_v56 = vld [vmem:[%s8333_s0 + $0x28] sm:$0xff] }
 0x3a0   :  { %v3589_v42 = vadd.f32 %v3588_v4, %v3587_v60  ;;  %v3602_v20 = vrot.slane %v3601_v50, 2  ;;  %v3620_v28 = vsel %vm52_vm0, %v3178_v53, 0.0  ;;  %v3584_v33 = vadd.f32 %v3583_v26, %v3582_v49  ;;  %v3771_v60 = vpop.permute.xlu1 %3770  ;;  %v3634_v4 = vld [vmem:[%s8333_s0 + $0x38] sm:$0xff]  ;;  %s4459_s0 = smov 64  }
 0x3a1   :  { %v3608_v39 = vadd.f32 %v3607_v7, %v3606_v59  ;;  %v3615_v27 = vadd.f32 %v3614_v47, %v3613_v45  ;;  %v3621_v0 = vrot.slane %v3620_v28, 4  ;;  %v3596_v61 = vadd.f32 %v3595_v19, %v3594_v35  ;;  %v4044_v7 = vld [vmem:[%s8342_s9] ss:$0 sm:$0xff]  ;;  %s4461_s9 = smov [#allocation2]  }
 0x3a2   :  { %v3590_v1 = vrot.slane %v3589_v42, 1  ;;  %v3603_v55 = vadd.f32 %v3602_v20, %v3601_v50  ;;  %v3786_v18 = vsel %vm52_vm0, %v3627_v62, %v3763_v38  ;;  %v3755_v5 = vsel %vm3699_vm6, %v3584_v33, %v3577_v58 }
 0x3a3   :  { %v3609_v22 = vrot.slane %v3608_v39, 2  ;;  %v3616_v25 = vrot.slane %v3615_v27, 2  ;;  %v3622_v6 = vadd.f32 %v3621_v0, %v3620_v28  ;;  %4015 = vmatmul.msk.f32.vlgmr.msrb.gmra.mxu2 %vm3802_vm12, %v3786_v18  ;;  %v3597_v36 = vrot.slane %v3596_v61, 1 }
 0x3a4   :  { %v3591_v14 = vadd.f32 %v3590_v1, %v3589_v42  ;;  %v3604_v24 = vrot.slane %v3603_v55, 1  ;;  %v3787_v46 = vsel %vm52_vm0, %v3628_v41, %v3765_v23  ;;  %vm8918_vm6 = vcmask 1045509  }
 0x3a5   :  { %v3610_v21 = vadd.f32 %v3609_v22, %v3608_v39  ;;  %v3617_v37 = vadd.f32 %v3616_v25, %v3615_v27  ;;  %v3623_v32 = vrot.slane %v3622_v6, 2  ;;  %v3598_v9 = vadd.f32 %v3597_v36, %v3596_v61 }
 0x3a6   :  { %v3605_v34 = vadd.f32 %v3604_v24, %v3603_v55  ;;  %v3756_v12 = vsel %vm3701_vm7, %v3591_v14, %v3755_v5  ;;  %v3788_v8 = vsel %vm52_vm0, %v3629_v44, %v3767_v30  ;;  %v3790_v16 = vsel %vm52_vm0, %v3631_v2, %v3771_v60 }
 0x3a7   :  { %v3611_v48 = vrot.slane %v3610_v21, 1  ;;  %v3618_v17 = vrot.slane %v3617_v37, 1  ;;  %v3624_v31 = vadd.f32 %v3623_v32, %v3622_v6  ;;  %v3757_v29 = vsel %vm3703_vm8, %v3598_v9, %v3756_v12 }
 0x3a8   :  { %v3758_v54 = vsel %vm3705_vm9, %v3605_v34, %v3757_v29  ;;  %vm3908_vm7 = vcmask 785408  }
 0x3a9   :  { %v3612_v13 = vadd.f32 %v3611_v48, %v3610_v21  ;;  %v3619_v52 = vadd.f32 %v3618_v17, %v3617_v37  ;;  %v3625_v57 = vrot.slane %v3624_v31, 1 }
 0x3ab   :  { %v3626_v51 = vadd.f32 %v3625_v57, %v3624_v31  ;;  %v3759_v15 = vsel %vm8918_vm6, %v3612_v13, %v3758_v54  ;;  %4016 = vmatmul.msk.f32.gmra.mxu2 %vm3802_vm12, %v3787_v46 }
 0x3ac   :  { %v3760_v11 = vsel %vm8919_vm2, %v3619_v52, %v3759_v15 }
 0x3ad   :  { %v3761_v43 = vsel %vm8920_vm4, %v3626_v51, %v3760_v11 }
 0x3ae   :  { %3776 = vrot.lane.b32.xlu1 %v3761_v43, %s4458_s7 }
 0x3b3   :  { %4017 = vmatmul.msk.f32.gmra.mxu2 %vm3802_vm12, %v3788_v8 }
 0x3ba   :  { %v3769_v63 = vpop.permute.xlu2 %3768 }
 0x3bb   :  { %v3789_v40 = vsel %vm52_vm0, %v3630_v10, %v3769_v63 }
 0x3bc   :  { %4018 = vmatmul.msk.f32.gmra.mxu2 %vm3802_vm12, %v3789_v40 }
 0x3c4   :  { %4019 = vmatmul.msk.f32.gmra.mxu2 %vm3802_vm12, %v3790_v16 }
 0x3ec   :  { %v3773_v49 = vpop.permute.xlu0 %3772 }
 0x3ed   :  { %v3791_v59 = vsel %vm52_vm0, %v3632_v56, %v3773_v49 }
 0x3ee   :  { %4020 = vmatmul.msk.f32.gmra.mxu2 %vm3802_vm12, %v3791_v59 }
 0x3f0   :  { %v3775_v45 = vpop.permute.xlu2 %3774 }
 0x3f1   :  { %v3792_v53 = vsel %vm52_vm0, %v3633_v3, %v3775_v45 }
 0x3f6   :  { %4021 = vmatmul.msk.f32.gmra.mxu2 %vm3802_vm12, %v3792_v53 }
 0x420   :  { %v3777_v35 = vpop.permute.xlu1 %3776 }
 0x421   :  { %v3793_v50 = vsel %vm52_vm0, %v3634_v4, %v3777_v35 }
 0x422   :  { %4022 = vmatmul.msk.f32.gmra.mxu2 %vm3802_vm12, %v3793_v50 }
 0x426   :  { %v3856_v58 = vpop.f32.mrf.mxu2 }
 0x427   :  { %v3857_v25 = vadd.f32 %v4044_v7, %v3856_v58 }
 0x42e   :  { %v3859_v26 = vpop.f32.mrf.mxu2 }
 0x42f   :  { %v3860_v0 = vadd.f32 %v4044_v7, %v3859_v26 }
 0x436   :  { %v3862_v47 = vpop.f32.mrf.mxu2 }
 0x437   :  { %v3863_v62 = vadd.f32 %v4044_v7, %v3862_v47 }
 0x439   :  { %3882 = vrot.lane.b32.xlu0 %v3863_v62, %s4458_s7 }
 0x43f   :  { %v3865_v38 = vpop.f32.mrf.mxu2 }
 0x440   :  { %v3866_v42 = vadd.f32 %v4044_v7, %v3865_v38 }
 0x442   :  { %3884 = vrot.lane.b32.xlu2 %v3866_v42, %s4458_s7  ;;  %s3917_s7 = sshll.u32 %s4461_s9, 4  ;;  %s3918_s7 = int_to_ptr.vmem [resolvable:$true] %s3917_s7 }
 0x447   :  { %v3868_v19 = vpop.f32.mrf.mxu2 }
 0x448   :  { %v3869_v20 = vadd.f32 %v4044_v7, %v3868_v19 }
 0x44a   :  { %3890 = vrot.lane.b32.xlu1 %v3869_v20, %s4459_s0 }
 0x471   :  { %v3871_v28 = vpop.f32.mrf.mxu2 }
 0x472   :  { %v3872_v33 = vadd.f32 %v4044_v7, %v3871_v28 }
 0x474   :  { %3892 = vrot.lane.b32.xlu0 %v3872_v33, %s4459_s0 }
 0x479   :  { %v3874_v39 = vpop.f32.mrf.mxu2 }
 0x47a   :  { %v3875_v27 = vadd.f32 %v4044_v7, %v3874_v39 }
 0x47c   :  { %3898 = vrot.lane.b32.xlu2 %v3875_v27, %s4460_s23 }
 0x49c   :  { %v3885_v1 = vpop.permute.xlu2 %3884 }
 0x49d   :  { %v3905_v61 = vsel %vm52_vm0, %v3860_v0, %v3885_v1 }
 0x4a5   :  { %v3877_v55 = vpop.f32.mrf.mxu2 }
 0x4a6   :  { %v3878_v18 = vadd.f32 %v4044_v7, %v3877_v55 }
 0x4a8   :  { %3900 = vrot.lane.b32.xlu1 %v3878_v18, %s4460_s23 }
 0x4ab   :  { %v3883_v22 = vpop.permute.xlu0 %3882 }
 0x4ac   :  { %v3904_v14 = vsel %vm52_vm0, %v3857_v25, %v3883_v22 }
 0x4bc   :  { %v3891_v6 = vpop.permute.xlu1 %3890 }
 0x4bd   :  { %v3906_v36 = vsel %vm3802_vm12, %v3904_v14, %v3891_v6 }
 0x4d6   :  { %v3899_v24 = vpop.permute.xlu2 %3898 }
 0x4d7   :  { %v3909_v5 = vsel %vm3908_vm7, %v3906_v36, %v3899_v24 }
 0x4d8   :  { %3911 = vst [vmem:[#allocation2] sm:$0xff] %v3909_v5 }
 0x4e6   :  { %v3893_v21 = vpop.permute.xlu0 %3892 }
 0x4e7   :  { %v3907_v37 = vsel %vm3802_vm12, %v3905_v61, %v3893_v21 }
 0x51a   :  { %v3901_v32 = vpop.permute.xlu1 %3900 }
 0x51b   :  { %v3910_v23 = vsel %vm3908_vm7, %v3907_v37, %v3901_v32 }
 0x51c   :  { %3912 = vst [vmem:[#allocation2 + $0x8] sm:$0xff] %v3910_v23 }
 0x51d   :  { %3925 = dma.vmem_to_hbm [thread:$0]  %s3918_s7, 256, %s3920_s26, [#allocation3], %s4462_s1, %s4462_s1, %s4463_s4  }
 0x51e   :  { %4456 = dma.done.wait [#allocation3], 256  }
 0x51f   :  { %4457 = vsyncadd [#allocation3], 4294967040 }
 0x520   :  { %3930 = vsyncpa [#allocation3], 1 }

</bundles_post_ra>
